<compile_context>
chip_gen: v5e
topology: v5e:2x2
jax: 0.10.0
libtpu: 0.0.40
codegen_flags: <defaults>
</compile_context>

<pallas_src>
import math

import jax
import jax.numpy as jnp
from jax import lax
from jax.experimental import pallas as pl
from jax.experimental.pallas import tpu as pltpu


_LANE = 128
_RESIDENT_BYTES = 8 * 1024 * 1024     # keep activations VMEM-resident below this
_VMEM_LIMIT = 48 * 1024 * 1024        # per-TC safe on v5e/v6e/v7x


def _round_up(x, m):
    return ((x + m - 1) // m) * m


# --------------------------------------------------------------------------
# Kernel 1:  y = c * ( relu( r * (A @ (c*X)) @ W1 + b1 ) @ W2_pad )
#   grid = (row tiles of A, contraction tiles over source nodes)
# --------------------------------------------------------------------------
def _make_layer1_kernel(tk, xc_resident):
    def kernel(adj_ref, xc_ref, r_ref, c_ref, w1_ref, b1_ref, w2_ref,
               y_ref, acc_ref):
        k = pl.program_id(1)

        @pl.when(k == 0)
        def _():
            acc_ref[...] = jnp.zeros_like(acc_ref)

        # int8 (0/1) adjacency tile -> bf16 in-register for the MXU.
        a = adj_ref[...].astype(jnp.float32).astype(jnp.bfloat16)
        if xc_resident:
            xc = xc_ref[pl.ds(pl.multiple_of(k * tk, tk), tk), :]
        else:
            xc = xc_ref[...]
        acc_ref[...] += jnp.dot(a, xc, preferred_element_type=jnp.float32)

        @pl.when(k == pl.num_programs(1) - 1)
        def _():
            agg = (acc_ref[...] * r_ref[...]).astype(jnp.bfloat16)
            h1 = jnp.dot(agg, w1_ref[...], preferred_element_type=jnp.float32)
            h1 = jnp.maximum(h1 + b1_ref[...], 0.0).astype(jnp.bfloat16)
            y = jnp.dot(h1, w2_ref[...], preferred_element_type=jnp.float32)
            # NOTE: c == 0 on padded rows is what kills the relu(b1) @ W2
            # contribution of all-zero adjacency rows.  Do not move this scale.
            y_ref[...] = (y * c_ref[...]).astype(y_ref.dtype)
    return kernel


# --------------------------------------------------------------------------
# Kernel 2:  hidden = r * (A @ y) + b2
# --------------------------------------------------------------------------
def _make_layer2_kernel(tk, y_resident):
    def kernel(adj_ref, y_ref, r_ref, b2_ref, hidden_ref, acc_ref):
        k = pl.program_id(1)

        @pl.when(k == 0)
        def _():
            acc_ref[...] = jnp.zeros_like(acc_ref)

        a = adj_ref[...].astype(jnp.float32).astype(jnp.bfloat16)
        if y_resident:
            y = y_ref[pl.ds(pl.multiple_of(k * tk, tk), tk), :]
        else:
            y = y_ref[...]
        acc_ref[...] += jnp.dot(a, y, preferred_element_type=jnp.float32)

        @pl.when(k == pl.num_programs(1) - 1)
        def _():
            hidden_ref[...] = (acc_ref[...] * r_ref[...]
                               + b2_ref[...]).astype(hidden_ref.dtype)
    return kernel


# --------------------------------------------------------------------------
# Wrapper
# --------------------------------------------------------------------------
def gcn_contrastive_forward(adj, x, params, *, tm=None, tk=None):
    """Returns (logits [N, 2], hidden [N, out_feats])."""
    w1, b1, w2, b2, w3, b3 = params
    n, in_feats = x.shape
    hidden_feats = w1.shape[1]
    out_feats = w2.shape[1]

    out_pad = _round_up(out_feats, _LANE)          # lane-dense y / hidden width

    # --- tile selection: tm | tk | npad keeps padding under tk extra rows ----
    if tk is None:
        tk = min(512, _round_up(n, _LANE))         # multiple of 256 when large
    if tm is None:
        tm = 256 if tk % 256 == 0 else _LANE
    npad = _round_up(n, math.lcm(tm, tk))
    n_row_tiles = npad // tm

    adj_f = adj.astype(jnp.float32)
    x = x.astype(jnp.float32)

    # --- 'both' normalization as per-node scale vectors (wrapper-side XLA) ---
    deg_in = jnp.sum(adj_f, axis=1, keepdims=True)            # (n,1) dst degree
    deg_out = jnp.sum(adj_f, axis=0, keepdims=True)           # (1,n) src degree
    r = jnp.where(deg_in > 0, lax.rsqrt(deg_in), 0.0)          # (n,1)
    c = jnp.where(deg_out > 0, lax.rsqrt(deg_out), 0.0).reshape(n, 1)
    xc = x * c                                                 # pre-scaled srcs

    # --- pad node dim to the tile grid; int8 adjacency, bf16 activations -----
    adj_p = jnp.zeros((npad, npad), jnp.int8).at[:n, :n].set(adj.astype(jnp.int8))
    xc_p = jnp.zeros((npad, in_feats), jnp.bfloat16).at[:n].set(
        xc.astype(jnp.bfloat16))
    r_p = jnp.zeros((npad, 1), jnp.float32).at[:n].set(r)
    c_p = jnp.zeros((npad, 1), jnp.float32).at[:n].set(c)

    # --- bf16 weights (fast MXU path), lane-dense zero padding ---------------
    w1_b = w1.astype(jnp.bfloat16)
    b1_2d = b1.reshape(1, -1).astype(jnp.float32)
    w2_p = jnp.zeros((hidden_feats, out_pad), jnp.bfloat16).at[:, :out_feats].set(
        w2.astype(jnp.bfloat16))
    b2_p = jnp.zeros((1, out_pad), jnp.float32).at[:, :out_feats].set(
        b2.reshape(1, -1).astype(jnp.float32))

    xc_resident = npad * in_feats * 2 <= _RESIDENT_BYTES
    y_resident = npad * out_pad * 2 <= _RESIDENT_BYTES

    grid = (n_row_tiles, npad // tk)
    cparams = pltpu.CompilerParams(
        dimension_semantics=("parallel", "arbitrary"),
        vmem_limit_bytes=_VMEM_LIMIT,
    )
    full = lambda i, k: (0, 0)

    # ---------------------------- layer 1 ------------------------------------
    if xc_resident:
        xc_spec = pl.BlockSpec((npad, in_feats), full)          # DMA once, resident
    else:
        xc_spec = pl.BlockSpec((tk, in_feats), lambda i, k: (k, 0))

    cost1 = pl.CostEstimate(
        flops=2 * npad * npad * in_feats
        + 2 * npad * (in_feats * hidden_feats + hidden_feats * out_pad),
        transcendentals=0,
        bytes_accessed=npad * npad
        + npad * in_feats * 2 * (1 if xc_resident else n_row_tiles)
        + npad * out_pad * 2 + 8 * npad,
    )
    # NOTE: if an xprof trace shows exposed DMA on the A stream, bump the A
    # BlockSpec to pipeline_mode=pl.Buffered(3).
    y_p = pl.pallas_call(
        _make_layer1_kernel(tk, xc_resident),
        out_shape=jax.ShapeDtypeStruct((npad, out_pad), jnp.bfloat16),
        grid_spec=pltpu.PrefetchScalarGridSpec(
            num_scalar_prefetch=0,
            grid=grid,
            in_specs=[
                pl.BlockSpec((tm, tk), lambda i, k: (i, k)),       # A tile (int8)
                xc_spec,                                           # c * X
                pl.BlockSpec((tm, 1), lambda i, k: (i, 0)),        # r rows
                pl.BlockSpec((tm, 1), lambda i, k: (i, 0)),        # c rows
                pl.BlockSpec((in_feats, hidden_feats), full),      # W1 (bf16)
                pl.BlockSpec((1, hidden_feats), full),             # b1
                pl.BlockSpec((hidden_feats, out_pad), full),       # W2 (bf16, pad)
            ],
            out_specs=pl.BlockSpec((tm, out_pad), lambda i, k: (i, 0)),
            scratch_shapes=[pltpu.VMEM((tm, in_feats), jnp.float32)],
        ),
        compiler_params=cparams,
        cost_estimate=cost1,
    )(adj_p, xc_p, r_p, c_p, w1_b, b1_2d, w2_p)

    # ---------------------------- layer 2 ------------------------------------
    if y_resident:
        y_spec = pl.BlockSpec((npad, out_pad), full)            # DMA once, resident
    else:
        y_spec = pl.BlockSpec((tk, out_pad), lambda i, k: (k, 0))

    cost2 = pl.CostEstimate(
        flops=2 * npad * npad * out_pad,
        transcendentals=0,
        bytes_accessed=npad * npad
        + npad * out_pad * 2 * (1 if y_resident else n_row_tiles)
        + npad * out_pad * 4 + 4 * npad,
    )
    hidden_p = pl.pallas_call(
        _make_layer2_kernel(tk, y_resident),
        out_shape=jax.ShapeDtypeStruct((npad, out_pad), jnp.float32),
        grid_spec=pltpu.PrefetchScalarGridSpec(
            num_scalar_prefetch=0,
            grid=grid,
            in_specs=[
                pl.BlockSpec((tm, tk), lambda i, k: (i, k)),       # A tile (int8)
                y_spec,                                            # layer-1 output
                pl.BlockSpec((tm, 1), lambda i, k: (i, 0)),        # r rows
                pl.BlockSpec((1, out_pad), full),                  # b2 (pad)
            ],
            out_specs=pl.BlockSpec((tm, out_pad), lambda i, k: (i, 0)),
            scratch_shapes=[pltpu.VMEM((tm, out_pad), jnp.float32)],
        ),
        compiler_params=cparams,
        cost_estimate=cost2,
    )(adj_p, y_p, r_p, b2_p)

    hidden = hidden_p[:n, :out_feats]
    # Final out_feats->2 linear: trivial flops, computed in plain XLA on the
    # exact f32 hidden instead of streaming a 128-wide padded logits slab.
    logits = hidden @ w3.astype(jnp.float32) + b3.reshape(1, -1).astype(jnp.float32)
    return logits, hidden


# --------------------------------------------------------------------------
# Pure-JAX reference (f32) and parameter init
# --------------------------------------------------------------------------
def gcn_reference(adj, x, params):
    w1, b1, w2, b2, w3, b3 = params
    adj = adj.astype(jnp.float32)
    x = x.astype(jnp.float32)
    deg_in = jnp.sum(adj, axis=1, keepdims=True)
    deg_out = jnp.sum(adj, axis=0, keepdims=True)
    r = jnp.where(deg_in > 0, lax.rsqrt(deg_in), 0.0)
    c = jnp.where(deg_out > 0, lax.rsqrt(deg_out), 0.0)
    a_norm = r * adj * c
    h1 = jnp.maximum(a_norm @ (x @ w1) + b1.reshape(1, -1), 0.0)
    hidden = a_norm @ (h1 @ w2) + b2.reshape(1, -1)
    logits = hidden @ w3 + b3.reshape(1, -1)
    return logits, hidden


def init_params(key, in_feats, hidden_feats, out_feats):
    k1, k2, k3 = jax.random.split(key, 3)
    w1 = jax.random.normal(k1, (in_feats, hidden_feats), jnp.float32) * 0.1
    b1 = jnp.zeros((1, hidden_feats), jnp.float32)
    w2 = jax.random.normal(k2, (hidden_feats, out_feats), jnp.float32) * 0.1
    b2 = jnp.zeros((1, out_feats), jnp.float32)
    w3 = jax.random.normal(k3, (out_feats, 2), jnp.float32) * 0.1
    b3 = jnp.zeros((1, 2), jnp.float32)
    return (w1, b1, w2, b2, w3, b3)


if __name__ == "__main__":
    key = jax.random.PRNGKey(0)
    k_adj, k_x, k_params = jax.random.split(key, 3)

    # 1000 nodes -> npad=1024, tm=256, tk=512: exercises a (4, 2) tile grid,
    # the f32 accumulator over k, row padding, and the VMEM-resident xc/y path.
    N, IN_FEATS, HIDDEN_FEATS, OUT_FEATS = 1000, 16, 32, 16

    # Random undirected, unweighted graph (~10% density), no self loops.
    upper = (jax.random.uniform(k_adj, (N, N)) > 0.9).astype(jnp.float32)
    adj = jnp.triu(upper, k=1)
    adj = adj + adj.T

    x = jax.random.normal(k_x, (N, IN_FEATS), jnp.float32)
    params = init_params(k_params, IN_FEATS, HIDDEN_FEATS, OUT_FEATS)

    logits, hidden = jax.jit(gcn_contrastive_forward)(adj, x, params)
    jax.block_until_ready((logits, hidden))

    assert logits.shape == (N, 2) and hidden.shape == (N, OUT_FEATS)
    assert jnp.all(jnp.isfinite(logits)) and jnp.all(jnp.isfinite(hidden))

    # Compare against the f32 reference.  The kernel streams the adjacency as
    # int8 (exact for 0/1) but keeps activations/weights in bf16 on the MXU,
    # so use a loose tolerance.  Note: `hidden` carries bf16 error from the
    # layer-1 intermediate y.
    logits_ref, hidden_ref = gcn_reference(adj, x, params)

    def _max_rel_err(a, b):
        return float(jnp.max(jnp.abs(a - b)) / (jnp.max(jnp.abs(b)) + 1e-6))

    assert _max_rel_err(hidden, hidden_ref) < 5e-2, _max_rel_err(hidden, hidden_ref)
    assert _max_rel_err(logits, logits_ref) < 5e-2, _max_rel_err(logits, logits_ref)

    print("KERNEL_OK")
</pallas_src>

<mosaic_0001>
module attributes {stable_mosaic.version = 11 : i64} {
  func.func @kernel(%arg0: i32, %arg1: i32, %arg2: memref<256x512xi8, #tpu.memory_space<vmem>>, %arg3: memref<1024x16xbf16, #tpu.memory_space<vmem>>, %arg4: memref<256x1xf32, #tpu.memory_space<vmem>>, %arg5: memref<256x1xf32, #tpu.memory_space<vmem>>, %arg6: memref<16x32xbf16, #tpu.memory_space<vmem>>, %arg7: memref<1x32xf32, #tpu.memory_space<vmem>>, %arg8: memref<32x128xbf16, #tpu.memory_space<vmem>>, %arg9: memref<256x128xbf16, #tpu.memory_space<vmem>>, %arg10: memref<256x16xf32, #tpu.memory_space<vmem>>) attributes {dimension_semantics = [#tpu.dimension_semantics<parallel>, #tpu.dimension_semantics<arbitrary>], iteration_bounds = array<i64: 4, 2>, scalar_prefetch = 0 : i64, scratch_operands = 1 : i64, tpu.core_type = #tpu.core_type<tc>, window_params = [{transform_indices = @transform_0, window_bounds = array<i64: 256, 512>}, {pipeline_mode = #tpu.pipeline_mode<synchronous>, transform_indices = @transform_1, window_bounds = array<i64: 1024, 16>}, {transform_indices = @transform_2, window_bounds = array<i64: 256, 1>}, {transform_indices = @transform_3, window_bounds = array<i64: 256, 1>}, {pipeline_mode = #tpu.pipeline_mode<synchronous>, transform_indices = @transform_4, window_bounds = array<i64: 16, 32>}, {pipeline_mode = #tpu.pipeline_mode<synchronous>, transform_indices = @transform_5, window_bounds = array<i64: 1, 32>}, {pipeline_mode = #tpu.pipeline_mode<synchronous>, transform_indices = @transform_6, window_bounds = array<i64: 32, 128>}, {transform_indices = @transform_7, window_bounds = array<i64: 256, 128>}]} {
    %c0_i32 = arith.constant 0 : i32
    %0 = arith.cmpi eq, %arg1, %c0_i32 : i32
    %1 = arith.extui %0 : i1 to i32
    %c0_i32_0 = arith.constant 0 : i32
    %2 = arith.cmpi ne, %1, %c0_i32_0 : i32
    scf.if %2 {
      %cst_8 = arith.constant 0.000000e+00 : f32
      %17 = vector.broadcast %cst_8 : f32 to vector<256x16xf32>
      %c0_9 = arith.constant 0 : index
      %c0_10 = arith.constant 0 : index
      %18 = vector.load %arg10[%c0_9, %c0_10] : memref<256x16xf32, #tpu.memory_space<vmem>>, vector<256x16xf32>
      tpu.vector_store %arg10[%c0_9, %c0_10], %17 {strides = array<i32>} : memref<256x16xf32, #tpu.memory_space<vmem>>, vector<256x16xf32>,
    } else {
    }
    %c0 = arith.constant 0 : index
    %c0_1 = arith.constant 0 : index
    %3 = vector.load %arg2[%c0, %c0_1] : memref<256x512xi8, #tpu.memory_space<vmem>>, vector<256x512xi8>
    %4 = arith.sitofp %3 : vector<256x512xi8> to vector<256x512xf32>
    %5 = arith.truncf %4 : vector<256x512xf32> to vector<256x512xbf16>
    %c512_i32 = arith.constant 512 : i32
    %6 = arith.muli %arg1, %c512_i32 : i32
    %7 = tpu.assume_multiple %6, 512 : i32
    %8 = arith.index_cast %7 : i32 to index
    %c0_2 = arith.constant 0 : index
    %9 = vector.load %arg3[%8, %c0_2] : memref<1024x16xbf16, #tpu.memory_space<vmem>>, vector<512x16xbf16>
    %c0_3 = arith.constant 0 : index
    %c0_4 = arith.constant 0 : index
    %10 = vector.load %arg10[%c0_3, %c0_4] : memref<256x16xf32, #tpu.memory_space<vmem>>, vector<256x16xf32>
    %cst = arith.constant dense<0.000000e+00> : vector<256x16xf32>
    %11 = tpu.matmul %5, %9, %cst {dimension_numbers = #tpu.dot_dimension_numbers<[1], [0], [0], [1], [0, 0, 1, 1], [], []>} : vector<256x512xbf16>, vector<512x16xbf16>, vector<256x16xf32> -> vector<256x16xf32>
    %12 = arith.addf %10, %11 : vector<256x16xf32>
    %c0_5 = arith.constant 0 : index
    %c0_6 = arith.constant 0 : index
    %13 = vector.load %arg10[%c0_5, %c0_6] : memref<256x16xf32, #tpu.memory_space<vmem>>, vector<256x16xf32>
    tpu.vector_store %arg10[%c0_5, %c0_6], %12 {strides = array<i32>} : memref<256x16xf32, #tpu.memory_space<vmem>>, vector<256x16xf32>,
    %c1_i32 = arith.constant 1 : i32
    %14 = arith.cmpi eq, %arg1, %c1_i32 : i32
    %15 = arith.extui %14 : i1 to i32
    %c0_i32_7 = arith.constant 0 : i32
    %16 = arith.cmpi ne, %15, %c0_i32_7 : i32
    scf.if %16 {
      %c0_8 = arith.constant 0 : index
      %c0_9 = arith.constant 0 : index
      %17 = vector.load %arg10[%c0_8, %c0_9] : memref<256x16xf32, #tpu.memory_space<vmem>>, vector<256x16xf32>
      %c0_10 = arith.constant 0 : index
      %c0_11 = arith.constant 0 : index
      %18 = vector.load %arg4[%c0_10, %c0_11] : memref<256x1xf32, #tpu.memory_space<vmem>>, vector<256x1xf32>
      %19 = vector.broadcast %18 : vector<256x1xf32> to vector<256x16xf32>
      %20 = arith.mulf %17, %19 : vector<256x16xf32>
      %21 = arith.truncf %20 : vector<256x16xf32> to vector<256x16xbf16>
      %c0_12 = arith.constant 0 : index
      %c0_13 = arith.constant 0 : index
      %22 = vector.load %arg6[%c0_12, %c0_13] : memref<16x32xbf16, #tpu.memory_space<vmem>>, vector<16x32xbf16>
      %cst_14 = arith.constant dense<0.000000e+00> : vector<256x32xf32>
      %23 = tpu.matmul %21, %22, %cst_14 {dimension_numbers = #tpu.dot_dimension_numbers<[1], [0], [0], [1], [0, 0, 1, 1], [], []>} : vector<256x16xbf16>, vector<16x32xbf16>, vector<256x32xf32> -> vector<256x32xf32>
      %c0_15 = arith.constant 0 : index
      %c0_16 = arith.constant 0 : index
      %24 = vector.load %arg7[%c0_15, %c0_16] : memref<1x32xf32, #tpu.memory_space<vmem>>, vector<1x32xf32>
      %25 = vector.broadcast %24 : vector<1x32xf32> to vector<256x32xf32>
      %26 = arith.addf %23, %25 : vector<256x32xf32>
      %cst_17 = arith.constant 0.000000e+00 : f32
      %27 = vector.broadcast %cst_17 : f32 to vector<256x32xf32>
      %28 = arith.maximumf %26, %27 : vector<256x32xf32>
      %29 = arith.truncf %28 : vector<256x32xf32> to vector<256x32xbf16>
      %c0_18 = arith.constant 0 : index
      %c0_19 = arith.constant 0 : index
      %30 = vector.load %arg8[%c0_18, %c0_19] : memref<32x128xbf16, #tpu.memory_space<vmem>>, vector<32x128xbf16>
      %cst_20 = arith.constant dense<0.000000e+00> : vector<256x128xf32>
      %31 = tpu.matmul %29, %30, %cst_20 {dimension_numbers = #tpu.dot_dimension_numbers<[1], [0], [0], [1], [0, 0, 1, 1], [], []>} : vector<256x32xbf16>, vector<32x128xbf16>, vector<256x128xf32> -> vector<256x128xf32>
      %c0_21 = arith.constant 0 : index
      %c0_22 = arith.constant 0 : index
      %32 = vector.load %arg5[%c0_21, %c0_22] : memref<256x1xf32, #tpu.memory_space<vmem>>, vector<256x1xf32>
      %33 = vector.broadcast %32 : vector<256x1xf32> to vector<256x128xf32>
      %34 = arith.mulf %31, %33 : vector<256x128xf32>
      %35 = arith.truncf %34 : vector<256x128xf32> to vector<256x128xbf16>
      %c0_23 = arith.constant 0 : index
      %c0_24 = arith.constant 0 : index
      %36 = vector.load %arg9[%c0_23, %c0_24] : memref<256x128xbf16, #tpu.memory_space<vmem>>, vector<256x128xbf16>
      tpu.vector_store %arg9[%c0_23, %c0_24], %35 {strides = array<i32>} : memref<256x128xbf16, #tpu.memory_space<vmem>>, vector<256x128xbf16>,
    } else {
    }
    return
  }
  func.func @transform_0(%arg0: i32, %arg1: i32) -> (i32, i32) {
    %c0_i32 = arith.constant 0 : i32
    return %arg0, %arg1 : i32, i32
  }
  func.func @transform_1(%arg0: i32, %arg1: i32) -> (i32, i32) {
    %c0_i32 = arith.constant 0 : i32
    %c0_i32_0 = arith.constant 0 : i32
    %c0_i32_1 = arith.constant 0 : i32
    return %c0_i32, %c0_i32_0 : i32, i32
  }
  func.func @transform_2(%arg0: i32, %arg1: i32) -> (i32, i32) {
    %c0_i32 = arith.constant 0 : i32
    %c0_i32_0 = arith.constant 0 : i32
    return %arg0, %c0_i32 : i32, i32
  }
  func.func @transform_3(%arg0: i32, %arg1: i32) -> (i32, i32) {
    %c0_i32 = arith.constant 0 : i32
    %c0_i32_0 = arith.constant 0 : i32
    return %arg0, %c0_i32 : i32, i32
  }
  func.func @transform_4(%arg0: i32, %arg1: i32) -> (i32, i32) {
    %c0_i32 = arith.constant 0 : i32
    %c0_i32_0 = arith.constant 0 : i32
    %c0_i32_1 = arith.constant 0 : i32
    return %c0_i32, %c0_i32_0 : i32, i32
  }
  func.func @transform_5(%arg0: i32, %arg1: i32) -> (i32, i32) {
    %c0_i32 = arith.constant 0 : i32
    %c0_i32_0 = arith.constant 0 : i32
    %c0_i32_1 = arith.constant 0 : i32
    return %c0_i32, %c0_i32_0 : i32, i32
  }
  func.func @transform_6(%arg0: i32, %arg1: i32) -> (i32, i32) {
    %c0_i32 = arith.constant 0 : i32
    %c0_i32_0 = arith.constant 0 : i32
    %c0_i32_1 = arith.constant 0 : i32
    return %c0_i32, %c0_i32_0 : i32, i32
  }
  func.func @transform_7(%arg0: i32, %arg1: i32) -> (i32, i32) {
    %c0_i32 = arith.constant 0 : i32
    %c0_i32_0 = arith.constant 0 : i32
    return %arg0, %c0_i32 : i32, i32
  }
}

module attributes {stable_mosaic.version = 11 : i64} {
  func.func @kernel(%arg0: i32, %arg1: i32, %arg2: memref<256x512xi8, #tpu.memory_space<vmem>>, %arg3: memref<1024x128xbf16, #tpu.memory_space<vmem>>, %arg4: memref<256x1xf32, #tpu.memory_space<vmem>>, %arg5: memref<1x128xf32, #tpu.memory_space<vmem>>, %arg6: memref<256x128xf32, #tpu.memory_space<vmem>>, %arg7: memref<256x128xf32, #tpu.memory_space<vmem>>) attributes {dimension_semantics = [#tpu.dimension_semantics<parallel>, #tpu.dimension_semantics<arbitrary>], iteration_bounds = array<i64: 4, 2>, scalar_prefetch = 0 : i64, scratch_operands = 1 : i64, tpu.core_type = #tpu.core_type<tc>, window_params = [{transform_indices = @transform_0, window_bounds = array<i64: 256, 512>}, {pipeline_mode = #tpu.pipeline_mode<synchronous>, transform_indices = @transform_1, window_bounds = array<i64: 1024, 128>}, {transform_indices = @transform_2, window_bounds = array<i64: 256, 1>}, {pipeline_mode = #tpu.pipeline_mode<synchronous>, transform_indices = @transform_3, window_bounds = array<i64: 1, 128>}, {transform_indices = @transform_4, window_bounds = array<i64: 256, 128>}]} {
    %c0_i32 = arith.constant 0 : i32
    %0 = arith.cmpi eq, %arg1, %c0_i32 : i32
    %1 = arith.extui %0 : i1 to i32
    %c0_i32_0 = arith.constant 0 : i32
    %2 = arith.cmpi ne, %1, %c0_i32_0 : i32
    scf.if %2 {
      %cst_8 = arith.constant 0.000000e+00 : f32
      %17 = vector.broadcast %cst_8 : f32 to vector<256x128xf32>
      %c0_9 = arith.constant 0 : index
      %c0_10 = arith.constant 0 : index
      %18 = vector.load %arg7[%c0_9, %c0_10] : memref<256x128xf32, #tpu.memory_space<vmem>>, vector<256x128xf32>
      tpu.vector_store %arg7[%c0_9, %c0_10], %17 {strides = array<i32>} : memref<256x128xf32, #tpu.memory_space<vmem>>, vector<256x128xf32>,
    } else {
    }
    %c0 = arith.constant 0 : index
    %c0_1 = arith.constant 0 : index
    %3 = vector.load %arg2[%c0, %c0_1] : memref<256x512xi8, #tpu.memory_space<vmem>>, vector<256x512xi8>
    %4 = arith.sitofp %3 : vector<256x512xi8> to vector<256x512xf32>
    %5 = arith.truncf %4 : vector<256x512xf32> to vector<256x512xbf16>
    %c512_i32 = arith.constant 512 : i32
    %6 = arith.muli %arg1, %c512_i32 : i32
    %7 = tpu.assume_multiple %6, 512 : i32
    %8 = arith.index_cast %7 : i32 to index
    %c0_2 = arith.constant 0 : index
    %9 = vector.load %arg3[%8, %c0_2] : memref<1024x128xbf16, #tpu.memory_space<vmem>>, vector<512x128xbf16>
    %c0_3 = arith.constant 0 : index
    %c0_4 = arith.constant 0 : index
    %10 = vector.load %arg7[%c0_3, %c0_4] : memref<256x128xf32, #tpu.memory_space<vmem>>, vector<256x128xf32>
    %cst = arith.constant dense<0.000000e+00> : vector<256x128xf32>
    %11 = tpu.matmul %5, %9, %cst {dimension_numbers = #tpu.dot_dimension_numbers<[1], [0], [0], [1], [0, 0, 1, 1], [], []>} : vector<256x512xbf16>, vector<512x128xbf16>, vector<256x128xf32> -> vector<256x128xf32>
    %12 = arith.addf %10, %11 : vector<256x128xf32>
    %c0_5 = arith.constant 0 : index
    %c0_6 = arith.constant 0 : index
    %13 = vector.load %arg7[%c0_5, %c0_6] : memref<256x128xf32, #tpu.memory_space<vmem>>, vector<256x128xf32>
    tpu.vector_store %arg7[%c0_5, %c0_6], %12 {strides = array<i32>} : memref<256x128xf32, #tpu.memory_space<vmem>>, vector<256x128xf32>,
    %c1_i32 = arith.constant 1 : i32
    %14 = arith.cmpi eq, %arg1, %c1_i32 : i32
    %15 = arith.extui %14 : i1 to i32
    %c0_i32_7 = arith.constant 0 : i32
    %16 = arith.cmpi ne, %15, %c0_i32_7 : i32
    scf.if %16 {
      %c0_8 = arith.constant 0 : index
      %c0_9 = arith.constant 0 : index
      %17 = vector.load %arg7[%c0_8, %c0_9] : memref<256x128xf32, #tpu.memory_space<vmem>>, vector<256x128xf32>
      %c0_10 = arith.constant 0 : index
      %c0_11 = arith.constant 0 : index
      %18 = vector.load %arg4[%c0_10, %c0_11] : memref<256x1xf32, #tpu.memory_space<vmem>>, vector<256x1xf32>
      %19 = vector.broadcast %18 : vector<256x1xf32> to vector<256x128xf32>
      %20 = arith.mulf %17, %19 : vector<256x128xf32>
      %c0_12 = arith.constant 0 : index
      %c0_13 = arith.constant 0 : index
      %21 = vector.load %arg5[%c0_12, %c0_13] : memref<1x128xf32, #tpu.memory_space<vmem>>, vector<1x128xf32>
      %22 = vector.broadcast %21 : vector<1x128xf32> to vector<256x128xf32>
      %23 = arith.addf %20, %22 : vector<256x128xf32>
      %c0_14 = arith.constant 0 : index
      %c0_15 = arith.constant 0 : index
      %24 = vector.load %arg6[%c0_14, %c0_15] : memref<256x128xf32, #tpu.memory_space<vmem>>, vector<256x128xf32>
      tpu.vector_store %arg6[%c0_14, %c0_15], %23 {strides = array<i32>} : memref<256x128xf32, #tpu.memory_space<vmem>>, vector<256x128xf32>,
    } else {
    }
    return
  }
  func.func @transform_0(%arg0: i32, %arg1: i32) -> (i32, i32) {
    %c0_i32 = arith.constant 0 : i32
    return %arg0, %arg1 : i32, i32
  }
  func.func @transform_1(%arg0: i32, %arg1: i32) -> (i32, i32) {
    %c0_i32 = arith.constant 0 : i32
    %c0_i32_0 = arith.constant 0 : i32
    %c0_i32_1 = arith.constant 0 : i32
    return %c0_i32, %c0_i32_0 : i32, i32
  }
  func.func @transform_2(%arg0: i32, %arg1: i32) -> (i32, i32) {
    %c0_i32 = arith.constant 0 : i32
    %c0_i32_0 = arith.constant 0 : i32
    return %arg0, %c0_i32 : i32, i32
  }
  func.func @transform_3(%arg0: i32, %arg1: i32) -> (i32, i32) {
    %c0_i32 = arith.constant 0 : i32
    %c0_i32_0 = arith.constant 0 : i32
    %c0_i32_1 = arith.constant 0 : i32
    return %c0_i32, %c0_i32_0 : i32, i32
  }
  func.func @transform_4(%arg0: i32, %arg1: i32) -> (i32, i32) {
    %c0_i32 = arith.constant 0 : i32
    %c0_i32_0 = arith.constant 0 : i32
    return %arg0, %c0_i32 : i32, i32
  }
}

</mosaic_0001>

<bundles_post_ra>
// kernel: gcn_contrastive_forward.3
= control target key start
LH: loop header
LB: loop body
LE: loop exit
PB: predicated region body
PF: predicated region fallthrough
CT: control target
= control target key end

     0   :  { %s2169_s15 = smov 0   ;;  %s2171_s16 = smov 0   ;;  %s2597_s0 = inlined_call_operand.vmem [shape: s8[1024,1024], index: 0, kind: input, shape index: {}]   ;;  %s2598_s1 = inlined_call_operand.vmem [shape: bf16[1024,128], index: 1, kind: input, shape index: {}]   ;;  %s2599_s2 = inlined_call_operand.vmem [shape: f32[1024,1], index: 2, kind: input, shape index: {}]   ;;  %s2600_s3 = inlined_call_operand.vmem [shape: f32[1,128], index: 3, kind: input, shape index: {}]   ;;  %s2601_s4 = inlined_call_operand.vmem [shape: f32[1024,128], index: 4, kind: output, shape index: {}]  }
   0x1   :  { %s2173_s17 = smov 0   ;;  %s2175_s18 = smov 0  }
   0x2   :  { %s2177_s19 = smov 0   ;;  %s2179_s20 = smov 0  }
   0x3   :  { %s2181_s21 = smov 0  }
   0x4 LB: > { %s23_s22 = sadd.s32 1, %s2132_s19  ;;  %s26_s23 = sadd.s32 1, %s2136_s20  ;;  %s2140_s21 = sphi %s2181_s21, %s14_s21   ;;  %s2136_s20 = sphi %s2179_s20, %s2607_s20   ;;  %s2132_s19 = sphi %s2177_s19, %s2606_s19   ;;  %s2128_s18 = sphi %s2175_s18, %s2605_s18   ;;  %s2124_s17 = sphi %s2173_s17, %s2604_s17   ;;  %s2120_s16 = sphi %s2171_s16, %s2603_s16   ;;  %s2116_s15 = sphi %s2169_s15, %s2602_s15  }
   0x5   : > { %p24_p0 = scmp.ge.s32.totalorder %s23_s22, 2  ;;  %p42_p1 = scmp.ne.s32.totalorder %s2120_s16, %s2116_s15 }
   0x6   : > { %p43_p2 = scmp.eq.s32.totalorder %s2140_s21, 0  ;;  %s35_s27 = sadd.s32 1, %s2120_s16 }
   0x7   : > { %s2609_s22 = smov (%p24_p0, %s23_s22), 0  ;;  %s2611_s23 = smov (!%p24_p0, %s26_s23), %s2136_s20 }
   0x8   : > { %p44_p3 = por %p43_p2, %p42_p1  ;;  %p28_p4 = scmp.ge.s32.totalorder %s2611_s23, 4 }
   0x9   : > { %s31_s24 = ssub.s32 %s2132_s19, %s2609_s22  ;;  %p1845_p6 = scmp.ge.s32.totalorder %s2140_s21, 8 }
   0xa   : > { %s2613_s23 = smov (%p28_p4, %s2611_s23), 0 }
   0xb   : > { %s30_s25 = ssub.s32 %s2136_s20, %s2613_s23  ;;  %168 = sbr.rel (%p1845_p6) target bundleno = 55 (0x37), region = 24 }
   0xc   : > { %s32_s26 = sor.u32 %s31_s24, %s30_s25 }
   0xd   : > { %p33_p5 = scmp.eq.s32.totalorder %s32_s26, 0 }
   0xf   : > { %s2220_s28 = scalar_select %p33_p5, %s2120_s16, %s35_s27  }
  0x10   : > { %171 = sbr.rel (!%p44_p3) target bundleno = 55 (0x37), region = 28  ;;  %s173_s29 = sand.u32 (%p44_p3), 1, %s2120_s16  }
  0x11   : > { %s1848_s30 = sshll.u32 (%p44_p3), %s2132_s19, 2  ;;  %s1846_s5 = sshll.u32 (%p44_p3), %s173_s29, 8 }
  0x12   : > { %s1991_s6 = sshll.u32 (%p44_p3), %s2136_s20, 6  ;;  %s2234_s12 = scalar_lea.vmem (%p44_p3), [#allocation3], %s1846_s5 }
  0x13   : > { %s179_s7 = sadd.s32 (%p44_p3), %s1991_s6, %s1848_s30 }
  0x14   : > { %s1850_s8 = sshll.u32 (%p44_p3), %s179_s7, 3 }
  0x15   : > { %s2229_s11 = scalar_lea.vmem %s2597_s0, %s1850_s8 }
  0x16   : > { %v194_v0 = vld [vmem:[%s2229_s11] sm:$0xff]  ;;  %v196_v1 = vld [vmem:[%s2229_s11 + $0x8] sm:$0xff]  ;;  %v198_v2 = vld [vmem:[%s2229_s11 + $0x10] sm:$0xff] }
  0x17   : > { %195 = vst [vmem:[%s2234_s12] sm:$0xff] %v194_v0  ;;  %v200_v3 = vld [vmem:[%s2229_s11 + $0x18] sm:$0xff]  ;;  %v202_v4 = vld [vmem:[%s2229_s11 + $0x40] sm:$0xff]  ;;  %v204_v5 = vld [vmem:[%s2229_s11 + $0x48] sm:$0xff] }
  0x18   : > { %197 = vst [vmem:[%s2234_s12 + $0x8] sm:$0xff] %v196_v1  ;;  %v206_v6 = vld [vmem:[%s2229_s11 + $0x50] sm:$0xff]  ;;  %v208_v7 = vld [vmem:[%s2229_s11 + $0x58] sm:$0xff]  ;;  %v210_v8 = vld [vmem:[%s2229_s11 + $0x80] sm:$0xff] }
  0x19   : > { %199 = vst [vmem:[%s2234_s12 + $0x10] sm:$0xff] %v198_v2  ;;  %v212_v9 = vld [vmem:[%s2229_s11 + $0x88] sm:$0xff]  ;;  %v214_v10 = vld [vmem:[%s2229_s11 + $0x90] sm:$0xff]  ;;  %v216_v11 = vld [vmem:[%s2229_s11 + $0x98] sm:$0xff] }
  0x1a   : > { %201 = vst [vmem:[%s2234_s12 + $0x18] sm:$0xff] %v200_v3  ;;  %v218_v12 = vld [vmem:[%s2229_s11 + $0xc0] sm:$0xff]  ;;  %v220_v13 = vld [vmem:[%s2229_s11 + $0xc8] sm:$0xff]  ;;  %v222_v14 = vld [vmem:[%s2229_s11 + $0xd0] sm:$0xff] }
  0x1b   : > { %203 = vst [vmem:[%s2234_s12 + $0x20] sm:$0xff] %v202_v4  ;;  %v224_v15 = vld [vmem:[%s2229_s11 + $0xd8] sm:$0xff]  ;;  %v226_v16 = vld [vmem:[%s2229_s11 + $0x100] sm:$0xff]  ;;  %v228_v17 = vld [vmem:[%s2229_s11 + $0x108] sm:$0xff] }
  0x1c   : > { %205 = vst [vmem:[%s2234_s12 + $0x28] sm:$0xff] %v204_v5  ;;  %v230_v18 = vld [vmem:[%s2229_s11 + $0x110] sm:$0xff]  ;;  %v232_v19 = vld [vmem:[%s2229_s11 + $0x118] sm:$0xff]  ;;  %v234_v20 = vld [vmem:[%s2229_s11 + $0x140] sm:$0xff] }
  0x1d   : > { %207 = vst [vmem:[%s2234_s12 + $0x30] sm:$0xff] %v206_v6  ;;  %v236_v21 = vld [vmem:[%s2229_s11 + $0x148] sm:$0xff]  ;;  %v238_v22 = vld [vmem:[%s2229_s11 + $0x150] sm:$0xff]  ;;  %v240_v23 = vld [vmem:[%s2229_s11 + $0x158] sm:$0xff] }
  0x1e   : > { %209 = vst [vmem:[%s2234_s12 + $0x38] sm:$0xff] %v208_v7  ;;  %v242_v24 = vld [vmem:[%s2229_s11 + $0x180] sm:$0xff]  ;;  %v244_v25 = vld [vmem:[%s2229_s11 + $0x188] sm:$0xff]  ;;  %v246_v26 = vld [vmem:[%s2229_s11 + $0x190] sm:$0xff] }
  0x1f   : > { %211 = vst [vmem:[%s2234_s12 + $0x40] sm:$0xff] %v210_v8  ;;  %v248_v27 = vld [vmem:[%s2229_s11 + $0x198] sm:$0xff]  ;;  %v250_v28 = vld [vmem:[%s2229_s11 + $0x1c0] sm:$0xff]  ;;  %v252_v29 = vld [vmem:[%s2229_s11 + $0x1c8] sm:$0xff] }
  0x20   : > { %213 = vst [vmem:[%s2234_s12 + $0x48] sm:$0xff] %v212_v9  ;;  %v254_v30 = vld [vmem:[%s2229_s11 + $0x1d0] sm:$0xff]  ;;  %v256_v31 = vld [vmem:[%s2229_s11 + $0x1d8] sm:$0xff] }
  0x21   : > { %215 = vst [vmem:[%s2234_s12 + $0x50] sm:$0xff] %v214_v10 }
  0x22   : > { %217 = vst [vmem:[%s2234_s12 + $0x58] sm:$0xff] %v216_v11 }
  0x23   : > { %219 = vst [vmem:[%s2234_s12 + $0x60] sm:$0xff] %v218_v12 }
  0x24   : > { %221 = vst [vmem:[%s2234_s12 + $0x68] sm:$0xff] %v220_v13 }
  0x25   : > { %223 = vst [vmem:[%s2234_s12 + $0x70] sm:$0xff] %v222_v14 }
  0x26   : > { %225 = vst [vmem:[%s2234_s12 + $0x78] sm:$0xff] %v224_v15 }
  0x27   : > { %227 = vst [vmem:[%s2234_s12 + $0x80] sm:$0xff] %v226_v16 }
  0x28   : > { %229 = vst [vmem:[%s2234_s12 + $0x88] sm:$0xff] %v228_v17 }
  0x29   : > { %231 = vst [vmem:[%s2234_s12 + $0x90] sm:$0xff] %v230_v18 }
  0x2a   : > { %233 = vst [vmem:[%s2234_s12 + $0x98] sm:$0xff] %v232_v19 }
  0x2b   : > { %235 = vst [vmem:[%s2234_s12 + $0xa0] sm:$0xff] %v234_v20 }
  0x2c   : > { %237 = vst [vmem:[%s2234_s12 + $0xa8] sm:$0xff] %v236_v21 }
  0x2d   : > { %239 = vst [vmem:[%s2234_s12 + $0xb0] sm:$0xff] %v238_v22 }
  0x2e   : > { %241 = vst [vmem:[%s2234_s12 + $0xb8] sm:$0xff] %v240_v23 }
  0x2f   : > { %243 = vst [vmem:[%s2234_s12 + $0xc0] sm:$0xff] %v242_v24 }
  0x30   : > { %245 = vst [vmem:[%s2234_s12 + $0xc8] sm:$0xff] %v244_v25 }
  0x31   : > { %247 = vst [vmem:[%s2234_s12 + $0xd0] sm:$0xff] %v246_v26 }
  0x32   : > { %249 = vst [vmem:[%s2234_s12 + $0xd8] sm:$0xff] %v248_v27 }
  0x33   : > { %251 = vst [vmem:[%s2234_s12 + $0xe0] sm:$0xff] %v250_v28 }
  0x34   : > { %253 = vst [vmem:[%s2234_s12 + $0xe8] sm:$0xff] %v252_v29 }
  0x35   : > { %255 = vst [vmem:[%s2234_s12 + $0xf0] sm:$0xff] %v254_v30 }
  0x36   : > { %257 = vst [vmem:[%s2234_s12 + $0xf8] sm:$0xff] %v256_v31 }
  0x37 PF: > { %p1851_p7 = scmp.ge.s32.totalorder %s2140_s21, 1  ;;  %p271_p8 = scmp.lt.s32.totalorder %s2140_s21, 9 }
  0x39   : > { %p272_p9 = pnand %p1851_p7, %p271_p8 }
  0x3a   : > { %s278_s13 = sand.u32 (!%p272_p9), 1, %s2116_s15   ;;  %s1853_s14 = sshll.u32 (!%p272_p9), %s2128_s18, 5 }
  0x3b   : > { %275 = sbr.rel (%p272_p9) target bundleno = 731 (0x2db), region = 55  ;;  %s1852_s24 = sshll.u32 (!%p272_p9), %s278_s13, 8 }
  0x3c   : > { %p311_p10 = scmp.lt.s32.totalorder (!%p272_p9), %s1853_s14, 127  ;;  %s2311_s7 = scalar_lea.vmem (!%p272_p9), [#allocation3], %s1852_s24 }
  0x3d   : > { %p1857_p11 = scmp.ne.s32.totalorder (!%p272_p9), %s2124_s17, 0 }
  0x40   : > { %s2615_s14 = smov (!%p311_p10, %s1853_s14), 127  ;;  %325 = sbr.rel (%p1857_p11) target bundleno = 102 (0x66), region = 63 }
  0x41   : > { %s1854_s25 = sshll.u32 %s2615_s14, 3 }
  0x42   : > { %s2304_s29 = scalar_lea.vmem %s2599_s2, %s1854_s25  ;;  %s2309_s6 = scalar_lea.vmem %s2601_s4, %s1854_s25 }
  0x45   : > { %v2142_v32 = vmov 0.0  }
  0x46   : > { %326 = vst [vmem:[#allocation2 + $0xb0] sm:$0xff] %v2142_v32 }
  0x47   : > { %327 = vst [vmem:[#allocation2] sm:$0xff] %v2142_v32 }
  0x48   : > { %328 = vst [vmem:[#allocation2 + $0xd8] sm:$0xff] %v2142_v32 }
  0x49   : > { %329 = vst [vmem:[#allocation2 + $0x18] sm:$0xff] %v2142_v32 }
  0x4a   : > { %330 = vst [vmem:[#allocation2 + $0x50] sm:$0xff] %v2142_v32 }
  0x4b   : > { %331 = vst [vmem:[#allocation2 + $0x68] sm:$0xff] %v2142_v32 }
  0x4c   : > { %332 = vst [vmem:[#allocation2 + $0x30] sm:$0xff] %v2142_v32 }
  0x4d   : > { %333 = vst [vmem:[#allocation2 + $0x48] sm:$0xff] %v2142_v32 }
  0x4e   : > { %334 = vst [vmem:[#allocation2 + $0x80] sm:$0xff] %v2142_v32 }
  0x4f   : > { %335 = vst [vmem:[#allocation2 + $0x88] sm:$0xff] %v2142_v32 }
  0x50   : > { %336 = vst [vmem:[#allocation2 + $0xe8] sm:$0xff] %v2142_v32 }
  0x51   : > { %337 = vst [vmem:[#allocation2 + $0xb8] sm:$0xff] %v2142_v32 }
  0x52   : > { %338 = vst [vmem:[#allocation2 + $0x60] sm:$0xff] %v2142_v32 }
  0x53   : > { %339 = vst [vmem:[#allocation2 + $0xf0] sm:$0xff] %v2142_v32 }
  0x54   : > { %340 = vst [vmem:[#allocation2 + $0x8] sm:$0xff] %v2142_v32 }
  0x55   : > { %341 = vst [vmem:[#allocation2 + $0x78] sm:$0xff] %v2142_v32 }
  0x56   : > { %342 = vst [vmem:[#allocation2 + $0x38] sm:$0xff] %v2142_v32 }
  0x57   : > { %343 = vst [vmem:[#allocation2 + $0x58] sm:$0xff] %v2142_v32 }
  0x58   : > { %344 = vst [vmem:[#allocation2 + $0x40] sm:$0xff] %v2142_v32 }
  0x59   : > { %345 = vst [vmem:[#allocation2 + $0xc8] sm:$0xff] %v2142_v32 }
  0x5a   : > { %346 = vst [vmem:[#allocation2 + $0xe0] sm:$0xff] %v2142_v32 }
  0x5b   : > { %347 = vst [vmem:[#allocation2 + $0x90] sm:$0xff] %v2142_v32 }
  0x5c   : > { %348 = vst [vmem:[#allocation2 + $0x70] sm:$0xff] %v2142_v32 }
  0x5d   : > { %349 = vst [vmem:[#allocation2 + $0xc0] sm:$0xff] %v2142_v32 }
  0x5e   : > { %350 = vst [vmem:[#allocation2 + $0xa8] sm:$0xff] %v2142_v32 }
  0x5f   : > { %351 = vst [vmem:[#allocation2 + $0xd0] sm:$0xff] %v2142_v32 }
  0x60   : > { %352 = vst [vmem:[#allocation2 + $0x10] sm:$0xff] %v2142_v32 }
  0x61   : > { %353 = vst [vmem:[#allocation2 + $0x28] sm:$0xff] %v2142_v32 }
  0x62   : > { %354 = vst [vmem:[#allocation2 + $0xa0] sm:$0xff] %v2142_v32 }
  0x63   : > { %355 = vst [vmem:[#allocation2 + $0xf8] sm:$0xff] %v2142_v32 }
  0x64   : > { %356 = vst [vmem:[#allocation2 + $0x20] sm:$0xff] %v2142_v32 }
  0x65   : > { %357 = vst [vmem:[#allocation2 + $0x98] sm:$0xff] %v2142_v32 }
  0x66 PF: > { %s1858_s15 = sshll.u32 %s2124_s17, 9  ;;  %v2341_v53 = vld [vmem:[%s2311_s7] sm:$0xff]  ;;  %v2344_v54 = vld [vmem:[%s2311_s7 + $0x8] sm:$0xff]  ;;  %v2349_v57 = vld [vmem:[%s2311_s7 + $0x10] sm:$0xff]  ;;  %p1988_p12 = scmp.ne.s32.totalorder %s2124_s17, 1 }
  0x67   : > { %s711_s18 = sshra.s32 %s1858_s15, 3  ;;  %v361_v60 = vld [vmem:[%s2311_s7 + $0x18] sm:$0xff]  ;;  %v390_v61 = vunpack.c.0.s8 %v2341_v53  ;;  %v394_v62 = vunpack.c.1.s8 %v2341_v53  ;;  %v391_v63 = vunpack.c.0.s8 %v2344_v54  ;;  %v395_v0 = vunpack.c.1.s8 %v2344_v54 }
  0x68   : > { %s1859_s8 = sshll.u32 %s711_s18, 2  ;;  %v392_v3 = vunpack.c.0.s8 %v2349_v57  ;;  %v396_v4 = vunpack.c.1.s8 %v2349_v57  ;;  %v393_v5 = vunpack.c.0.s8 %v361_v60  ;;  %v397_v6 = vunpack.c.1.s8 %v361_v60 }
  0x69   : > { %s2318_s11 = scalar_lea.vmem %s2598_s1, %s1859_s8  ;;  %v518_v9 = vcvt.s32.f32 %v390_v61  ;;  %v522_v10 = vcvt.s32.f32 %v394_v62  ;;  %v519_v11 = vcvt.s32.f32 %v391_v63  ;;  %v523_v12 = vcvt.s32.f32 %v395_v0 }
  0x6a   : > { %v1999_v33 = vld [vmem:[%s2318_s11 + $0x38] sm:$0xff]  ;;  %v1998_v37 = vld [vmem:[%s2318_s11 + $0x30] sm:$0xff]  ;;  %v1997_v41 = vld [vmem:[%s2318_s11 + $0x28] sm:$0xff]  ;;  %v520_v15 = vcvt.s32.f32 %v392_v3  ;;  %v524_v16 = vcvt.s32.f32 %v396_v4  ;;  %v521_v17 = vcvt.s32.f32 %v393_v5  ;;  %v525_v18 = vcvt.s32.f32 %v397_v6 }
  0x6b   : > { %v2007_v34 = vld [vmem:[%s2318_s11 + $0x78] sm:$0xff]  ;;  %1003 = vmatpush.bf16.msra.mxu0 %v1999_v33  ;;  %v2006_v38 = vld [vmem:[%s2318_s11 + $0x70] sm:$0xff]  ;;  %v2005_v42 = vld [vmem:[%s2318_s11 + $0x68] sm:$0xff]  ;;  %v646_v21 = vpack.c.bf16 %v522_v10, %v518_v9  ;;  %v647_v22 = vpack.c.bf16 %v523_v12, %v519_v11  ;;  %v398_v25 = vunpack.c.2.s8 %v2341_v53  ;;  %v402_v26 = vunpack.c.3.s8 %v2341_v53 }
  0x6c   : > { %v2015_v35 = vld [vmem:[%s2318_s11 + $0xb8] sm:$0xff]  ;;  %1092 = vmatpush.bf16.msra.mxu1 %v2007_v34  ;;  %v2014_v39 = vld [vmem:[%s2318_s11 + $0xb0] sm:$0xff]  ;;  %v2013_v43 = vld [vmem:[%s2318_s11 + $0xa8] sm:$0xff]  ;;  %v648_v23 = vpack.c.bf16 %v524_v16, %v520_v15  ;;  %v649_v24 = vpack.c.bf16 %v525_v18, %v521_v17  ;;  %v399_v27 = vunpack.c.2.s8 %v2344_v54  ;;  %v403_v28 = vunpack.c.3.s8 %v2344_v54 }
  0x6d   : > { %v2023_v36 = vld [vmem:[%s2318_s11 + $0xf8] sm:$0xff]  ;;  %1181 = vmatpush.bf16.msra.mxu2 %v2015_v35  ;;  %v2022_v40 = vld [vmem:[%s2318_s11 + $0xf0] sm:$0xff]  ;;  %v2021_v44 = vld [vmem:[%s2318_s11 + $0xe8] sm:$0xff]  ;;  %v400_v29 = vunpack.c.2.s8 %v2349_v57  ;;  %v404_v30 = vunpack.c.3.s8 %v2349_v57  ;;  %v401_v31 = vunpack.c.2.s8 %v361_v60  ;;  %v405_v32 = vunpack.c.3.s8 %v361_v60 }
  0x6e   : > { %1270 = vmatpush.bf16.msra.mxu3 %v2023_v36  ;;  %v1996_v45 = vld [vmem:[%s2318_s11 + $0x20] sm:$0xff]  ;;  %v1995_v49 = vld [vmem:[%s2318_s11 + $0x18] sm:$0xff]  ;;  %v1994_v55 = vld [vmem:[%s2318_s11 + $0x10] sm:$0xff]  ;;  %v526_v33 = vcvt.s32.f32 %v398_v25  ;;  %v530_v34 = vcvt.s32.f32 %v402_v26  ;;  %v527_v35 = vcvt.s32.f32 %v399_v27  ;;  %v531_v36 = vcvt.s32.f32 %v403_v28 }
  0x6f   : > { %1004 = vmatpush.bf16.msra.mxu0 %v1998_v37  ;;  %v2004_v46 = vld [vmem:[%s2318_s11 + $0x60] sm:$0xff]  ;;  %v2003_v50 = vld [vmem:[%s2318_s11 + $0x58] sm:$0xff]  ;;  %v2002_v56 = vld [vmem:[%s2318_s11 + $0x50] sm:$0xff]  ;;  %v528_v37 = vcvt.s32.f32 %v400_v29 }
  0x70   : > { %1093 = vmatpush.bf16.msra.mxu1 %v2006_v38  ;;  %v2012_v47 = vld [vmem:[%s2318_s11 + $0xa0] sm:$0xff]  ;;  %v2011_v51 = vld [vmem:[%s2318_s11 + $0x98] sm:$0xff]  ;;  %v2010_v58 = vld [vmem:[%s2318_s11 + $0x90] sm:$0xff]  ;;  %v532_v38 = vcvt.s32.f32 %v404_v30 }
  0x71   : > { %1182 = vmatpush.bf16.msra.mxu2 %v2014_v39  ;;  %v2020_v48 = vld [vmem:[%s2318_s11 + $0xe0] sm:$0xff]  ;;  %v2019_v52 = vld [vmem:[%s2318_s11 + $0xd8] sm:$0xff]  ;;  %v2018_v59 = vld [vmem:[%s2318_s11 + $0xd0] sm:$0xff]  ;;  %v529_v39 = vcvt.s32.f32 %v401_v31 }
  0x72   : > { %1271 = vmatpush.bf16.msra.mxu3 %v2022_v40  ;;  %v1993_v1 = vld [vmem:[%s2318_s11 + $0x8] sm:$0xff]  ;;  %v1992_v13 = vld [vmem:[%s2318_s11] sm:$0xff]  ;;  %v533_v40 = vcvt.s32.f32 %v405_v32  ;;  %v368_v27 = vld [vmem:[%s2311_s7 + $0x50] sm:$0xff] }
  0x73   : > { %1005 = vmatpush.bf16.msra.mxu0 %v1997_v41  ;;  %v2001_v2 = vld [vmem:[%s2318_s11 + $0x48] sm:$0xff]  ;;  %v2000_v14 = vld [vmem:[%s2318_s11 + $0x40] sm:$0xff]  ;;  %v650_v41 = vpack.c.bf16 %v530_v34, %v526_v33  ;;  %v369_v28 = vld [vmem:[%s2311_s7 + $0x58] sm:$0xff]  ;;  %v424_v33 = vunpack.c.0.s8 %v368_v27  ;;  %v428_v34 = vunpack.c.1.s8 %v368_v27 }
  0x74   : > { %1094 = vmatpush.bf16.msra.mxu1 %v2005_v42  ;;  %v2009_v7 = vld [vmem:[%s2318_s11 + $0x88] sm:$0xff]  ;;  %v2008_v19 = vld [vmem:[%s2318_s11 + $0x80] sm:$0xff]  ;;  %v651_v42 = vpack.c.bf16 %v531_v36, %v527_v35  ;;  %v425_v35 = vunpack.c.0.s8 %v369_v28  ;;  %v429_v36 = vunpack.c.1.s8 %v369_v28 }
  0x75   : > { %1183 = vmatpush.bf16.msra.mxu2 %v2013_v43  ;;  %v2017_v8 = vld [vmem:[%s2318_s11 + $0xc8] sm:$0xff]  ;;  %v2016_v20 = vld [vmem:[%s2318_s11 + $0xc0] sm:$0xff]  ;;  %v652_v43 = vpack.c.bf16 %v532_v38, %v528_v37 }
  0x76   : > { %1272 = vmatpush.bf16.msra.mxu3 %v2021_v44  ;;  %v653_v44 = vpack.c.bf16 %v533_v40, %v529_v39  ;;  %v366_v25 = vld [vmem:[%s2311_s7 + $0x40] sm:$0xff]  ;;  %v367_v26 = vld [vmem:[%s2311_s7 + $0x48] sm:$0xff] }
  0x77   : > { %1006 = vmatpush.bf16.msra.mxu0 %v1996_v45  ;;  %v362_v45 = vld [vmem:[%s2311_s7 + $0x20] sm:$0xff]  ;;  %v422_v29 = vunpack.c.0.s8 %v366_v25  ;;  %v426_v30 = vunpack.c.1.s8 %v366_v25  ;;  %v423_v31 = vunpack.c.0.s8 %v367_v26  ;;  %v427_v32 = vunpack.c.1.s8 %v367_v26 }
  0x78   : > { %1095 = vmatpush.bf16.msra.mxu1 %v2004_v46  ;;  %v363_v46 = vld [vmem:[%s2311_s7 + $0x28] sm:$0xff]  ;;  %v414_v5 = vunpack.c.2.s8 %v362_v45  ;;  %v418_v6 = vunpack.c.3.s8 %v362_v45 }
  0x79   : > { %1184 = vmatpush.bf16.msra.mxu2 %v2012_v47  ;;  %v364_v47 = vld [vmem:[%s2311_s7 + $0x30] sm:$0xff]  ;;  %v550_v37 = vcvt.s32.f32 %v422_v29  ;;  %v554_v38 = vcvt.s32.f32 %v426_v30  ;;  %v551_v39 = vcvt.s32.f32 %v423_v31  ;;  %v555_v40 = vcvt.s32.f32 %v427_v32 }
  0x7a   : > { %1273 = vmatpush.bf16.msra.mxu3 %v2020_v48  ;;  %v365_v48 = vld [vmem:[%s2311_s7 + $0x38] sm:$0xff]  ;;  %v408_v53 = vunpack.c.0.s8 %v364_v47  ;;  %v412_v54 = vunpack.c.1.s8 %v364_v47  ;;  %v416_v9 = vunpack.c.2.s8 %v364_v47  ;;  %v420_v10 = vunpack.c.3.s8 %v364_v47 }
  0x7b   : > { %1007 = vmatpush.bf16.msra.mxu0 %v1995_v49  ;;  %v406_v49 = vunpack.c.0.s8 %v362_v45  ;;  %v417_v11 = vunpack.c.2.s8 %v365_v48  ;;  %v421_v12 = vunpack.c.3.s8 %v365_v48 }
  0x7c   : > { %1096 = vmatpush.bf16.msra.mxu1 %v2003_v50  ;;  %v410_v50 = vunpack.c.1.s8 %v362_v45  ;;  %v536_v61 = vcvt.s32.f32 %v408_v53  ;;  %v540_v62 = vcvt.s32.f32 %v412_v54  ;;  %v544_v17 = vcvt.s32.f32 %v416_v9 }
  0x7d   : > { %1185 = vmatpush.bf16.msra.mxu2 %v2011_v51  ;;  %v407_v51 = vunpack.c.0.s8 %v363_v46  ;;  %v534_v57 = vcvt.s32.f32 %v406_v49  ;;  %v548_v18 = vcvt.s32.f32 %v420_v10  ;;  %v662_v45 = vpack.c.bf16 %v554_v38, %v550_v37 }
  0x7e   : > { %1274 = vmatpush.bf16.msra.mxu3 %v2019_v52  ;;  %v411_v52 = vunpack.c.1.s8 %v363_v46  ;;  %v656_v3 = vpack.c.bf16 %v540_v62, %v536_v61  ;;  %v430_v49 = vunpack.c.2.s8 %v366_v25  ;;  %v432_v53 = vunpack.c.2.s8 %v368_v27 }
  0x7f   : > { %1008 = vmatpush.bf16.msra.mxu0 %v1994_v55  ;;  %v409_v55 = vunpack.c.0.s8 %v365_v48  ;;  %v436_v54 = vunpack.c.3.s8 %v368_v27 }
  0x80   : > { %1097 = vmatpush.bf16.msra.mxu1 %v2002_v56  ;;  %v413_v56 = vunpack.c.1.s8 %v365_v48  ;;  %v539_v60 = vcvt.s32.f32 %v411_v52  ;;  %v435_v52 = vunpack.c.3.s8 %v367_v26  ;;  %v560_v61 = vcvt.s32.f32 %v432_v53 }
  0x81   : > { %1186 = vmatpush.bf16.msra.mxu2 %v2010_v58  ;;  %v538_v58 = vcvt.s32.f32 %v410_v50  ;;  %v537_v63 = vcvt.s32.f32 %v409_v55  ;;  %v434_v50 = vunpack.c.3.s8 %v366_v25  ;;  %v433_v55 = vunpack.c.2.s8 %v369_v28 }
  0x82   : > { %1275 = vmatpush.bf16.msra.mxu3 %v2018_v59  ;;  %v535_v59 = vcvt.s32.f32 %v407_v51  ;;  %v541_v0 = vcvt.s32.f32 %v413_v56  ;;  %v431_v51 = vunpack.c.2.s8 %v367_v26  ;;  %v437_v56 = vunpack.c.3.s8 %v369_v28 }
  0x83   : > { %1009 = vmatpush.bf16.msra.mxu0 %v1993_v1  ;;  %v654_v1 = vpack.c.bf16 %v538_v58, %v534_v57  ;;  %v558_v57 = vcvt.s32.f32 %v430_v49  ;;  %v562_v58 = vcvt.s32.f32 %v434_v50  ;;  %v564_v62 = vcvt.s32.f32 %v436_v54  ;;  %v374_v49 = vld [vmem:[%s2311_s7 + $0x80] sm:$0xff]  ;;  %v375_v50 = vld [vmem:[%s2311_s7 + $0x88] sm:$0xff] }
  0x84   : > { %1098 = vmatpush.bf16.msra.mxu1 %v2001_v2  ;;  %v655_v2 = vpack.c.bf16 %v539_v60, %v535_v59  ;;  %v657_v4 = vpack.c.bf16 %v541_v0, %v537_v63  ;;  %v559_v59 = vcvt.s32.f32 %v431_v51  ;;  %v563_v60 = vcvt.s32.f32 %v435_v52  ;;  %v376_v51 = vld [vmem:[%s2311_s7 + $0x90] sm:$0xff]  ;;  %v377_v52 = vld [vmem:[%s2311_s7 + $0x98] sm:$0xff] }
  0x85   : > { %1187 = vmatpush.bf16.msra.mxu2 %v2009_v7  ;;  %v415_v7 = vunpack.c.2.s8 %v363_v46  ;;  %v561_v63 = vcvt.s32.f32 %v433_v55  ;;  %v565_v0 = vcvt.s32.f32 %v437_v56  ;;  %v454_v53 = vunpack.c.0.s8 %v374_v49 }
  0x86   : > { %1276 = vmatpush.bf16.msra.mxu3 %v2017_v8  ;;  %v419_v8 = vunpack.c.3.s8 %v363_v46  ;;  %v663_v46 = vpack.c.bf16 %v555_v40, %v551_v39  ;;  %v458_v54 = vunpack.c.1.s8 %v374_v49  ;;  %v455_v55 = vunpack.c.0.s8 %v375_v50 }
  0x87   : > { %1010 = vmatpush.bf16.msra.mxu0 %v1992_v13  ;;  %v542_v13 = vcvt.s32.f32 %v414_v5  ;;  %v543_v15 = vcvt.s32.f32 %v415_v7  ;;  %v370_v5 = vld [vmem:[%s2311_s7 + $0x60] sm:$0xff]  ;;  %v372_v7 = vld [vmem:[%s2311_s7 + $0x70] sm:$0xff]  ;;  %v459_v56 = vunpack.c.1.s8 %v375_v50 }
  0x88   : > { %1099 = vmatpush.bf16.msra.mxu1 %v2000_v14  ;;  %v546_v14 = vcvt.s32.f32 %v418_v6  ;;  %v547_v16 = vcvt.s32.f32 %v419_v8  ;;  %v371_v6 = vld [vmem:[%s2311_s7 + $0x68] sm:$0xff]  ;;  %v373_v8 = vld [vmem:[%s2311_s7 + $0x78] sm:$0xff]  ;;  %v438_v9 = vunpack.c.0.s8 %v370_v5  ;;  %v442_v10 = vunpack.c.1.s8 %v370_v5 }
  0x89   : > { %1188 = vmatpush.bf16.msra.mxu2 %v2008_v19  ;;  %v545_v19 = vcvt.s32.f32 %v417_v11  ;;  %v439_v11 = vunpack.c.0.s8 %v371_v6  ;;  %v446_v29 = vunpack.c.2.s8 %v370_v5  ;;  %v450_v30 = vunpack.c.3.s8 %v370_v5 }
  0x8a   : > { %1277 = vmatpush.bf16.msra.mxu3 %v2016_v20  ;;  %1011 = vmatmul.bf16.vlgmr.msra.gmra.mxu0 %v646_v21  ;;  %v549_v20 = vcvt.s32.f32 %v421_v12  ;;  %v658_v21 = vpack.c.bf16 %v546_v14, %v542_v13  ;;  %v443_v12 = vunpack.c.1.s8 %v371_v6  ;;  %v440_v13 = vunpack.c.0.s8 %v372_v7 }
  0x8b   : > { %1100 = vmatmul.bf16.vlgmr.msra.gmra.mxu1 %v647_v22  ;;  %v659_v22 = vpack.c.bf16 %v547_v16, %v543_v15  ;;  %v444_v14 = vunpack.c.1.s8 %v372_v7  ;;  %v441_v15 = vunpack.c.0.s8 %v373_v8  ;;  %v445_v16 = vunpack.c.1.s8 %v373_v8 }
  0x8c   : > { %1189 = vmatmul.bf16.vlgmr.msra.gmra.mxu2 %v648_v23  ;;  %v660_v23 = vpack.c.bf16 %v548_v18, %v544_v17  ;;  %v566_v17 = vcvt.s32.f32 %v438_v9  ;;  %v570_v18 = vcvt.s32.f32 %v442_v10  ;;  %v447_v31 = vunpack.c.2.s8 %v371_v6 }
  0x8d   : > { %1278 = vmatmul.bf16.vlgmr.msra.gmra.mxu3 %v649_v24  ;;  %v661_v24 = vpack.c.bf16 %v549_v20, %v545_v19  ;;  %v567_v19 = vcvt.s32.f32 %v439_v11  ;;  %v571_v20 = vcvt.s32.f32 %v443_v12  ;;  %v451_v32 = vunpack.c.3.s8 %v371_v6 }
  0x8e   : > { %v670_v25 = vpack.c.bf16 %v570_v18, %v566_v17  ;;  %v574_v37 = vcvt.s32.f32 %v446_v29  ;;  %v578_v38 = vcvt.s32.f32 %v450_v30  ;;  %v575_v39 = vcvt.s32.f32 %v447_v31 }
  0x8f   : > { %v671_v26 = vpack.c.bf16 %v571_v20, %v567_v19  ;;  %v579_v40 = vcvt.s32.f32 %v451_v32  ;;  %v462_v12 = vunpack.c.2.s8 %v374_v49  ;;  %v467_v17 = vunpack.c.3.s8 %v375_v50 }
  0x90   : > { %v464_v18 = vunpack.c.2.s8 %v376_v51 }
  0x91   : > { %v595_v30 = vcvt.s32.f32 %v467_v17 }
  0x92   : > { %v592_v31 = vcvt.s32.f32 %v464_v18 }
  0x9a   : > { %1016 = vmatmul.bf16.gmra.mxu0 %v650_v41  ;;  %v552_v41 = vcvt.s32.f32 %v424_v33  ;;  %v448_v33 = vunpack.c.2.s8 %v372_v7 }
  0x9b   : > { %1105 = vmatmul.bf16.gmra.mxu1 %v651_v42  ;;  %v556_v42 = vcvt.s32.f32 %v428_v34  ;;  %v452_v34 = vunpack.c.3.s8 %v372_v7 }
  0x9c   : > { %1194 = vmatmul.bf16.gmra.mxu2 %v652_v43  ;;  %v553_v43 = vcvt.s32.f32 %v425_v35  ;;  %v449_v35 = vunpack.c.2.s8 %v373_v8 }
  0x9d   : > { %1283 = vmatmul.bf16.gmra.mxu3 %v653_v44  ;;  %v557_v44 = vcvt.s32.f32 %v429_v36  ;;  %v664_v47 = vpack.c.bf16 %v556_v42, %v552_v41  ;;  %v453_v36 = vunpack.c.3.s8 %v373_v8  ;;  %v576_v41 = vcvt.s32.f32 %v448_v33 }
  0x9e   : > { %v580_v42 = vcvt.s32.f32 %v452_v34 }
  0x9f   : > { %v665_v48 = vpack.c.bf16 %v557_v44, %v553_v43  ;;  %v577_v43 = vcvt.s32.f32 %v449_v35  ;;  %v581_v44 = vcvt.s32.f32 %v453_v36 }
  0xaa   : > { %1021 = vmatmul.bf16.gmra.mxu0 %v654_v1  ;;  %v666_v1 = vpack.c.bf16 %v562_v58, %v558_v57  ;;  %v456_v57 = vunpack.c.0.s8 %v376_v51  ;;  %v460_v58 = vunpack.c.1.s8 %v376_v51 }
  0xab   : > { %1110 = vmatmul.bf16.gmra.mxu1 %v655_v2  ;;  %v667_v2 = vpack.c.bf16 %v563_v60, %v559_v59  ;;  %v457_v59 = vunpack.c.0.s8 %v377_v52  ;;  %v461_v60 = vunpack.c.1.s8 %v377_v52 }
  0xac   : > { %1199 = vmatmul.bf16.gmra.mxu2 %v656_v3  ;;  %v668_v3 = vpack.c.bf16 %v564_v62, %v560_v61  ;;  %v582_v61 = vcvt.s32.f32 %v454_v53  ;;  %v586_v62 = vcvt.s32.f32 %v458_v54  ;;  %v2400_v53 = vld [vmem:[%s2311_s7 + $0xb8] sm:$0xff] }
  0xad   : > { %1288 = vmatmul.bf16.gmra.mxu3 %v657_v4  ;;  %v669_v4 = vpack.c.bf16 %v565_v0, %v561_v63  ;;  %v583_v63 = vcvt.s32.f32 %v455_v55  ;;  %v587_v0 = vcvt.s32.f32 %v459_v56 }
  0xae   : > { %v678_v5 = vpack.c.bf16 %v586_v62, %v582_v61 }
  0xaf   : > { %v679_v6 = vpack.c.bf16 %v587_v0, %v583_v63 }
  0xba   : > { %1026 = vmatmul.bf16.gmra.mxu0 %v658_v21  ;;  %v568_v21 = vcvt.s32.f32 %v440_v13 }
  0xbb   : > { %1115 = vmatmul.bf16.gmra.mxu1 %v659_v22  ;;  %v572_v22 = vcvt.s32.f32 %v444_v14 }
  0xbc   : > { %1204 = vmatmul.bf16.gmra.mxu2 %v660_v23  ;;  %v569_v23 = vcvt.s32.f32 %v441_v15  ;;  %v466_v15 = vunpack.c.3.s8 %v374_v49 }
  0xbd   : > { %1293 = vmatmul.bf16.gmra.mxu3 %v661_v24  ;;  %v573_v24 = vcvt.s32.f32 %v445_v16  ;;  %v672_v27 = vpack.c.bf16 %v572_v22, %v568_v21  ;;  %v463_v16 = vunpack.c.2.s8 %v375_v50  ;;  %v468_v22 = vunpack.c.3.s8 %v376_v51  ;;  %v2394_v51 = vld [vmem:[%s2311_s7 + $0xa8] sm:$0xff] }
  0xbf   : > { %v673_v28 = vpack.c.bf16 %v573_v24, %v569_v23  ;;  %v465_v23 = vunpack.c.2.s8 %v377_v52  ;;  %v469_v24 = vunpack.c.3.s8 %v377_v52  ;;  %v591_v29 = vcvt.s32.f32 %v463_v16  ;;  %v2397_v52 = vld [vmem:[%s2311_s7 + $0xb0] sm:$0xff] }
  0xc0   : > { %v596_v33 = vcvt.s32.f32 %v468_v22  ;;  %v476_v0 = vunpack.c.1.s8 %v2397_v52 }
  0xc1   : > { %v593_v34 = vcvt.s32.f32 %v465_v23  ;;  %v597_v35 = vcvt.s32.f32 %v469_v24  ;;  %v782_v24 = vld [vmem:[#allocation2 + $0x18] sm:$0xff] }
  0xca   : > { %1031 = vmatmul.bf16.gmra.mxu0 %v662_v45  ;;  %v674_v45 = vpack.c.bf16 %v578_v38, %v574_v37 }
  0xcb   : > { %1120 = vmatmul.bf16.gmra.mxu1 %v663_v46  ;;  %v675_v46 = vpack.c.bf16 %v579_v40, %v575_v39  ;;  %v683_v40 = vpack.c.bf16 %v595_v30, %v591_v29 }
  0xcc   : > { %1209 = vmatmul.bf16.gmra.mxu2 %v664_v47  ;;  %v676_v47 = vpack.c.bf16 %v580_v42, %v576_v41 }
  0xcd   : > { %1298 = vmatmul.bf16.gmra.mxu3 %v665_v48  ;;  %v677_v48 = vpack.c.bf16 %v581_v44, %v577_v43  ;;  %v684_v44 = vpack.c.bf16 %v596_v33, %v592_v31  ;;  %v483_v33 = vunpack.c.3.s8 %v2394_v51 }
  0xda   : > { %1036 = vmatmul.bf16.gmra.mxu0 %v666_v1  ;;  %v584_v1 = vcvt.s32.f32 %v456_v57 }
  0xdb   : > { %1125 = vmatmul.bf16.gmra.mxu1 %v667_v2  ;;  %v588_v2 = vcvt.s32.f32 %v460_v58  ;;  %v471_v58 = vunpack.c.0.s8 %v2394_v51 }
  0xdc   : > { %1214 = vmatmul.bf16.gmra.mxu2 %v668_v3  ;;  %v585_v3 = vcvt.s32.f32 %v457_v59  ;;  %v475_v59 = vunpack.c.1.s8 %v2394_v51 }
  0xdd   : > { %1303 = vmatmul.bf16.gmra.mxu3 %v669_v4  ;;  %v589_v4 = vcvt.s32.f32 %v461_v60  ;;  %v680_v9 = vpack.c.bf16 %v588_v2, %v584_v1  ;;  %v472_v60 = vunpack.c.0.s8 %v2397_v52  ;;  %v473_v1 = vunpack.c.0.s8 %v2400_v53 }
  0xde   : > { %v477_v2 = vunpack.c.1.s8 %v2400_v53 }
  0xdf   : > { %v681_v10 = vpack.c.bf16 %v589_v4, %v585_v3  ;;  %v781_v3 = vld [vmem:[#allocation2 + $0xd8] sm:$0xff] }
  0xea   : > { %1041 = vmatmul.bf16.gmra.mxu0 %v670_v25  ;;  %v779_v25 = vld [vmem:[#allocation2 + $0xb0] sm:$0xff] }
  0xeb   : > { %1130 = vmatmul.bf16.gmra.mxu1 %v671_v26 }
  0xec   : > { %1219 = vmatmul.bf16.gmra.mxu2 %v672_v27  ;;  %v590_v27 = vcvt.s32.f32 %v462_v12  ;;  %v601_v12 = vcvt.s32.f32 %v473_v1 }
  0xed   : > { %1308 = vmatmul.bf16.gmra.mxu3 %v673_v28  ;;  %v594_v28 = vcvt.s32.f32 %v466_v15 }
  0xef   : > { %v682_v39 = vpack.c.bf16 %v594_v28, %v590_v27 }
  0xfa   : > { %1046 = vmatmul.bf16.gmra.mxu0 %v674_v45  ;;  %v685_v45 = vpack.c.bf16 %v597_v35, %v593_v34  ;;  %v480_v34 = vunpack.c.2.s8 %v2397_v52 }
  0xfb   : > { %1135 = vmatmul.bf16.gmra.mxu1 %v675_v46  ;;  %v780_v46 = vld [vmem:[#allocation2] sm:$0xff] }
  0xfc   : > { %1224 = vmatmul.bf16.gmra.mxu2 %v676_v47 }
  0xfd   : > { %1313 = vmatmul.bf16.gmra.mxu3 %v677_v48  ;;  %v2391_v48 = vld [vmem:[%s2311_s7 + $0xa0] sm:$0xff] }
  0xfe   : > { %v470_v54 = vunpack.c.0.s8 %v2391_v48  ;;  %v474_v57 = vunpack.c.1.s8 %v2391_v48  ;;  %v478_v28 = vunpack.c.2.s8 %v2391_v48  ;;  %v482_v31 = vunpack.c.3.s8 %v2391_v48 }
 0x107   : > { %v1012_v7 = vpop.f32.mrf.mxu0 }
 0x108   : > { %v1101_v8 = vpop.f32.mrf.mxu1 }
 0x109   : > { %v1102_v11 = vadd.f32 %v1101_v8, %v1012_v7  ;;  %v599_v7 = vcvt.s32.f32 %v471_v58  ;;  %v603_v8 = vcvt.s32.f32 %v475_v59 }
 0x10a   : > { %1051 = vmatmul.bf16.gmra.mxu0 %v678_v5  ;;  %v598_v5 = vcvt.s32.f32 %v470_v54 }
 0x10b   : > { %1140 = vmatmul.bf16.gmra.mxu1 %v679_v6  ;;  %v602_v6 = vcvt.s32.f32 %v474_v57  ;;  %v687_v18 = vpack.c.bf16 %v603_v8, %v599_v7 }
 0x10c   : > { %1229 = vmatmul.bf16.gmra.mxu2 %v680_v9  ;;  %v600_v9 = vcvt.s32.f32 %v472_v60 }
 0x10d   : > { %1318 = vmatmul.bf16.gmra.mxu3 %v681_v10  ;;  %v686_v17 = vpack.c.bf16 %v602_v6, %v598_v5  ;;  %v2428_v5 = vld [vmem:[%s2311_s7 + $0xd8] sm:$0xff] }
 0x10f   : > { %v1190_v13 = vpop.f32.mrf.mxu2  ;;  %v1014_v20 = vpop.f32.mrf.mxu0 }
 0x110   : > { %v1279_v14 = vpop.f32.mrf.mxu3  ;;  %v1191_v19 = vadd.f32 %v1190_v13, %v1102_v11  ;;  %v1103_v21 = vpop.f32.mrf.mxu1  ;;  %v604_v11 = vcvt.s32.f32 %v476_v0  ;;  %v605_v13 = vcvt.s32.f32 %v477_v2  ;;  %v2419_v0 = vld [vmem:[%s2311_s7 + $0xc0] sm:$0xff] }
 0x111   : > { %v1104_v36 = vadd.f32 %v1103_v21, %v1014_v20  ;;  %v486_v6 = vunpack.c.0.s8 %v2419_v0 }
 0x112   : > { %v1280_v26 = vadd.f32 %v1279_v14, %v1191_v19  ;;  %v688_v22 = vpack.c.bf16 %v604_v11, %v600_v9  ;;  %v689_v23 = vpack.c.bf16 %v605_v13, %v601_v12  ;;  %v490_v9 = vunpack.c.1.s8 %v2419_v0 }
 0x114   : > { %v1359_v32 = vadd.f32 %v1280_v26, %v779_v25 }
 0x116   : > { %1391 = vst [vmem:[#allocation2 + $0xb0] sm:$0xff] %v1359_v32  ;;  %v479_v32 = vunpack.c.2.s8 %v2394_v51 }
 0x117   : > { %v1192_v37 = vpop.f32.mrf.mxu2  ;;  %v1017_v42 = vpop.f32.mrf.mxu0 }
 0x118   : > { %v1281_v38 = vpop.f32.mrf.mxu3  ;;  %v1193_v41 = vadd.f32 %v1192_v37, %v1104_v36  ;;  %v1106_v43 = vpop.f32.mrf.mxu1 }
 0x119   : > { %v1107_v50 = vadd.f32 %v1106_v43, %v1017_v42  ;;  %v606_v43 = vcvt.s32.f32 %v478_v28 }
 0x11a   : > { %v1282_v47 = vadd.f32 %v1281_v38, %v1193_v41  ;;  %1056 = vmatmul.bf16.gmra.mxu0 %v682_v39  ;;  %v484_v38 = vunpack.c.3.s8 %v2397_v52  ;;  %v481_v39 = vunpack.c.2.s8 %v2400_v53  ;;  %v783_v41 = vld [vmem:[#allocation2 + $0x50] sm:$0xff] }
 0x11b   : > { %1145 = vmatmul.bf16.gmra.mxu1 %v683_v40  ;;  %v485_v40 = vunpack.c.3.s8 %v2400_v53 }
 0x11c   : > { %v1360_v49 = vadd.f32 %v1282_v47, %v780_v46  ;;  %1234 = vmatmul.bf16.gmra.mxu2 %v684_v44  ;;  %v610_v44 = vcvt.s32.f32 %v482_v31  ;;  %v611_v46 = vcvt.s32.f32 %v483_v33  ;;  %v608_v47 = vcvt.s32.f32 %v480_v34 }
 0x11d   : > { %1323 = vmatmul.bf16.gmra.mxu3 %v685_v45  ;;  %v607_v45 = vcvt.s32.f32 %v479_v32  ;;  %v613_v51 = vcvt.s32.f32 %v485_v40  ;;  %v786_v40 = vld [vmem:[#allocation2 + $0x48] sm:$0xff] }
 0x11e   : > { %1392 = vst [vmem:[#allocation2] sm:$0xff] %v1360_v49  ;;  %v612_v49 = vcvt.s32.f32 %v484_v38 }
 0x11f   : > { %v1195_v55 = vpop.f32.mrf.mxu2  ;;  %v1019_v62 = vpop.f32.mrf.mxu0  ;;  %v691_v57 = vpack.c.bf16 %v611_v46, %v607_v45 }
 0x120   : > { %v1284_v56 = vpop.f32.mrf.mxu3  ;;  %v1196_v61 = vadd.f32 %v1195_v55, %v1107_v50  ;;  %v1108_v63 = vpop.f32.mrf.mxu1  ;;  %v609_v50 = vcvt.s32.f32 %v481_v39  ;;  %v692_v60 = vpack.c.bf16 %v612_v49, %v608_v47  ;;  %v498_v47 = vunpack.c.3.s8 %v2419_v0 }
 0x121   : > { %v1109_v14 = vadd.f32 %v1108_v63, %v1019_v62  ;;  %v784_v62 = vld [vmem:[#allocation2 + $0x68] sm:$0xff] }
 0x122   : > { %v1285_v4 = vadd.f32 %v1284_v56, %v1196_v61  ;;  %v690_v56 = vpack.c.bf16 %v610_v44, %v606_v43  ;;  %v693_v61 = vpack.c.bf16 %v613_v51, %v609_v50  ;;  %v494_v44 = vunpack.c.2.s8 %v2419_v0 }
 0x124   : > { %v1361_v10 = vadd.f32 %v1285_v4, %v781_v3  ;;  %v2422_v3 = vld [vmem:[%s2311_s7 + $0xc8] sm:$0xff]  ;;  %v2425_v4 = vld [vmem:[%s2311_s7 + $0xd0] sm:$0xff] }
 0x125   : > { %v491_v11 = vunpack.c.1.s8 %v2422_v3  ;;  %v488_v12 = vunpack.c.0.s8 %v2425_v4  ;;  %v499_v49 = vunpack.c.3.s8 %v2422_v3  ;;  %v496_v50 = vunpack.c.2.s8 %v2425_v4 }
 0x126   : > { %1393 = vst [vmem:[#allocation2 + $0xd8] sm:$0xff] %v1361_v10  ;;  %v487_v10 = vunpack.c.0.s8 %v2422_v3 }
 0x127   : > { %v1197_v15 = vpop.f32.mrf.mxu2  ;;  %v1022_v20 = vpop.f32.mrf.mxu0 }
 0x128   : > { %v1286_v16 = vpop.f32.mrf.mxu3  ;;  %v1198_v19 = vadd.f32 %v1197_v15, %v1109_v14  ;;  %v1111_v21 = vpop.f32.mrf.mxu1 }
 0x129   : > { %v1112_v27 = vadd.f32 %v1111_v21, %v1022_v20  ;;  %v614_v21 = vcvt.s32.f32 %v486_v6 }
 0x12a   : > { %v1287_v25 = vadd.f32 %v1286_v16, %v1198_v19  ;;  %1061 = vmatmul.bf16.gmra.mxu0 %v686_v17  ;;  %v492_v16 = vunpack.c.1.s8 %v2425_v4  ;;  %v489_v17 = vunpack.c.0.s8 %v2428_v5  ;;  %v785_v19 = vld [vmem:[#allocation2 + $0x30] sm:$0xff] }
 0x12b   : > { %1150 = vmatmul.bf16.gmra.mxu1 %v687_v18  ;;  %v493_v18 = vunpack.c.1.s8 %v2428_v5 }
 0x12c   : > { %v1362_v26 = vadd.f32 %v1287_v25, %v782_v24  ;;  %1239 = vmatmul.bf16.gmra.mxu2 %v688_v22  ;;  %v618_v22 = vcvt.s32.f32 %v490_v9  ;;  %v619_v24 = vcvt.s32.f32 %v491_v11  ;;  %v616_v25 = vcvt.s32.f32 %v488_v12 }
 0x12d   : > { %1328 = vmatmul.bf16.gmra.mxu3 %v689_v23  ;;  %v615_v23 = vcvt.s32.f32 %v487_v10  ;;  %v617_v28 = vcvt.s32.f32 %v489_v17 }
 0x12e   : > { %1394 = vst [vmem:[#allocation2 + $0x18] sm:$0xff] %v1362_v26  ;;  %v694_v33 = vpack.c.bf16 %v618_v22, %v614_v21  ;;  %v2456_v21 = vld [vmem:[%s2311_s7 + $0xf8] sm:$0xff] }
 0x12f   : > { %v1200_v29 = vpop.f32.mrf.mxu2  ;;  %v1024_v36 = vpop.f32.mrf.mxu0  ;;  %v695_v34 = vpack.c.bf16 %v619_v24, %v615_v23 }
 0x130   : > { %v1289_v30 = vpop.f32.mrf.mxu3  ;;  %v1201_v35 = vadd.f32 %v1200_v29, %v1112_v27  ;;  %v1113_v37 = vpop.f32.mrf.mxu1  ;;  %v620_v27 = vcvt.s32.f32 %v492_v16  ;;  %v621_v29 = vcvt.s32.f32 %v493_v18  ;;  %v2447_v16 = vld [vmem:[%s2311_s7 + $0xe0] sm:$0xff] }
 0x131   : > { %v1114_v54 = vadd.f32 %v1113_v37, %v1024_v36  ;;  %v502_v22 = vunpack.c.0.s8 %v2447_v16 }
 0x132   : > { %v1290_v42 = vadd.f32 %v1289_v30, %v1201_v35  ;;  %v696_v38 = vpack.c.bf16 %v620_v27, %v616_v25  ;;  %v697_v39 = vpack.c.bf16 %v621_v29, %v617_v28  ;;  %v506_v25 = vunpack.c.1.s8 %v2447_v16 }
 0x134   : > { %v1363_v48 = vadd.f32 %v1290_v42, %v783_v41 }
 0x136   : > { %1395 = vst [vmem:[#allocation2 + $0x50] sm:$0xff] %v1363_v48  ;;  %v495_v48 = vunpack.c.2.s8 %v2422_v3 }
 0x137   : > { %v1202_v55 = vpop.f32.mrf.mxu2  ;;  %v1027_v58 = vpop.f32.mrf.mxu0 }
 0x138   : > { %v1291_v52 = vpop.f32.mrf.mxu3  ;;  %v1203_v53 = vadd.f32 %v1202_v55, %v1114_v54  ;;  %v1116_v59 = vpop.f32.mrf.mxu1 }
 0x139   : > { %v1117_v2 = vadd.f32 %v1116_v59, %v1027_v58  ;;  %v622_v59 = vcvt.s32.f32 %v494_v44 }
 0x13a   : > { %v1292_v63 = vadd.f32 %v1291_v52, %v1203_v53  ;;  %1066 = vmatmul.bf16.gmra.mxu0 %v690_v56  ;;  %v500_v52 = vunpack.c.3.s8 %v2425_v4  ;;  %v497_v56 = vunpack.c.2.s8 %v2428_v5  ;;  %v787_v53 = vld [vmem:[#allocation2 + $0x80] sm:$0xff] }
 0x13b   : > { %1155 = vmatmul.bf16.gmra.mxu1 %v691_v57  ;;  %v501_v57 = vunpack.c.3.s8 %v2428_v5 }
 0x13c   : > { %v1364_v1 = vadd.f32 %v1292_v63, %v784_v62  ;;  %1244 = vmatmul.bf16.gmra.mxu2 %v692_v60  ;;  %v626_v60 = vcvt.s32.f32 %v498_v47  ;;  %v627_v62 = vcvt.s32.f32 %v499_v49  ;;  %v624_v63 = vcvt.s32.f32 %v496_v50 }
 0x13d   : > { %1333 = vmatmul.bf16.gmra.mxu3 %v693_v61  ;;  %v623_v61 = vcvt.s32.f32 %v495_v48  ;;  %v629_v3 = vcvt.s32.f32 %v501_v57  ;;  %v790_v57 = vld [vmem:[#allocation2 + $0xb8] sm:$0xff] }
 0x13e   : > { %1396 = vst [vmem:[#allocation2 + $0x68] sm:$0xff] %v1364_v1  ;;  %v628_v1 = vcvt.s32.f32 %v500_v52 }
 0x13f   : > { %v1205_v7 = vpop.f32.mrf.mxu2  ;;  %v1029_v14 = vpop.f32.mrf.mxu0  ;;  %v699_v9 = vpack.c.bf16 %v627_v62, %v623_v61 }
 0x140   : > { %v1294_v8 = vpop.f32.mrf.mxu3  ;;  %v1206_v13 = vadd.f32 %v1205_v7, %v1117_v2  ;;  %v1118_v15 = vpop.f32.mrf.mxu1  ;;  %v625_v2 = vcvt.s32.f32 %v497_v56  ;;  %v700_v12 = vpack.c.bf16 %v628_v1, %v624_v63  ;;  %v514_v63 = vunpack.c.3.s8 %v2447_v16 }
 0x141   : > { %v1119_v30 = vadd.f32 %v1118_v15, %v1029_v14  ;;  %v788_v14 = vld [vmem:[#allocation2 + $0x88] sm:$0xff] }
 0x142   : > { %v1295_v20 = vadd.f32 %v1294_v8, %v1206_v13  ;;  %v698_v8 = vpack.c.bf16 %v626_v60, %v622_v59  ;;  %v701_v13 = vpack.c.bf16 %v629_v3, %v625_v2  ;;  %v510_v60 = vunpack.c.2.s8 %v2447_v16 }
 0x144   : > { %v1365_v26 = vadd.f32 %v1295_v20, %v785_v19  ;;  %v2450_v19 = vld [vmem:[%s2311_s7 + $0xe8] sm:$0xff]  ;;  %v2453_v20 = vld [vmem:[%s2311_s7 + $0xf0] sm:$0xff] }
 0x145   : > { %v507_v27 = vunpack.c.1.s8 %v2450_v19  ;;  %v504_v28 = vunpack.c.0.s8 %v2453_v20  ;;  %v515_v1 = vunpack.c.3.s8 %v2450_v19  ;;  %v512_v2 = vunpack.c.2.s8 %v2453_v20 }
 0x146   : > { %1397 = vst [vmem:[#allocation2 + $0x30] sm:$0xff] %v1365_v26  ;;  %v503_v26 = vunpack.c.0.s8 %v2450_v19 }
 0x147   : > { %v1207_v31 = vpop.f32.mrf.mxu2  ;;  %v1032_v36 = vpop.f32.mrf.mxu0 }
 0x148   : > { %v1296_v32 = vpop.f32.mrf.mxu3  ;;  %v1208_v35 = vadd.f32 %v1207_v31, %v1119_v30  ;;  %v1121_v37 = vpop.f32.mrf.mxu1 }
 0x149   : > { %v1122_v43 = vadd.f32 %v1121_v37, %v1032_v36  ;;  %v630_v37 = vcvt.s32.f32 %v502_v22 }
 0x14a   : > { %v1297_v41 = vadd.f32 %v1296_v32, %v1208_v35  ;;  %1071 = vmatmul.bf16.gmra.mxu0 %v694_v33  ;;  %v508_v32 = vunpack.c.1.s8 %v2453_v20  ;;  %v505_v33 = vunpack.c.0.s8 %v2456_v21  ;;  %v789_v35 = vld [vmem:[#allocation2 + $0xe8] sm:$0xff] }
 0x14b   : > { %1160 = vmatmul.bf16.gmra.mxu1 %v695_v34  ;;  %v509_v34 = vunpack.c.1.s8 %v2456_v21 }
 0x14c   : > { %v1366_v42 = vadd.f32 %v1297_v41, %v786_v40  ;;  %1249 = vmatmul.bf16.gmra.mxu2 %v696_v38  ;;  %v634_v38 = vcvt.s32.f32 %v506_v25  ;;  %v635_v40 = vcvt.s32.f32 %v507_v27  ;;  %v632_v41 = vcvt.s32.f32 %v504_v28 }
 0x14d   : > { %1338 = vmatmul.bf16.gmra.mxu3 %v697_v39  ;;  %v631_v39 = vcvt.s32.f32 %v503_v26  ;;  %v633_v44 = vcvt.s32.f32 %v505_v33 }
 0x14e   : > { %1398 = vst [vmem:[#allocation2 + $0x48] sm:$0xff] %v1366_v42  ;;  %v702_v49 = vpack.c.bf16 %v634_v38, %v630_v37 }
 0x14f   : > { %v1210_v45 = vpop.f32.mrf.mxu2  ;;  %v1034_v54 = vpop.f32.mrf.mxu0  ;;  %v703_v50 = vpack.c.bf16 %v635_v40, %v631_v39  ;;  %v793_v39 = vld [vmem:[#allocation2 + $0x8] sm:$0xff] }
 0x150   : > { %v1299_v46 = vpop.f32.mrf.mxu3  ;;  %v1211_v51 = vadd.f32 %v1210_v45, %v1122_v43  ;;  %v1123_v55 = vpop.f32.mrf.mxu1  ;;  %v636_v43 = vcvt.s32.f32 %v508_v32  ;;  %v637_v45 = vcvt.s32.f32 %v509_v34 }
 0x151   : > { %v1124_v6 = vadd.f32 %v1123_v55, %v1034_v54 }
 0x152   : > { %v1300_v58 = vadd.f32 %v1299_v46, %v1211_v51  ;;  %v704_v52 = vpack.c.bf16 %v636_v43, %v632_v41  ;;  %v705_v56 = vpack.c.bf16 %v637_v45, %v633_v44 }
 0x154   : > { %v1367_v0 = vadd.f32 %v1300_v58, %v787_v53 }
 0x156   : > { %1399 = vst [vmem:[#allocation2 + $0x80] sm:$0xff] %v1367_v0  ;;  %v511_v0 = vunpack.c.2.s8 %v2450_v19 }
 0x157   : > { %v1212_v7 = vpop.f32.mrf.mxu2  ;;  %v1037_v10 = vpop.f32.mrf.mxu0 }
 0x158   : > { %v1301_v4 = vpop.f32.mrf.mxu3  ;;  %v1213_v5 = vadd.f32 %v1212_v7, %v1124_v6  ;;  %v1126_v11 = vpop.f32.mrf.mxu1 }
 0x159   : > { %v1127_v18 = vadd.f32 %v1126_v11, %v1037_v10  ;;  %v638_v11 = vcvt.s32.f32 %v510_v60 }
 0x15a   : > { %v1302_v15 = vadd.f32 %v1301_v4, %v1213_v5  ;;  %1076 = vmatmul.bf16.gmra.mxu0 %v698_v8  ;;  %v516_v4 = vunpack.c.3.s8 %v2453_v20  ;;  %v513_v8 = vunpack.c.2.s8 %v2456_v21  ;;  %v791_v5 = vld [vmem:[#allocation2 + $0x60] sm:$0xff] }
 0x15b   : > { %1165 = vmatmul.bf16.gmra.mxu1 %v699_v9  ;;  %v517_v9 = vunpack.c.3.s8 %v2456_v21 }
 0x15c   : > { %v1368_v17 = vadd.f32 %v1302_v15, %v788_v14  ;;  %1254 = vmatmul.bf16.gmra.mxu2 %v700_v12  ;;  %v642_v12 = vcvt.s32.f32 %v514_v63  ;;  %v643_v14 = vcvt.s32.f32 %v515_v1  ;;  %v640_v15 = vcvt.s32.f32 %v512_v2  ;;  %v796_v2 = vld [vmem:[#allocation2 + $0x58] sm:$0xff] }
 0x15d   : > { %1343 = vmatmul.bf16.gmra.mxu3 %v701_v13  ;;  %v639_v13 = vcvt.s32.f32 %v511_v0  ;;  %v645_v19 = vcvt.s32.f32 %v517_v9 }
 0x15e   : > { %1400 = vst [vmem:[#allocation2 + $0x88] sm:$0xff] %v1368_v17  ;;  %v644_v17 = vcvt.s32.f32 %v516_v4  ;;  %v706_v20 = vpack.c.bf16 %v642_v12, %v638_v11  ;;  %v797_v11 = vld [vmem:[#allocation2 + $0x40] sm:$0xff] }
 0x15f   : > { %v1215_v23 = vpop.f32.mrf.mxu2  ;;  %v1039_v30 = vpop.f32.mrf.mxu0  ;;  %v707_v25 = vpack.c.bf16 %v643_v14, %v639_v13 }
 0x160   : > { %v1304_v24 = vpop.f32.mrf.mxu3  ;;  %v1216_v29 = vadd.f32 %v1215_v23, %v1127_v18  ;;  %v1128_v31 = vpop.f32.mrf.mxu1  ;;  %v641_v18 = vcvt.s32.f32 %v513_v8  ;;  %v708_v28 = vpack.c.bf16 %v644_v17, %v640_v15 }
 0x161   : > { %v1129_v46 = vadd.f32 %v1128_v31, %v1039_v30  ;;  %v792_v30 = vld [vmem:[#allocation2 + $0xf0] sm:$0xff] }
 0x162   : > { %v1305_v36 = vadd.f32 %v1304_v24, %v1216_v29  ;;  %v709_v29 = vpack.c.bf16 %v645_v19, %v641_v18 }
 0x164   : > { %v1369_v42 = vadd.f32 %v1305_v36, %v789_v35 }
 0x166   : > { %1401 = vst [vmem:[#allocation2 + $0xe8] sm:$0xff] %v1369_v42 }
 0x167   : > { %v1217_v47 = vpop.f32.mrf.mxu2  ;;  %v1042_v54 = vpop.f32.mrf.mxu0 }
 0x168   : > { %v1306_v48 = vpop.f32.mrf.mxu3  ;;  %v1218_v51 = vadd.f32 %v1217_v47, %v1129_v46  ;;  %v1131_v55 = vpop.f32.mrf.mxu1 }
 0x169   : > { %v1132_v59 = vadd.f32 %v1131_v55, %v1042_v54 }
 0x16a   : > { %v1307_v53 = vadd.f32 %v1306_v48, %v1218_v51  ;;  %1081 = vmatmul.bf16.gmra.mxu0 %v702_v49  ;;  %v794_v48 = vld [vmem:[#allocation2 + $0x78] sm:$0xff] }
 0x16b   : > { %1170 = vmatmul.bf16.gmra.mxu1 %v703_v50 }
 0x16c   : > { %v1370_v58 = vadd.f32 %v1307_v53, %v790_v57  ;;  %1259 = vmatmul.bf16.gmra.mxu2 %v704_v52  ;;  %v795_v53 = vld [vmem:[#allocation2 + $0x38] sm:$0xff] }
 0x16d   : > { %1348 = vmatmul.bf16.gmra.mxu3 %v705_v56 }
 0x16e   : > { %1402 = vst [vmem:[#allocation2 + $0xb8] sm:$0xff] %v1370_v58 }
 0x16f   : > { %v1220_v61 = vpop.f32.mrf.mxu2  ;;  %v1044_v6 = vpop.f32.mrf.mxu0 }
 0x170   : > { %v1309_v62 = vpop.f32.mrf.mxu3  ;;  %v1221_v3 = vadd.f32 %v1220_v61, %v1132_v59  ;;  %v1133_v7 = vpop.f32.mrf.mxu1 }
 0x171   : > { %v1134_v22 = vadd.f32 %v1133_v7, %v1044_v6 }
 0x172   : > { %v1310_v10 = vadd.f32 %v1309_v62, %v1221_v3 }
 0x174   : > { %v1371_v16 = vadd.f32 %v1310_v10, %v791_v5 }
 0x176   : > { %1403 = vst [vmem:[#allocation2 + $0x60] sm:$0xff] %v1371_v16 }
 0x177   : > { %v1222_v23 = vpop.f32.mrf.mxu2  ;;  %v1047_v27 = vpop.f32.mrf.mxu0 }
 0x178   : > { %v1311_v24 = vpop.f32.mrf.mxu3  ;;  %v1223_v26 = vadd.f32 %v1222_v23, %v1134_v22  ;;  %v1136_v21 = vpop.f32.mrf.mxu1  ;;  %v798_v22 = vld [vmem:[#allocation2 + $0xc8] sm:$0xff] }
 0x179   : > { %v1137_v33 = vadd.f32 %v1136_v21, %v1047_v27 }
 0x17a   : > { %v1312_v31 = vadd.f32 %v1311_v24, %v1223_v26  ;;  %1086 = vmatmul.bf16.gmra.mxu0 %v706_v20 }
 0x17b   : > { %1175 = vmatmul.bf16.gmra.mxu1 %v707_v25 }
 0x17c   : > { %v1372_v32 = vadd.f32 %v1312_v31, %v792_v30  ;;  %1264 = vmatmul.bf16.gmra.mxu2 %v708_v28 }
 0x17d   : > { %1353 = vmatmul.bf16.gmra.mxu3 %v709_v29  ;;  %v799_v29 = vld [vmem:[#allocation2 + $0xe0] sm:$0xff] }
 0x17e   : > { %1404 = vst [vmem:[#allocation2 + $0xf0] sm:$0xff] %v1372_v32 }
 0x17f   : > { %v1225_v34 = vpop.f32.mrf.mxu2  ;;  %v1049_v37 = vpop.f32.mrf.mxu0 }
 0x180   : > { %v1314_v35 = vpop.f32.mrf.mxu3  ;;  %v1226_v36 = vadd.f32 %v1225_v34, %v1137_v33  ;;  %v1138_v38 = vpop.f32.mrf.mxu1 }
 0x181   : > { %v1139_v42 = vadd.f32 %v1138_v38, %v1049_v37  ;;  %v800_v38 = vld [vmem:[#allocation2 + $0x90] sm:$0xff] }
 0x182   : > { %v1315_v40 = vadd.f32 %v1314_v35, %v1226_v36 }
 0x184   : > { %v1373_v41 = vadd.f32 %v1315_v40, %v793_v39 }
 0x186   : > { %1405 = vst [vmem:[#allocation2 + $0x8] sm:$0xff] %v1373_v41 }
 0x187   : > { %v1227_v43 = vpop.f32.mrf.mxu2  ;;  %v1052_v46 = vpop.f32.mrf.mxu0 }
 0x188   : > { %v1316_v44 = vpop.f32.mrf.mxu3  ;;  %v1228_v45 = vadd.f32 %v1227_v43, %v1139_v42  ;;  %v1141_v47 = vpop.f32.mrf.mxu1 }
 0x189   : > { %v1142_v51 = vadd.f32 %v1141_v47, %v1052_v46  ;;  %v801_v47 = vld [vmem:[#allocation2 + $0x70] sm:$0xff] }
 0x18a   : > { %v1317_v49 = vadd.f32 %v1316_v44, %v1228_v45 }
 0x18c   : > { %v1374_v50 = vadd.f32 %v1317_v49, %v794_v48 }
 0x18e   : > { %1406 = vst [vmem:[#allocation2 + $0x78] sm:$0xff] %v1374_v50 }
 0x18f   : > { %v1230_v54 = vpop.f32.mrf.mxu2  ;;  %v1054_v56 = vpop.f32.mrf.mxu0 }
 0x190   : > { %v1319_v55 = vpop.f32.mrf.mxu3  ;;  %v1231_v52 = vadd.f32 %v1230_v54, %v1142_v51  ;;  %v1143_v57 = vpop.f32.mrf.mxu1 }
 0x191   : > { %v1144_v60 = vadd.f32 %v1143_v57, %v1054_v56  ;;  %v802_v57 = vld [vmem:[#allocation2 + $0xc0] sm:$0xff] }
 0x192   : > { %v1320_v58 = vadd.f32 %v1319_v55, %v1231_v52 }
 0x194   : > { %v1375_v59 = vadd.f32 %v1320_v58, %v795_v53 }
 0x196   : > { %1407 = vst [vmem:[#allocation2 + $0x38] sm:$0xff] %v1375_v59 }
 0x197   : > { %v1232_v61 = vpop.f32.mrf.mxu2  ;;  %v1057_v0 = vpop.f32.mrf.mxu0 }
 0x198   : > { %v1321_v62 = vpop.f32.mrf.mxu3  ;;  %v1233_v63 = vadd.f32 %v1232_v61, %v1144_v60  ;;  %v1146_v1 = vpop.f32.mrf.mxu1 }
 0x199   : > { %v1147_v7 = vadd.f32 %v1146_v1, %v1057_v0  ;;  %v803_v1 = vld [vmem:[#allocation2 + $0xa8] sm:$0xff] }
 0x19a   : > { %v1322_v3 = vadd.f32 %v1321_v62, %v1233_v63 }
 0x19c   : > { %v1376_v6 = vadd.f32 %v1322_v3, %v796_v2 }
 0x19e   : > { %1408 = vst [vmem:[#allocation2 + $0x58] sm:$0xff] %v1376_v6 }
 0x19f   : > { %v1235_v4 = vpop.f32.mrf.mxu2  ;;  %v1059_v5 = vpop.f32.mrf.mxu0 }
 0x1a0   : > { %v1324_v8 = vpop.f32.mrf.mxu3  ;;  %v1236_v9 = vadd.f32 %v1235_v4, %v1147_v7  ;;  %v1148_v10 = vpop.f32.mrf.mxu1 }
 0x1a1   : > { %v1149_v14 = vadd.f32 %v1148_v10, %v1059_v5  ;;  %v804_v10 = vld [vmem:[#allocation2 + $0xd0] sm:$0xff] }
 0x1a2   : > { %v1325_v12 = vadd.f32 %v1324_v8, %v1236_v9 }
 0x1a4   : > { %v1377_v13 = vadd.f32 %v1325_v12, %v797_v11 }
 0x1a6   : > { %1409 = vst [vmem:[#allocation2 + $0x40] sm:$0xff] %v1377_v13 }
 0x1a7   : > { %v1237_v15 = vpop.f32.mrf.mxu2  ;;  %v1062_v18 = vpop.f32.mrf.mxu0 }
 0x1a8   : > { %v1326_v16 = vpop.f32.mrf.mxu3  ;;  %v1238_v17 = vadd.f32 %v1237_v15, %v1149_v14  ;;  %v1151_v19 = vpop.f32.mrf.mxu1 }
 0x1a9   : > { %v1152_v20 = vadd.f32 %v1151_v19, %v1062_v18  ;;  %v805_v19 = vld [vmem:[#allocation2 + $0x10] sm:$0xff] }
 0x1aa   : > { %v1327_v23 = vadd.f32 %v1326_v16, %v1238_v17 }
 0x1ac   : > { %v1378_v24 = vadd.f32 %v1327_v23, %v798_v22 }
 0x1ae   : > { %1410 = vst [vmem:[#allocation2 + $0xc8] sm:$0xff] %v1378_v24 }
 0x1af   : > { %v1240_v25 = vpop.f32.mrf.mxu2  ;;  %v1064_v21 = vpop.f32.mrf.mxu0 }
 0x1b0   : > { %v1329_v26 = vpop.f32.mrf.mxu3  ;;  %v1241_v27 = vadd.f32 %v1240_v25, %v1152_v20  ;;  %v1153_v28 = vpop.f32.mrf.mxu1 }
 0x1b1   : > { %v1154_v32 = vadd.f32 %v1153_v28, %v1064_v21  ;;  %v806_v28 = vld [vmem:[#allocation2 + $0x28] sm:$0xff] }
 0x1b2   : > { %v1330_v30 = vadd.f32 %v1329_v26, %v1241_v27 }
 0x1b4   : > { %v1379_v31 = vadd.f32 %v1330_v30, %v799_v29 }
 0x1b6   : > { %1411 = vst [vmem:[#allocation2 + $0xe0] sm:$0xff] %v1379_v31 }
 0x1b7   : > { %v1242_v33 = vpop.f32.mrf.mxu2  ;;  %v1067_v36 = vpop.f32.mrf.mxu0 }
 0x1b8   : > { %v1331_v34 = vpop.f32.mrf.mxu3  ;;  %v1243_v35 = vadd.f32 %v1242_v33, %v1154_v32  ;;  %v1156_v37 = vpop.f32.mrf.mxu1 }
 0x1b9   : > { %v1157_v41 = vadd.f32 %v1156_v37, %v1067_v36  ;;  %v807_v37 = vld [vmem:[#allocation2 + $0xa0] sm:$0xff] }
 0x1ba   : > { %v1332_v39 = vadd.f32 %v1331_v34, %v1243_v35 }
 0x1bc   : > { %v1380_v40 = vadd.f32 %v1332_v39, %v800_v38 }
 0x1be   : > { %1412 = vst [vmem:[#allocation2 + $0x90] sm:$0xff] %v1380_v40 }
 0x1bf   : > { %v1245_v42 = vpop.f32.mrf.mxu2  ;;  %v1069_v45 = vpop.f32.mrf.mxu0 }
 0x1c0   : > { %v1334_v43 = vpop.f32.mrf.mxu3  ;;  %v1246_v44 = vadd.f32 %v1245_v42, %v1157_v41  ;;  %v1158_v46 = vpop.f32.mrf.mxu1 }
 0x1c1   : > { %v1159_v50 = vadd.f32 %v1158_v46, %v1069_v45 }
 0x1c2   : > { %v1335_v48 = vadd.f32 %v1334_v43, %v1246_v44  ;;  %v808_v44 = vld [vmem:[#allocation2 + $0xf8] sm:$0xff] }
 0x1c4   : > { %v1381_v49 = vadd.f32 %v1335_v48, %v801_v47 }
 0x1c6   : > { %1413 = vst [vmem:[#allocation2 + $0x70] sm:$0xff] %v1381_v49 }
 0x1c7   : > { %v1247_v51 = vpop.f32.mrf.mxu2  ;;  %v1072_v52 = vpop.f32.mrf.mxu0 }
 0x1c8   : > { %v1336_v54 = vpop.f32.mrf.mxu3  ;;  %v1248_v55 = vadd.f32 %v1247_v51, %v1159_v50  ;;  %v1161_v56 = vpop.f32.mrf.mxu1 }
 0x1c9   : > { %v1162_v59 = vadd.f32 %v1161_v56, %v1072_v52 }
 0x1ca   : > { %v1337_v53 = vadd.f32 %v1336_v54, %v1248_v55  ;;  %v809_v55 = vld [vmem:[#allocation2 + $0x20] sm:$0xff] }
 0x1cc   : > { %v1382_v58 = vadd.f32 %v1337_v53, %v802_v57 }
 0x1ce   : > { %1414 = vst [vmem:[#allocation2 + $0xc0] sm:$0xff] %v1382_v58 }
 0x1cf   : > { %v1250_v60 = vpop.f32.mrf.mxu2  ;;  %v1074_v63 = vpop.f32.mrf.mxu0 }
 0x1d0   : > { %v1339_v61 = vpop.f32.mrf.mxu3  ;;  %v1251_v62 = vadd.f32 %v1250_v60, %v1162_v59  ;;  %v1163_v0 = vpop.f32.mrf.mxu1 }
 0x1d1   : > { %v1164_v6 = vadd.f32 %v1163_v0, %v1074_v63 }
 0x1d2   : > { %v1340_v2 = vadd.f32 %v1339_v61, %v1251_v62  ;;  %v810_v61 = vld [vmem:[#allocation2 + $0x98] sm:$0xff] }
 0x1d4   : > { %v1383_v3 = vadd.f32 %v1340_v2, %v803_v1 }
 0x1d6   : > { %1415 = vst [vmem:[#allocation2 + $0xa8] sm:$0xff] %v1383_v3 }
 0x1d7   : > { %v1252_v7 = vpop.f32.mrf.mxu2  ;;  %v1077_v9 = vpop.f32.mrf.mxu0 }
 0x1d8   : > { %v1341_v4 = vpop.f32.mrf.mxu3  ;;  %v1253_v8 = vadd.f32 %v1252_v7, %v1164_v6  ;;  %v1166_v5 = vpop.f32.mrf.mxu1 }
 0x1d9   : > { %v1167_v13 = vadd.f32 %v1166_v5, %v1077_v9 }
 0x1da   : > { %v1342_v11 = vadd.f32 %v1341_v4, %v1253_v8 }
 0x1dc   : > { %v1384_v12 = vadd.f32 %v1342_v11, %v804_v10 }
 0x1de   : > { %1416 = vst [vmem:[#allocation2 + $0xd0] sm:$0xff] %v1384_v12 }
 0x1df   : > { %v1255_v14 = vpop.f32.mrf.mxu2  ;;  %v1079_v17 = vpop.f32.mrf.mxu0 }
 0x1e0   : > { %v1344_v15 = vpop.f32.mrf.mxu3  ;;  %v1256_v16 = vadd.f32 %v1255_v14, %v1167_v13  ;;  %v1168_v18 = vpop.f32.mrf.mxu1 }
 0x1e1   : > { %v1169_v24 = vadd.f32 %v1168_v18, %v1079_v17 }
 0x1e2   : > { %v1345_v22 = vadd.f32 %v1344_v15, %v1256_v16 }
 0x1e4   : > { %v1385_v23 = vadd.f32 %v1345_v22, %v805_v19 }
 0x1e6   : > { %1417 = vst [vmem:[#allocation2 + $0x10] sm:$0xff] %v1385_v23 }
 0x1e7   : > { %v1257_v20 = vpop.f32.mrf.mxu2  ;;  %v1082_v27 = vpop.f32.mrf.mxu0 }
 0x1e8   : > { %v1346_v25 = vpop.f32.mrf.mxu3  ;;  %v1258_v26 = vadd.f32 %v1257_v20, %v1169_v24  ;;  %v1171_v21 = vpop.f32.mrf.mxu1 }
 0x1e9   : > { %v1172_v31 = vadd.f32 %v1171_v21, %v1082_v27 }
 0x1ea   : > { %v1347_v29 = vadd.f32 %v1346_v25, %v1258_v26 }
 0x1ec   : > { %v1386_v30 = vadd.f32 %v1347_v29, %v806_v28 }
 0x1ee   : > { %1418 = vst [vmem:[#allocation2 + $0x28] sm:$0xff] %v1386_v30 }
 0x1ef   : > { %v1260_v32 = vpop.f32.mrf.mxu2  ;;  %v1084_v35 = vpop.f32.mrf.mxu0 }
 0x1f0   : > { %v1349_v33 = vpop.f32.mrf.mxu3  ;;  %v1261_v34 = vadd.f32 %v1260_v32, %v1172_v31  ;;  %v1173_v36 = vpop.f32.mrf.mxu1 }
 0x1f1   : > { %v1174_v40 = vadd.f32 %v1173_v36, %v1084_v35 }
 0x1f2   : > { %v1350_v38 = vadd.f32 %v1349_v33, %v1261_v34 }
 0x1f4   : > { %v1387_v39 = vadd.f32 %v1350_v38, %v807_v37 }
 0x1f6   : > { %1419 = vst [vmem:[#allocation2 + $0xa0] sm:$0xff] %v1387_v39 }
 0x1f7   : > { %v1262_v41 = vpop.f32.mrf.mxu2  ;;  %v1087_v45 = vpop.f32.mrf.mxu0 }
 0x1f8   : > { %v1351_v42 = vpop.f32.mrf.mxu3  ;;  %v1263_v43 = vadd.f32 %v1262_v41, %v1174_v40  ;;  %v1176_v46 = vpop.f32.mrf.mxu1 }
 0x1f9   : > { %v1177_v49 = vadd.f32 %v1176_v46, %v1087_v45 }
 0x1fa   : > { %v1352_v47 = vadd.f32 %v1351_v42, %v1263_v43 }
 0x1fc   : > { %v1388_v48 = vadd.f32 %v1352_v47, %v808_v44 }
 0x1fe   : > { %1420 = vst [vmem:[#allocation2 + $0xf8] sm:$0xff] %v1388_v48 }
 0x1ff   : > { %v1265_v50 = vpop.f32.mrf.mxu2  ;;  %v1089_v56 = vpop.f32.mrf.mxu0 }
 0x200   : > { %v1354_v51 = vpop.f32.mrf.mxu3  ;;  %v1266_v54 = vadd.f32 %v1265_v50, %v1177_v49  ;;  %v1178_v57 = vpop.f32.mrf.mxu1 }
 0x201   : > { %v1179_v58 = vadd.f32 %v1178_v57, %v1089_v56 }
 0x202   : > { %v1355_v52 = vadd.f32 %v1354_v51, %v1266_v54 }
 0x204   : > { %v1389_v53 = vadd.f32 %v1355_v52, %v809_v55 }
 0x206   : > { %1421 = vst [vmem:[#allocation2 + $0x20] sm:$0xff] %v1389_v53 }
 0x207   : > { %v1267_v59 = vpop.f32.mrf.mxu2 }
 0x208   : > { %v1268_v60 = vadd.f32 %v1267_v59, %v1179_v58  ;;  %v1356_v62 = vpop.f32.mrf.mxu3 }
 0x20a   : > { %v1357_v63 = vadd.f32 %v1356_v62, %v1268_v60  ;;  %1426 = sbr.rel (%p1988_p12) target bundleno = 731 (0x2db), region = 67 }
 0x20c   : > { %v1390_v0 = vadd.f32 %v1357_v63, %v810_v61 }
 0x20e   : > { %1422 = vst [vmem:[#allocation2 + $0x98] sm:$0xff] %v1390_v0 }
 0x20f   : > { %v1463_v1 = vld [vmem:[%s2304_s29 + $0x20] sm:$0xff]  ;;  %v1461_v2 = vld [vmem:[%s2304_s29 + $0x10] sm:$0xff]  ;;  %v2143_v6 = vmov 0   ;;  %v1464_v7 = vld [vmem:[%s2304_s29 + $0x28] sm:$0xff] }
 0x210   : > { %v1459_v3 = vld [vmem:[%s2304_s29] sm:$0xff]  ;;  %2084 = vset.pattern.permute.xlu2 %v2143_v6  ;;  %2083 = vset.pattern.permute.xlu1 %v2143_v6  ;;  %v1462_v4 = vld [vmem:[%s2304_s29 + $0x18] sm:$0xff]  ;;  %v1460_v8 = vld [vmem:[%s2304_s29 + $0x8] sm:$0xff] }
 0x211   : > { %2082 = vset.pattern.permute.xlu0 %v2143_v6  ;;  %1513 = vperm.xlu2 %2084, %v1463_v1   ;;  %v1467_v9 = vld [vmem:[%s2304_s29 + $0x40] sm:$0xff]  ;;  %v1466_v5 = vld [vmem:[%s2304_s29 + $0x38] sm:$0xff]  ;;  %v1465_v10 = vld [vmem:[%s2304_s29 + $0x30] sm:$0xff] }
 0x212   : > { %1503 = vperm.xlu1 %2083, %v1461_v2   ;;  %1493 = vperm.xlu0 %2082, %v1459_v3   ;;  %v1470_v11 = vld [vmem:[%s2304_s29 + $0x58] sm:$0xff]  ;;  %v1469_v12 = vld [vmem:[%s2304_s29 + $0x50] sm:$0xff]  ;;  %v1468_v13 = vld [vmem:[%s2304_s29 + $0x48] sm:$0xff] }
 0x213   : > { %v1473_v14 = vld [vmem:[%s2304_s29 + $0x70] sm:$0xff]  ;;  %v1472_v15 = vld [vmem:[%s2304_s29 + $0x68] sm:$0xff]  ;;  %v1471_v16 = vld [vmem:[%s2304_s29 + $0x60] sm:$0xff] }
 0x214   : > { %v1476_v17 = vld [vmem:[%s2304_s29 + $0x88] sm:$0xff]  ;;  %v1475_v18 = vld [vmem:[%s2304_s29 + $0x80] sm:$0xff]  ;;  %v1474_v19 = vld [vmem:[%s2304_s29 + $0x78] sm:$0xff] }
 0x215   : > { %v1479_v22 = vld [vmem:[%s2304_s29 + $0xa0] sm:$0xff]  ;;  %v1478_v23 = vld [vmem:[%s2304_s29 + $0x98] sm:$0xff]  ;;  %v1477_v24 = vld [vmem:[%s2304_s29 + $0x90] sm:$0xff] }
 0x216   : > { %v1482_v20 = vld [vmem:[%s2304_s29 + $0xb8] sm:$0xff]  ;;  %v1481_v25 = vld [vmem:[%s2304_s29 + $0xb0] sm:$0xff]  ;;  %v1480_v26 = vld [vmem:[%s2304_s29 + $0xa8] sm:$0xff] }
 0x217   : > { %v1485_v27 = vld [vmem:[%s2304_s29 + $0xd0] sm:$0xff]  ;;  %v1484_v21 = vld [vmem:[%s2304_s29 + $0xc8] sm:$0xff]  ;;  %v1483_v28 = vld [vmem:[%s2304_s29 + $0xc0] sm:$0xff] }
 0x218   : > { %v1488_v29 = vld [vmem:[%s2304_s29 + $0xe8] sm:$0xff]  ;;  %v1487_v30 = vld [vmem:[%s2304_s29 + $0xe0] sm:$0xff]  ;;  %v1486_v31 = vld [vmem:[%s2304_s29 + $0xd8] sm:$0xff] }
 0x219   : > { %1518 = vperm.xlu2 %2084, %v1464_v7   ;;  %v1490_v32 = vld [vmem:[%s2304_s29 + $0xf8] sm:$0xff]  ;;  %v1489_v33 = vld [vmem:[%s2304_s29 + $0xf0] sm:$0xff]  ;;  %v2510_v36 = vld [vmem:[%s2600_s3] ss:$0 sm:$0xff] }
 0x21a   : > { %1508 = vperm.xlu1 %2083, %v1462_v4   ;;  %1498 = vperm.xlu0 %2082, %v1460_v8   ;;  %v1431_v34 = vld [vmem:[#allocation2 + $0x50] sm:$0xff]  ;;  %v1432_v39 = vld [vmem:[#allocation2 + $0x68] sm:$0xff]  ;;  %v1435_v43 = vld [vmem:[#allocation2 + $0x80] sm:$0xff] }
 0x21b   : > { %v1438_v47 = vld [vmem:[#allocation2 + $0xb8] sm:$0xff]  ;;  %v1427_v49 = vld [vmem:[#allocation2 + $0xb0] sm:$0xff]  ;;  %v1441_v59 = vld [vmem:[#allocation2 + $0x8] sm:$0xff] }
 0x21c   : > { %v1429_v48 = vld [vmem:[#allocation2 + $0xd8] sm:$0xff]  ;;  %v1428_v61 = vld [vmem:[#allocation2] sm:$0xff] }
 0x21d   : > { %v1430_v60 = vld [vmem:[#allocation2 + $0x18] sm:$0xff] }
 0x21e   : > { %v1444_v8 = vld [vmem:[#allocation2 + $0x58] sm:$0xff] }
 0x221   : > { %1533 = vperm.xlu2 %2084, %v1467_v9   ;;  %v1434_v9 = vld [vmem:[#allocation2 + $0x48] sm:$0xff] }
 0x222   : > { %1528 = vperm.xlu1 %2083, %v1466_v5   ;;  %1523 = vperm.xlu0 %2082, %v1465_v10   ;;  %v1433_v5 = vld [vmem:[#allocation2 + $0x30] sm:$0xff] }
 0x229   : > { %1548 = vperm.xlu2 %2084, %v1470_v11  }
 0x22a   : > { %1543 = vperm.xlu1 %2083, %v1469_v12   ;;  %1538 = vperm.xlu0 %2082, %v1468_v13  }
 0x231   : > { %1563 = vperm.xlu2 %2084, %v1473_v14  }
 0x232   : > { %1558 = vperm.xlu1 %2083, %v1472_v15   ;;  %1553 = vperm.xlu0 %2082, %v1471_v16  }
 0x239   : > { %1578 = vperm.xlu2 %2084, %v1476_v17  }
 0x23a   : > { %1573 = vperm.xlu1 %2083, %v1475_v18   ;;  %1568 = vperm.xlu0 %2082, %v1474_v19   ;;  %v1447_v19 = vld [vmem:[#allocation2 + $0xe0] sm:$0xff] }
 0x241   : > { %1593 = vperm.xlu2 %2084, %v1479_v22   ;;  %v1437_v22 = vld [vmem:[#allocation2 + $0xe8] sm:$0xff] }
 0x242   : > { %1588 = vperm.xlu1 %2083, %v1478_v23   ;;  %1583 = vperm.xlu0 %2082, %v1477_v24   ;;  %v1436_v23 = vld [vmem:[#allocation2 + $0x88] sm:$0xff] }
 0x249   : > { %1608 = vperm.xlu2 %2084, %v1482_v20  }
 0x24a   : > { %1603 = vperm.xlu1 %2083, %v1481_v25   ;;  %1598 = vperm.xlu0 %2082, %v1480_v26  }
 0x251   : > { %1623 = vperm.xlu2 %2084, %v1485_v27  }
 0x252   : > { %1618 = vperm.xlu1 %2083, %v1484_v21   ;;  %1613 = vperm.xlu0 %2082, %v1483_v28  }
 0x259   : > { %1638 = vperm.xlu2 %2084, %v1488_v29  }
 0x25a   : > { %1633 = vperm.xlu1 %2083, %v1487_v30   ;;  %1628 = vperm.xlu0 %2082, %v1486_v31   ;;  %v1450_v31 = vld [vmem:[#allocation2 + $0xc0] sm:$0xff] }
 0x262   : > { %1648 = vperm.xlu1 %2083, %v1490_v32   ;;  %1643 = vperm.xlu0 %2082, %v1489_v33   ;;  %v1440_v32 = vld [vmem:[#allocation2 + $0xf0] sm:$0xff]  ;;  %v1439_v33 = vld [vmem:[#allocation2 + $0x60] sm:$0xff] }
 0x26b   : > { %v1514_v35 = vpop.permute.xlu2 %1513 }
 0x26c   : > { %v1655_v37 = vmul.f32 %v1514_v35, %v1431_v34 }
 0x26e   : > { %v1691_v38 = vadd.f32 %v2510_v36, %v1655_v37 }
 0x270   : > { %1723 = vst [vmem:[%s2309_s6 + $0x20] sm:$0xff] %v1691_v38 }
 0x273   : > { %v1519_v40 = vpop.permute.xlu2 %1518 }
 0x274   : > { %v1656_v41 = vmul.f32 %v1519_v40, %v1432_v39 }
 0x276   : > { %v1692_v42 = vadd.f32 %v2510_v36, %v1656_v41 }
 0x278   : > { %1724 = vst [vmem:[%s2309_s6 + $0x28] sm:$0xff] %v1692_v42 }
 0x27b   : > { %v1534_v44 = vpop.permute.xlu2 %1533 }
 0x27c   : > { %v1659_v45 = vmul.f32 %v1534_v44, %v1435_v43  ;;  %v1453_v44 = vld [vmem:[#allocation2 + $0x10] sm:$0xff] }
 0x27e   : > { %v1695_v46 = vadd.f32 %v2510_v36, %v1659_v45  ;;  %v1443_v45 = vld [vmem:[#allocation2 + $0x38] sm:$0xff] }
 0x280   : > { %1727 = vst [vmem:[%s2309_s6 + $0x40] sm:$0xff] %v1695_v46  ;;  %v1442_v46 = vld [vmem:[#allocation2 + $0x78] sm:$0xff] }
 0x283   : > { %v1549_v50 = vpop.permute.xlu2 %1548 }
 0x284   : > { %v1662_v51 = vmul.f32 %v1549_v50, %v1438_v47  ;;  %v1504_v54 = vpop.permute.xlu1 %1503  ;;  %v1494_v55 = vpop.permute.xlu0 %1493 }
 0x285   : > { %v1653_v52 = vmul.f32 %v1504_v54, %v1429_v48  ;;  %v1651_v56 = vmul.f32 %v1494_v55, %v1427_v49 }
 0x286   : > { %v1698_v57 = vadd.f32 %v2510_v36, %v1662_v51 }
 0x287   : > { %v1689_v53 = vadd.f32 %v2510_v36, %v1653_v52  ;;  %v1687_v58 = vadd.f32 %v2510_v36, %v1651_v56 }
 0x288   : > { %1730 = vst [vmem:[%s2309_s6 + $0x58] sm:$0xff] %v1698_v57  ;;  %v1456_v57 = vld [vmem:[#allocation2 + $0xf8] sm:$0xff] }
 0x289   : > { %1721 = vst [vmem:[%s2309_s6 + $0x10] sm:$0xff] %v1689_v53  ;;  %v1446_v53 = vld [vmem:[#allocation2 + $0xc8] sm:$0xff] }
 0x28a   : > { %1719 = vst [vmem:[%s2309_s6] sm:$0xff] %v1687_v58  ;;  %v1445_v58 = vld [vmem:[#allocation2 + $0x40] sm:$0xff] }
 0x28b   : > { %v1564_v62 = vpop.permute.xlu2 %1563 }
 0x28c   : > { %v1665_v63 = vmul.f32 %v1564_v62, %v1441_v59  ;;  %v1509_v0 = vpop.permute.xlu1 %1508  ;;  %v1499_v1 = vpop.permute.xlu0 %1498 }
 0x28d   : > { %v1654_v2 = vmul.f32 %v1509_v0, %v1430_v60  ;;  %v1652_v3 = vmul.f32 %v1499_v1, %v1428_v61 }
 0x28e   : > { %v1701_v6 = vadd.f32 %v2510_v36, %v1665_v63 }
 0x28f   : > { %v1690_v7 = vadd.f32 %v2510_v36, %v1654_v2  ;;  %v1688_v4 = vadd.f32 %v2510_v36, %v1652_v3 }
 0x290   : > { %1733 = vst [vmem:[%s2309_s6 + $0x70] sm:$0xff] %v1701_v6  ;;  %v1449_v6 = vld [vmem:[#allocation2 + $0x70] sm:$0xff] }
 0x291   : > { %1722 = vst [vmem:[%s2309_s6 + $0x18] sm:$0xff] %v1690_v7  ;;  %v1448_v7 = vld [vmem:[#allocation2 + $0x90] sm:$0xff] }
 0x292   : > { %1720 = vst [vmem:[%s2309_s6 + $0x8] sm:$0xff] %v1688_v4 }
 0x293   : > { %v1579_v10 = vpop.permute.xlu2 %1578 }
 0x294   : > { %v1668_v11 = vmul.f32 %v1579_v10, %v1444_v8  ;;  %v1529_v12 = vpop.permute.xlu1 %1528  ;;  %v1524_v13 = vpop.permute.xlu0 %1523 }
 0x295   : > { %v1658_v14 = vmul.f32 %v1529_v12, %v1434_v9  ;;  %v1657_v15 = vmul.f32 %v1524_v13, %v1433_v5  ;;  %v1452_v12 = vld [vmem:[#allocation2 + $0xd0] sm:$0xff]  ;;  %v1451_v13 = vld [vmem:[#allocation2 + $0xa8] sm:$0xff] }
 0x296   : > { %v1704_v16 = vadd.f32 %v2510_v36, %v1668_v11 }
 0x297   : > { %v1694_v17 = vadd.f32 %v2510_v36, %v1658_v14  ;;  %v1693_v18 = vadd.f32 %v2510_v36, %v1657_v15 }
 0x298   : > { %1736 = vst [vmem:[%s2309_s6 + $0x88] sm:$0xff] %v1704_v16 }
 0x299   : > { %1726 = vst [vmem:[%s2309_s6 + $0x38] sm:$0xff] %v1694_v17 }
 0x29a   : > { %1725 = vst [vmem:[%s2309_s6 + $0x30] sm:$0xff] %v1693_v18 }
 0x29b   : > { %v1594_v24 = vpop.permute.xlu2 %1593 }
 0x29c   : > { %v1671_v20 = vmul.f32 %v1594_v24, %v1447_v19  ;;  %v1544_v25 = vpop.permute.xlu1 %1543  ;;  %v1539_v26 = vpop.permute.xlu0 %1538 }
 0x29d   : > { %v1661_v27 = vmul.f32 %v1544_v25, %v1437_v22  ;;  %v1660_v21 = vmul.f32 %v1539_v26, %v1436_v23  ;;  %v1455_v22 = vld [vmem:[#allocation2 + $0xa0] sm:$0xff]  ;;  %v1454_v23 = vld [vmem:[#allocation2 + $0x28] sm:$0xff] }
 0x29e   : > { %v1707_v28 = vadd.f32 %v2510_v36, %v1671_v20 }
 0x29f   : > { %v1697_v29 = vadd.f32 %v2510_v36, %v1661_v27  ;;  %v1696_v30 = vadd.f32 %v2510_v36, %v1660_v21 }
 0x2a0   : > { %1739 = vst [vmem:[%s2309_s6 + $0xa0] sm:$0xff] %v1707_v28  ;;  %v1458_v28 = vld [vmem:[#allocation2 + $0x98] sm:$0xff] }
 0x2a1   : > { %1729 = vst [vmem:[%s2309_s6 + $0x50] sm:$0xff] %v1697_v29  ;;  %v1457_v29 = vld [vmem:[#allocation2 + $0x20] sm:$0xff] }
 0x2a2   : > { %1728 = vst [vmem:[%s2309_s6 + $0x48] sm:$0xff] %v1696_v30 }
 0x2a3   : > { %v1609_v34 = vpop.permute.xlu2 %1608 }
 0x2a4   : > { %v1674_v35 = vmul.f32 %v1609_v34, %v1450_v31  ;;  %v1559_v37 = vpop.permute.xlu1 %1558  ;;  %v1554_v38 = vpop.permute.xlu0 %1553 }
 0x2a5   : > { %v1664_v39 = vmul.f32 %v1559_v37, %v1440_v32  ;;  %v1663_v40 = vmul.f32 %v1554_v38, %v1439_v33 }
 0x2a6   : > { %v1710_v41 = vadd.f32 %v2510_v36, %v1674_v35 }
 0x2a7   : > { %v1700_v42 = vadd.f32 %v2510_v36, %v1664_v39  ;;  %v1699_v43 = vadd.f32 %v2510_v36, %v1663_v40 }
 0x2a8   : > { %1742 = vst [vmem:[%s2309_s6 + $0xb8] sm:$0xff] %v1710_v41 }
 0x2a9   : > { %1732 = vst [vmem:[%s2309_s6 + $0x68] sm:$0xff] %v1700_v42 }
 0x2aa   : > { %1731 = vst [vmem:[%s2309_s6 + $0x60] sm:$0xff] %v1699_v43 }
 0x2ab   : > { %v1624_v47 = vpop.permute.xlu2 %1623 }
 0x2ac   : > { %v1677_v48 = vmul.f32 %v1624_v47, %v1453_v44  ;;  %v1574_v49 = vpop.permute.xlu1 %1573  ;;  %v1569_v50 = vpop.permute.xlu0 %1568 }
 0x2ad   : > { %v1667_v51 = vmul.f32 %v1574_v49, %v1443_v45  ;;  %v1666_v54 = vmul.f32 %v1569_v50, %v1442_v46 }
 0x2ae   : > { %v1713_v55 = vadd.f32 %v2510_v36, %v1677_v48 }
 0x2af   : > { %v1703_v52 = vadd.f32 %v2510_v36, %v1667_v51  ;;  %v1702_v56 = vadd.f32 %v2510_v36, %v1666_v54 }
 0x2b0   : > { %1745 = vst [vmem:[%s2309_s6 + $0xd0] sm:$0xff] %v1713_v55 }
 0x2b1   : > { %1735 = vst [vmem:[%s2309_s6 + $0x80] sm:$0xff] %v1703_v52 }
 0x2b2   : > { %1734 = vst [vmem:[%s2309_s6 + $0x78] sm:$0xff] %v1702_v56 }
 0x2b3   : > { %v1639_v59 = vpop.permute.xlu2 %1638 }
 0x2b4   : > { %v1680_v60 = vmul.f32 %v1639_v59, %v1456_v57  ;;  %v1589_v61 = vpop.permute.xlu1 %1588  ;;  %v1584_v62 = vpop.permute.xlu0 %1583 }
 0x2b5   : > { %v1670_v63 = vmul.f32 %v1589_v61, %v1446_v53  ;;  %v1669_v0 = vmul.f32 %v1584_v62, %v1445_v58 }
 0x2b6   : > { %v1716_v1 = vadd.f32 %v2510_v36, %v1680_v60 }
 0x2b7   : > { %v1706_v2 = vadd.f32 %v2510_v36, %v1670_v63  ;;  %v1705_v3 = vadd.f32 %v2510_v36, %v1669_v0 }
 0x2b8   : > { %1748 = vst [vmem:[%s2309_s6 + $0xe8] sm:$0xff] %v1716_v1 }
 0x2b9   : > { %1738 = vst [vmem:[%s2309_s6 + $0x98] sm:$0xff] %v1706_v2 }
 0x2ba   : > { %1737 = vst [vmem:[%s2309_s6 + $0x90] sm:$0xff] %v1705_v3 }
 0x2bc   : > { %v1604_v4 = vpop.permute.xlu1 %1603  ;;  %v1599_v8 = vpop.permute.xlu0 %1598 }
 0x2bd   : > { %v1673_v9 = vmul.f32 %v1604_v4, %v1449_v6  ;;  %v1672_v5 = vmul.f32 %v1599_v8, %v1448_v7 }
 0x2bf   : > { %v1709_v10 = vadd.f32 %v2510_v36, %v1673_v9  ;;  %v1708_v11 = vadd.f32 %v2510_v36, %v1672_v5 }
 0x2c1   : > { %1741 = vst [vmem:[%s2309_s6 + $0xb0] sm:$0xff] %v1709_v10 }
 0x2c2   : > { %1740 = vst [vmem:[%s2309_s6 + $0xa8] sm:$0xff] %v1708_v11 }
 0x2c4   : > { %v1619_v14 = vpop.permute.xlu1 %1618  ;;  %v1614_v15 = vpop.permute.xlu0 %1613 }
 0x2c5   : > { %v1676_v16 = vmul.f32 %v1619_v14, %v1452_v12  ;;  %v1675_v17 = vmul.f32 %v1614_v15, %v1451_v13 }
 0x2c7   : > { %v1712_v18 = vadd.f32 %v2510_v36, %v1676_v16  ;;  %v1711_v19 = vadd.f32 %v2510_v36, %v1675_v17 }
 0x2c9   : > { %1744 = vst [vmem:[%s2309_s6 + $0xc8] sm:$0xff] %v1712_v18 }
 0x2ca   : > { %1743 = vst [vmem:[%s2309_s6 + $0xc0] sm:$0xff] %v1711_v19 }
 0x2cc   : > { %v1634_v24 = vpop.permute.xlu1 %1633  ;;  %v1629_v20 = vpop.permute.xlu0 %1628 }
 0x2cd   : > { %v1679_v25 = vmul.f32 %v1634_v24, %v1455_v22  ;;  %v1678_v26 = vmul.f32 %v1629_v20, %v1454_v23 }
 0x2cf   : > { %v1715_v27 = vadd.f32 %v2510_v36, %v1679_v25  ;;  %v1714_v21 = vadd.f32 %v2510_v36, %v1678_v26 }
 0x2d1   : > { %1747 = vst [vmem:[%s2309_s6 + $0xe0] sm:$0xff] %v1715_v27 }
 0x2d2   : > { %1746 = vst [vmem:[%s2309_s6 + $0xd8] sm:$0xff] %v1714_v21 }
 0x2d4   : > { %v1649_v30 = vpop.permute.xlu1 %1648  ;;  %v1644_v31 = vpop.permute.xlu0 %1643 }
 0x2d5   : > { %v1682_v32 = vmul.f32 %v1649_v30, %v1458_v28  ;;  %v1681_v33 = vmul.f32 %v1644_v31, %v1457_v29 }
 0x2d7   : > { %v1718_v34 = vadd.f32 %v2510_v36, %v1682_v32  ;;  %v1717_v35 = vadd.f32 %v2510_v36, %v1681_v33 }
 0x2d9   : > { %1750 = vst [vmem:[%s2309_s6 + $0xf8] sm:$0xff] %v1718_v34 }
 0x2da   : > { %1749 = vst [vmem:[%s2309_s6 + $0xf0] sm:$0xff] %v1717_v35 }
 0x2db PF: > { %s14_s21 = sadd.s32 1, %s2140_s21   ;;  %s2602_s15 = smov %s2120_s16 }
 0x2dc   : > { %p11_p13 = scmp.ge.s32.totalorder %s14_s21, 10   ;;  %s2603_s16 = smov %s2220_s28 }
 0x2dd   : > { %s2604_s17 = smov %s2132_s19  ;;  %s2605_s18 = smov %s2136_s20 }
 0x2de   : > { %s2606_s19 = smov %s2609_s22  ;;  %s2607_s20 = smov %s2613_s23 }
 0x2df   :  { %13 = sbr.rel (!%p11_p13) target bundleno = 4 (0x4), region = 106 }

// kernel: gcn_contrastive_forward.2
= control target key start
LH: loop header
LB: loop body
LE: loop exit
PB: predicated region body
PF: predicated region fallthrough
CT: control target
= control target key end

     0   :  { %s3036_s24 = smov 0   ;;  %s3038_s25 = smov 0   ;;  %s3641_s0 = inlined_call_operand.vmem [shape: s8[1024,1024], index: 0, kind: input, shape index: {}]   ;;  %s3642_s1 = inlined_call_operand.vmem [shape: bf16[1024,16], index: 1, kind: input, shape index: {}]   ;;  %s3643_s2 = inlined_call_operand.vmem [shape: f32[1024,1], index: 2, kind: input, shape index: {}]   ;;  %s3644_s3 = inlined_call_operand.vmem [shape: f32[1024,1], index: 3, kind: input, shape index: {}]   ;;  %s3645_s4 = inlined_call_operand.vmem [shape: bf16[16,32], index: 4, kind: input, shape index: {}]   ;;  %s3646_s5 = inlined_call_operand.vmem [shape: f32[1,32], index: 5, kind: input, shape index: {}]   ;;  %s3647_s6 = inlined_call_operand.vmem [shape: bf16[32,128], index: 6, kind: input, shape index: {}]   ;;  %s3648_s7 = inlined_call_operand.vmem [shape: bf16[1024,128], index: 7, kind: output, shape index: {}]  }
   0x1   :  { %s3040_s26 = smov 0   ;;  %s3042_s27 = smov 0  }
   0x2   :  { %s3044_s28 = smov 0   ;;  %s3046_s29 = smov 0  }
   0x3   :  { %s3048_s30 = smov 0  }
   0x4 LB: > { %s26_s8 = sadd.s32 1, %s2984_s28  ;;  %s29_s9 = sadd.s32 1, %s2988_s29  ;;  %s2992_s30 = sphi %s3048_s30, %s17_s30   ;;  %s2988_s29 = sphi %s3046_s29, %s3654_s29   ;;  %s2984_s28 = sphi %s3044_s28, %s3653_s28   ;;  %s2980_s27 = sphi %s3042_s27, %s3652_s27   ;;  %s2976_s26 = sphi %s3040_s26, %s3651_s26   ;;  %s2972_s25 = sphi %s3038_s25, %s3650_s25   ;;  %s2968_s24 = sphi %s3036_s24, %s3649_s24  }
   0x5   : > { %p27_p0 = scmp.ge.s32.totalorder %s26_s8, 2  ;;  %p45_p1 = scmp.ne.s32.totalorder %s2972_s25, %s2968_s24 }
   0x6   : > { %p46_p2 = scmp.eq.s32.totalorder %s2992_s30, 0  ;;  %s38_s13 = sadd.s32 1, %s2972_s25 }
   0x7   : > { %s3656_s8 = smov (%p27_p0, %s26_s8), 0  ;;  %s3658_s9 = smov (!%p27_p0, %s29_s9), %s2988_s29 }
   0x8   : > { %p47_p3 = por %p46_p2, %p45_p1  ;;  %p31_p4 = scmp.ge.s32.totalorder %s3658_s9, 4 }
   0x9   : > { %s34_s10 = ssub.s32 %s2984_s28, %s3656_s8  ;;  %p2550_p6 = scmp.ge.s32.totalorder %s2992_s30, 8 }
   0xa   : > { %s3660_s9 = smov (%p31_p4, %s3658_s9), 0 }
   0xb   : > { %s33_s11 = ssub.s32 %s2988_s29, %s3660_s9  ;;  %245 = sbr.rel (%p2550_p6) target bundleno = 55 (0x37), region = 32 }
   0xc   : > { %s35_s12 = sor.u32 %s34_s10, %s33_s11 }
   0xd   : > { %p36_p5 = scmp.eq.s32.totalorder %s35_s12, 0 }
   0xf   : > { %s3087_s14 = scalar_select %p36_p5, %s2972_s25, %s38_s13  }
  0x10   : > { %248 = sbr.rel (!%p47_p3) target bundleno = 55 (0x37), region = 36  ;;  %s250_s15 = sand.u32 (%p47_p3), 1, %s2972_s25  }
  0x11   : > { %s2553_s16 = sshll.u32 (%p47_p3), %s2984_s28, 2  ;;  %s2551_s17 = sshll.u32 (%p47_p3), %s250_s15, 8 }
  0x12   : > { %s2742_s18 = sshll.u32 (%p47_p3), %s2988_s29, 6  ;;  %s3101_s10 = scalar_lea.vmem (%p47_p3), [#allocation3], %s2551_s17 }
  0x13   : > { %s256_s19 = sadd.s32 (%p47_p3), %s2742_s18, %s2553_s16 }
  0x14   : > { %s2555_s20 = sshll.u32 (%p47_p3), %s256_s19, 3 }
  0x15   : > { %s3096_s23 = scalar_lea.vmem %s3641_s0, %s2555_s20 }
  0x16   : > { %v271_v0 = vld [vmem:[%s3096_s23] sm:$0xff]  ;;  %v273_v1 = vld [vmem:[%s3096_s23 + $0x8] sm:$0xff]  ;;  %v275_v2 = vld [vmem:[%s3096_s23 + $0x10] sm:$0xff] }
  0x17   : > { %272 = vst [vmem:[%s3101_s10] sm:$0xff] %v271_v0  ;;  %v277_v3 = vld [vmem:[%s3096_s23 + $0x18] sm:$0xff]  ;;  %v279_v4 = vld [vmem:[%s3096_s23 + $0x40] sm:$0xff]  ;;  %v281_v5 = vld [vmem:[%s3096_s23 + $0x48] sm:$0xff] }
  0x18   : > { %274 = vst [vmem:[%s3101_s10 + $0x8] sm:$0xff] %v273_v1  ;;  %v283_v6 = vld [vmem:[%s3096_s23 + $0x50] sm:$0xff]  ;;  %v285_v7 = vld [vmem:[%s3096_s23 + $0x58] sm:$0xff]  ;;  %v287_v8 = vld [vmem:[%s3096_s23 + $0x80] sm:$0xff] }
  0x19   : > { %276 = vst [vmem:[%s3101_s10 + $0x10] sm:$0xff] %v275_v2  ;;  %v289_v9 = vld [vmem:[%s3096_s23 + $0x88] sm:$0xff]  ;;  %v291_v10 = vld [vmem:[%s3096_s23 + $0x90] sm:$0xff]  ;;  %v293_v11 = vld [vmem:[%s3096_s23 + $0x98] sm:$0xff] }
  0x1a   : > { %278 = vst [vmem:[%s3101_s10 + $0x18] sm:$0xff] %v277_v3  ;;  %v295_v12 = vld [vmem:[%s3096_s23 + $0xc0] sm:$0xff]  ;;  %v297_v13 = vld [vmem:[%s3096_s23 + $0xc8] sm:$0xff]  ;;  %v299_v14 = vld [vmem:[%s3096_s23 + $0xd0] sm:$0xff] }
  0x1b   : > { %280 = vst [vmem:[%s3101_s10 + $0x20] sm:$0xff] %v279_v4  ;;  %v301_v15 = vld [vmem:[%s3096_s23 + $0xd8] sm:$0xff]  ;;  %v303_v16 = vld [vmem:[%s3096_s23 + $0x100] sm:$0xff]  ;;  %v305_v17 = vld [vmem:[%s3096_s23 + $0x108] sm:$0xff] }
  0x1c   : > { %282 = vst [vmem:[%s3101_s10 + $0x28] sm:$0xff] %v281_v5  ;;  %v307_v18 = vld [vmem:[%s3096_s23 + $0x110] sm:$0xff]  ;;  %v309_v19 = vld [vmem:[%s3096_s23 + $0x118] sm:$0xff]  ;;  %v311_v20 = vld [vmem:[%s3096_s23 + $0x140] sm:$0xff] }
  0x1d   : > { %284 = vst [vmem:[%s3101_s10 + $0x30] sm:$0xff] %v283_v6  ;;  %v313_v21 = vld [vmem:[%s3096_s23 + $0x148] sm:$0xff]  ;;  %v315_v22 = vld [vmem:[%s3096_s23 + $0x150] sm:$0xff]  ;;  %v317_v23 = vld [vmem:[%s3096_s23 + $0x158] sm:$0xff] }
  0x1e   : > { %286 = vst [vmem:[%s3101_s10 + $0x38] sm:$0xff] %v285_v7  ;;  %v319_v24 = vld [vmem:[%s3096_s23 + $0x180] sm:$0xff]  ;;  %v321_v25 = vld [vmem:[%s3096_s23 + $0x188] sm:$0xff]  ;;  %v323_v26 = vld [vmem:[%s3096_s23 + $0x190] sm:$0xff] }
  0x1f   : > { %288 = vst [vmem:[%s3101_s10 + $0x40] sm:$0xff] %v287_v8  ;;  %v325_v27 = vld [vmem:[%s3096_s23 + $0x198] sm:$0xff]  ;;  %v327_v28 = vld [vmem:[%s3096_s23 + $0x1c0] sm:$0xff]  ;;  %v329_v29 = vld [vmem:[%s3096_s23 + $0x1c8] sm:$0xff] }
  0x20   : > { %290 = vst [vmem:[%s3101_s10 + $0x48] sm:$0xff] %v289_v9  ;;  %v331_v30 = vld [vmem:[%s3096_s23 + $0x1d0] sm:$0xff]  ;;  %v333_v31 = vld [vmem:[%s3096_s23 + $0x1d8] sm:$0xff] }
  0x21   : > { %292 = vst [vmem:[%s3101_s10 + $0x50] sm:$0xff] %v291_v10 }
  0x22   : > { %294 = vst [vmem:[%s3101_s10 + $0x58] sm:$0xff] %v293_v11 }
  0x23   : > { %296 = vst [vmem:[%s3101_s10 + $0x60] sm:$0xff] %v295_v12 }
  0x24   : > { %298 = vst [vmem:[%s3101_s10 + $0x68] sm:$0xff] %v297_v13 }
  0x25   : > { %300 = vst [vmem:[%s3101_s10 + $0x70] sm:$0xff] %v299_v14 }
  0x26   : > { %302 = vst [vmem:[%s3101_s10 + $0x78] sm:$0xff] %v301_v15 }
  0x27   : > { %304 = vst [vmem:[%s3101_s10 + $0x80] sm:$0xff] %v303_v16 }
  0x28   : > { %306 = vst [vmem:[%s3101_s10 + $0x88] sm:$0xff] %v305_v17 }
  0x29   : > { %308 = vst [vmem:[%s3101_s10 + $0x90] sm:$0xff] %v307_v18 }
  0x2a   : > { %310 = vst [vmem:[%s3101_s10 + $0x98] sm:$0xff] %v309_v19 }
  0x2b   : > { %312 = vst [vmem:[%s3101_s10 + $0xa0] sm:$0xff] %v311_v20 }
  0x2c   : > { %314 = vst [vmem:[%s3101_s10 + $0xa8] sm:$0xff] %v313_v21 }
  0x2d   : > { %316 = vst [vmem:[%s3101_s10 + $0xb0] sm:$0xff] %v315_v22 }
  0x2e   : > { %318 = vst [vmem:[%s3101_s10 + $0xb8] sm:$0xff] %v317_v23 }
  0x2f   : > { %320 = vst [vmem:[%s3101_s10 + $0xc0] sm:$0xff] %v319_v24 }
  0x30   : > { %322 = vst [vmem:[%s3101_s10 + $0xc8] sm:$0xff] %v321_v25 }
  0x31   : > { %324 = vst [vmem:[%s3101_s10 + $0xd0] sm:$0xff] %v323_v26 }
  0x32   : > { %326 = vst [vmem:[%s3101_s10 + $0xd8] sm:$0xff] %v325_v27 }
  0x33   : > { %328 = vst [vmem:[%s3101_s10 + $0xe0] sm:$0xff] %v327_v28 }
  0x34   : > { %330 = vst [vmem:[%s3101_s10 + $0xe8] sm:$0xff] %v329_v29 }
  0x35   : > { %332 = vst [vmem:[%s3101_s10 + $0xf0] sm:$0xff] %v331_v30 }
  0x36   : > { %334 = vst [vmem:[%s3101_s10 + $0xf8] sm:$0xff] %v333_v31 }
  0x37 PF: > { %p2556_p7 = scmp.ge.s32.totalorder %s2992_s30, 1  ;;  %p357_p8 = scmp.lt.s32.totalorder %s2992_s30, 9 }
  0x39   : > { %p358_p9 = pnand %p2556_p7, %p357_p8 }
  0x3a   : > { %s364_s11 = sand.u32 (!%p358_p9), 1, %s2968_s24   ;;  %s2558_s12 = sshll.u32 (!%p358_p9), %s2980_s27, 5 }
  0x3b   : > { %361 = sbr.rel (%p358_p9) target bundleno = 1182 (0x49e), region = 67  ;;  %s2557_s13 = sshll.u32 (!%p358_p9), %s364_s11, 8 }
  0x3c   : > { %p408_p10 = scmp.lt.s32.totalorder (!%p358_p9), %s2558_s12, 127  ;;  %s3183_s27 = scalar_lea.vmem (!%p358_p9), [#allocation3], %s2557_s13 }
  0x3d   : > { %p2564_p11 = scmp.ne.s32.totalorder (!%p358_p9), %s2976_s26, 0 }
  0x40   : > { %s3662_s12 = smov (!%p408_p10, %s2558_s12), 127  ;;  %429 = sbr.rel (%p2564_p11) target bundleno = 102 (0x66), region = 75 }
  0x41   : > { %s2559_s15 = sshll.u32 %s3662_s12, 3  ;;  %s2563_s16 = sshll.u32 %s3662_s12, 2 }
  0x42   : > { %s3171_s19 = scalar_lea.vmem %s3643_s2, %s2559_s15  ;;  %s3176_s22 = scalar_lea.vmem %s3644_s3, %s2559_s15 }
  0x43   : > { %s3181_s24 = scalar_lea.vmem %s3648_s7, %s2563_s16 }
  0x45   : > { %vm430_vm0 = vcmask 130048   ;;  %v2994_v32 = vmov 0.0  }
  0x46   : > { %431 = vst.msk [vmem:[#allocation2] sm:$0xff] %vm430_vm0, %v2994_v32 }
  0x47   : > { %432 = vst.msk [vmem:[#allocation2 + $0x8] sm:$0xff] %vm430_vm0, %v2994_v32 }
  0x48   : > { %433 = vst.msk [vmem:[#allocation2 + $0x10] sm:$0xff] %vm430_vm0, %v2994_v32 }
  0x49   : > { %434 = vst.msk [vmem:[#allocation2 + $0x18] sm:$0xff] %vm430_vm0, %v2994_v32 }
  0x4a   : > { %435 = vst.msk [vmem:[#allocation2 + $0x20] sm:$0xff] %vm430_vm0, %v2994_v32 }
  0x4b   : > { %436 = vst.msk [vmem:[#allocation2 + $0x28] sm:$0xff] %vm430_vm0, %v2994_v32 }
  0x4c   : > { %437 = vst.msk [vmem:[#allocation2 + $0x30] sm:$0xff] %vm430_vm0, %v2994_v32 }
  0x4d   : > { %438 = vst.msk [vmem:[#allocation2 + $0x38] sm:$0xff] %vm430_vm0, %v2994_v32 }
  0x4e   : > { %439 = vst.msk [vmem:[#allocation2 + $0x40] sm:$0xff] %vm430_vm0, %v2994_v32 }
  0x4f   : > { %440 = vst.msk [vmem:[#allocation2 + $0x48] sm:$0xff] %vm430_vm0, %v2994_v32 }
  0x50   : > { %441 = vst.msk [vmem:[#allocation2 + $0x50] sm:$0xff] %vm430_vm0, %v2994_v32 }
  0x51   : > { %442 = vst.msk [vmem:[#allocation2 + $0x58] sm:$0xff] %vm430_vm0, %v2994_v32 }
  0x52   : > { %443 = vst.msk [vmem:[#allocation2 + $0x60] sm:$0xff] %vm430_vm0, %v2994_v32 }
  0x53   : > { %444 = vst.msk [vmem:[#allocation2 + $0x68] sm:$0xff] %vm430_vm0, %v2994_v32 }
  0x54   : > { %445 = vst.msk [vmem:[#allocation2 + $0x70] sm:$0xff] %vm430_vm0, %v2994_v32 }
  0x55   : > { %446 = vst.msk [vmem:[#allocation2 + $0x78] sm:$0xff] %vm430_vm0, %v2994_v32 }
  0x56   : > { %447 = vst.msk [vmem:[#allocation2 + $0x80] sm:$0xff] %vm430_vm0, %v2994_v32 }
  0x57   : > { %448 = vst.msk [vmem:[#allocation2 + $0x88] sm:$0xff] %vm430_vm0, %v2994_v32 }
  0x58   : > { %449 = vst.msk [vmem:[#allocation2 + $0x90] sm:$0xff] %vm430_vm0, %v2994_v32 }
  0x59   : > { %450 = vst.msk [vmem:[#allocation2 + $0x98] sm:$0xff] %vm430_vm0, %v2994_v32 }
  0x5a   : > { %451 = vst.msk [vmem:[#allocation2 + $0xa0] sm:$0xff] %vm430_vm0, %v2994_v32 }
  0x5b   : > { %452 = vst.msk [vmem:[#allocation2 + $0xa8] sm:$0xff] %vm430_vm0, %v2994_v32 }
  0x5c   : > { %453 = vst.msk [vmem:[#allocation2 + $0xb0] sm:$0xff] %vm430_vm0, %v2994_v32 }
  0x5d   : > { %454 = vst.msk [vmem:[#allocation2 + $0xb8] sm:$0xff] %vm430_vm0, %v2994_v32 }
  0x5e   : > { %455 = vst.msk [vmem:[#allocation2 + $0xc0] sm:$0xff] %vm430_vm0, %v2994_v32 }
  0x5f   : > { %456 = vst.msk [vmem:[#allocation2 + $0xc8] sm:$0xff] %vm430_vm0, %v2994_v32 }
  0x60   : > { %457 = vst.msk [vmem:[#allocation2 + $0xd0] sm:$0xff] %vm430_vm0, %v2994_v32 }
  0x61   : > { %458 = vst.msk [vmem:[#allocation2 + $0xd8] sm:$0xff] %vm430_vm0, %v2994_v32 }
  0x62   : > { %459 = vst.msk [vmem:[#allocation2 + $0xe0] sm:$0xff] %vm430_vm0, %v2994_v32 }
  0x63   : > { %460 = vst.msk [vmem:[#allocation2 + $0xe8] sm:$0xff] %vm430_vm0, %v2994_v32 }
  0x64   : > { %461 = vst.msk [vmem:[#allocation2 + $0xf0] sm:$0xff] %vm430_vm0, %v2994_v32 }
  0x65   : > { %462 = vst.msk [vmem:[#allocation2 + $0xf8] sm:$0xff] %vm430_vm0, %v2994_v32 }
  0x66 PF: > { %s2565_s11 = sshll.u32 %s2976_s26, 9  ;;  %v3245_v53 = vld [vmem:[%s3183_s27] sm:$0xff]  ;;  %v3248_v54 = vld [vmem:[%s3183_s27 + $0x8] sm:$0xff]  ;;  %v3253_v57 = vld [vmem:[%s3183_s27 + $0x10] sm:$0xff]  ;;  %vm1496_vm1 = vcmask 130048   ;;  %p2695_p12 = scmp.ne.s32.totalorder %s2976_s26, 1 }
  0x67   : > { %s816_s12 = sshra.s32 %s2565_s11, 3  ;;  %v466_v60 = vld [vmem:[%s3183_s27 + $0x18] sm:$0xff]  ;;  %v495_v61 = vunpack.c.0.s8 %v3245_v53  ;;  %v499_v62 = vunpack.c.1.s8 %v3245_v53  ;;  %v496_v63 = vunpack.c.0.s8 %v3248_v54  ;;  %v500_v0 = vunpack.c.1.s8 %v3248_v54 }
  0x68   : > { %s2566_s13 = sshll.u32 %s816_s12, 2  ;;  %v497_v3 = vunpack.c.0.s8 %v3253_v57  ;;  %v501_v4 = vunpack.c.1.s8 %v3253_v57  ;;  %v498_v5 = vunpack.c.0.s8 %v466_v60  ;;  %v502_v6 = vunpack.c.1.s8 %v466_v60 }
  0x69   : > { %s3222_s17 = scalar_lea.vmem %s3642_s1, %s2566_s13  ;;  %v623_v9 = vcvt.s32.f32 %v495_v61  ;;  %v627_v10 = vcvt.s32.f32 %v499_v62  ;;  %v624_v11 = vcvt.s32.f32 %v496_v63  ;;  %v628_v12 = vcvt.s32.f32 %v500_v0 }
  0x6a   : > { %v2750_v33 = vld [vmem:[%s3222_s17 + $0x38] sm:$0xff]  ;;  %v2749_v37 = vld [vmem:[%s3222_s17 + $0x30] sm:$0xff]  ;;  %v2748_v41 = vld [vmem:[%s3222_s17 + $0x28] sm:$0xff]  ;;  %v625_v15 = vcvt.s32.f32 %v497_v3  ;;  %v629_v16 = vcvt.s32.f32 %v501_v4  ;;  %v626_v17 = vcvt.s32.f32 %v498_v5  ;;  %v630_v18 = vcvt.s32.f32 %v502_v6 }
  0x6b   : > { %v2758_v34 = vld [vmem:[%s3222_s17 + $0x78] sm:$0xff]  ;;  %1108 = vmatpush.bf16.msra.mxu0 %v2750_v33  ;;  %v2757_v38 = vld [vmem:[%s3222_s17 + $0x70] sm:$0xff]  ;;  %v2756_v42 = vld [vmem:[%s3222_s17 + $0x68] sm:$0xff]  ;;  %v751_v21 = vpack.c.bf16 %v627_v10, %v623_v9  ;;  %v752_v22 = vpack.c.bf16 %v628_v12, %v624_v11  ;;  %v503_v25 = vunpack.c.2.s8 %v3245_v53  ;;  %v507_v26 = vunpack.c.3.s8 %v3245_v53 }
  0x6c   : > { %v2766_v35 = vld [vmem:[%s3222_s17 + $0xb8] sm:$0xff]  ;;  %1197 = vmatpush.bf16.msra.mxu1 %v2758_v34  ;;  %v2765_v39 = vld [vmem:[%s3222_s17 + $0xb0] sm:$0xff]  ;;  %v2764_v43 = vld [vmem:[%s3222_s17 + $0xa8] sm:$0xff]  ;;  %v753_v23 = vpack.c.bf16 %v629_v16, %v625_v15  ;;  %v754_v24 = vpack.c.bf16 %v630_v18, %v626_v17  ;;  %v504_v27 = vunpack.c.2.s8 %v3248_v54  ;;  %v508_v28 = vunpack.c.3.s8 %v3248_v54 }
  0x6d   : > { %v2774_v36 = vld [vmem:[%s3222_s17 + $0xf8] sm:$0xff]  ;;  %1286 = vmatpush.bf16.msra.mxu2 %v2766_v35  ;;  %v2773_v40 = vld [vmem:[%s3222_s17 + $0xf0] sm:$0xff]  ;;  %v2772_v44 = vld [vmem:[%s3222_s17 + $0xe8] sm:$0xff]  ;;  %v505_v29 = vunpack.c.2.s8 %v3253_v57  ;;  %v509_v30 = vunpack.c.3.s8 %v3253_v57  ;;  %v506_v31 = vunpack.c.2.s8 %v466_v60  ;;  %v510_v32 = vunpack.c.3.s8 %v466_v60 }
  0x6e   : > { %1375 = vmatpush.bf16.msra.mxu3 %v2774_v36  ;;  %v2747_v45 = vld [vmem:[%s3222_s17 + $0x20] sm:$0xff]  ;;  %v2746_v49 = vld [vmem:[%s3222_s17 + $0x18] sm:$0xff]  ;;  %v2745_v55 = vld [vmem:[%s3222_s17 + $0x10] sm:$0xff]  ;;  %v631_v33 = vcvt.s32.f32 %v503_v25  ;;  %v635_v34 = vcvt.s32.f32 %v507_v26  ;;  %v632_v35 = vcvt.s32.f32 %v504_v27  ;;  %v636_v36 = vcvt.s32.f32 %v508_v28 }
  0x6f   : > { %1109 = vmatpush.bf16.msra.mxu0 %v2749_v37  ;;  %v2755_v46 = vld [vmem:[%s3222_s17 + $0x60] sm:$0xff]  ;;  %v2754_v50 = vld [vmem:[%s3222_s17 + $0x58] sm:$0xff]  ;;  %v2753_v56 = vld [vmem:[%s3222_s17 + $0x50] sm:$0xff]  ;;  %v633_v37 = vcvt.s32.f32 %v505_v29 }
  0x70   : > { %1198 = vmatpush.bf16.msra.mxu1 %v2757_v38  ;;  %v2763_v47 = vld [vmem:[%s3222_s17 + $0xa0] sm:$0xff]  ;;  %v2762_v51 = vld [vmem:[%s3222_s17 + $0x98] sm:$0xff]  ;;  %v2761_v58 = vld [vmem:[%s3222_s17 + $0x90] sm:$0xff]  ;;  %v637_v38 = vcvt.s32.f32 %v509_v30 }
  0x71   : > { %1287 = vmatpush.bf16.msra.mxu2 %v2765_v39  ;;  %v2771_v48 = vld [vmem:[%s3222_s17 + $0xe0] sm:$0xff]  ;;  %v2770_v52 = vld [vmem:[%s3222_s17 + $0xd8] sm:$0xff]  ;;  %v2769_v59 = vld [vmem:[%s3222_s17 + $0xd0] sm:$0xff]  ;;  %v634_v39 = vcvt.s32.f32 %v506_v31 }
  0x72   : > { %1376 = vmatpush.bf16.msra.mxu3 %v2773_v40  ;;  %v2744_v1 = vld [vmem:[%s3222_s17 + $0x8] sm:$0xff]  ;;  %v2743_v13 = vld [vmem:[%s3222_s17] sm:$0xff]  ;;  %v638_v40 = vcvt.s32.f32 %v510_v32  ;;  %v473_v27 = vld [vmem:[%s3183_s27 + $0x50] sm:$0xff] }
  0x73   : > { %1110 = vmatpush.bf16.msra.mxu0 %v2748_v41  ;;  %v2752_v2 = vld [vmem:[%s3222_s17 + $0x48] sm:$0xff]  ;;  %v2751_v14 = vld [vmem:[%s3222_s17 + $0x40] sm:$0xff]  ;;  %v755_v41 = vpack.c.bf16 %v635_v34, %v631_v33  ;;  %v474_v28 = vld [vmem:[%s3183_s27 + $0x58] sm:$0xff]  ;;  %v529_v33 = vunpack.c.0.s8 %v473_v27  ;;  %v533_v34 = vunpack.c.1.s8 %v473_v27 }
  0x74   : > { %1199 = vmatpush.bf16.msra.mxu1 %v2756_v42  ;;  %v2760_v7 = vld [vmem:[%s3222_s17 + $0x88] sm:$0xff]  ;;  %v2759_v19 = vld [vmem:[%s3222_s17 + $0x80] sm:$0xff]  ;;  %v756_v42 = vpack.c.bf16 %v636_v36, %v632_v35  ;;  %v530_v35 = vunpack.c.0.s8 %v474_v28  ;;  %v534_v36 = vunpack.c.1.s8 %v474_v28 }
  0x75   : > { %1288 = vmatpush.bf16.msra.mxu2 %v2764_v43  ;;  %v2768_v8 = vld [vmem:[%s3222_s17 + $0xc8] sm:$0xff]  ;;  %v2767_v20 = vld [vmem:[%s3222_s17 + $0xc0] sm:$0xff]  ;;  %v757_v43 = vpack.c.bf16 %v637_v38, %v633_v37 }
  0x76   : > { %1377 = vmatpush.bf16.msra.mxu3 %v2772_v44  ;;  %v758_v44 = vpack.c.bf16 %v638_v40, %v634_v39  ;;  %v471_v25 = vld [vmem:[%s3183_s27 + $0x40] sm:$0xff]  ;;  %v472_v26 = vld [vmem:[%s3183_s27 + $0x48] sm:$0xff] }
  0x77   : > { %1111 = vmatpush.bf16.msra.mxu0 %v2747_v45  ;;  %v467_v45 = vld [vmem:[%s3183_s27 + $0x20] sm:$0xff]  ;;  %v527_v29 = vunpack.c.0.s8 %v471_v25  ;;  %v531_v30 = vunpack.c.1.s8 %v471_v25  ;;  %v528_v31 = vunpack.c.0.s8 %v472_v26  ;;  %v532_v32 = vunpack.c.1.s8 %v472_v26 }
  0x78   : > { %1200 = vmatpush.bf16.msra.mxu1 %v2755_v46  ;;  %v468_v46 = vld [vmem:[%s3183_s27 + $0x28] sm:$0xff]  ;;  %v519_v5 = vunpack.c.2.s8 %v467_v45  ;;  %v523_v6 = vunpack.c.3.s8 %v467_v45 }
  0x79   : > { %1289 = vmatpush.bf16.msra.mxu2 %v2763_v47  ;;  %v469_v47 = vld [vmem:[%s3183_s27 + $0x30] sm:$0xff]  ;;  %v655_v37 = vcvt.s32.f32 %v527_v29  ;;  %v659_v38 = vcvt.s32.f32 %v531_v30  ;;  %v656_v39 = vcvt.s32.f32 %v528_v31  ;;  %v660_v40 = vcvt.s32.f32 %v532_v32 }
  0x7a   : > { %1378 = vmatpush.bf16.msra.mxu3 %v2771_v48  ;;  %v470_v48 = vld [vmem:[%s3183_s27 + $0x38] sm:$0xff]  ;;  %v513_v53 = vunpack.c.0.s8 %v469_v47  ;;  %v517_v54 = vunpack.c.1.s8 %v469_v47  ;;  %v521_v9 = vunpack.c.2.s8 %v469_v47  ;;  %v525_v10 = vunpack.c.3.s8 %v469_v47 }
  0x7b   : > { %1112 = vmatpush.bf16.msra.mxu0 %v2746_v49  ;;  %v511_v49 = vunpack.c.0.s8 %v467_v45  ;;  %v522_v11 = vunpack.c.2.s8 %v470_v48  ;;  %v526_v12 = vunpack.c.3.s8 %v470_v48 }
  0x7c   : > { %1201 = vmatpush.bf16.msra.mxu1 %v2754_v50  ;;  %v515_v50 = vunpack.c.1.s8 %v467_v45  ;;  %v641_v61 = vcvt.s32.f32 %v513_v53  ;;  %v645_v62 = vcvt.s32.f32 %v517_v54  ;;  %v649_v17 = vcvt.s32.f32 %v521_v9 }
  0x7d   : > { %1290 = vmatpush.bf16.msra.mxu2 %v2762_v51  ;;  %v512_v51 = vunpack.c.0.s8 %v468_v46  ;;  %v639_v57 = vcvt.s32.f32 %v511_v49  ;;  %v653_v18 = vcvt.s32.f32 %v525_v10  ;;  %v767_v45 = vpack.c.bf16 %v659_v38, %v655_v37 }
  0x7e   : > { %1379 = vmatpush.bf16.msra.mxu3 %v2770_v52  ;;  %v516_v52 = vunpack.c.1.s8 %v468_v46  ;;  %v761_v3 = vpack.c.bf16 %v645_v62, %v641_v61  ;;  %v535_v49 = vunpack.c.2.s8 %v471_v25  ;;  %v537_v53 = vunpack.c.2.s8 %v473_v27 }
  0x7f   : > { %1113 = vmatpush.bf16.msra.mxu0 %v2745_v55  ;;  %v514_v55 = vunpack.c.0.s8 %v470_v48  ;;  %v541_v54 = vunpack.c.3.s8 %v473_v27 }
  0x80   : > { %1202 = vmatpush.bf16.msra.mxu1 %v2753_v56  ;;  %v518_v56 = vunpack.c.1.s8 %v470_v48  ;;  %v644_v60 = vcvt.s32.f32 %v516_v52  ;;  %v540_v52 = vunpack.c.3.s8 %v472_v26  ;;  %v665_v61 = vcvt.s32.f32 %v537_v53 }
  0x81   : > { %1291 = vmatpush.bf16.msra.mxu2 %v2761_v58  ;;  %v643_v58 = vcvt.s32.f32 %v515_v50  ;;  %v642_v63 = vcvt.s32.f32 %v514_v55  ;;  %v539_v50 = vunpack.c.3.s8 %v471_v25  ;;  %v538_v55 = vunpack.c.2.s8 %v474_v28 }
  0x82   : > { %1380 = vmatpush.bf16.msra.mxu3 %v2769_v59  ;;  %v640_v59 = vcvt.s32.f32 %v512_v51  ;;  %v646_v0 = vcvt.s32.f32 %v518_v56  ;;  %v536_v51 = vunpack.c.2.s8 %v472_v26  ;;  %v542_v56 = vunpack.c.3.s8 %v474_v28 }
  0x83   : > { %1114 = vmatpush.bf16.msra.mxu0 %v2744_v1  ;;  %v759_v1 = vpack.c.bf16 %v643_v58, %v639_v57  ;;  %v663_v57 = vcvt.s32.f32 %v535_v49  ;;  %v667_v58 = vcvt.s32.f32 %v539_v50  ;;  %v669_v62 = vcvt.s32.f32 %v541_v54  ;;  %v479_v49 = vld [vmem:[%s3183_s27 + $0x80] sm:$0xff]  ;;  %v480_v50 = vld [vmem:[%s3183_s27 + $0x88] sm:$0xff] }
  0x84   : > { %1203 = vmatpush.bf16.msra.mxu1 %v2752_v2  ;;  %v760_v2 = vpack.c.bf16 %v644_v60, %v640_v59  ;;  %v762_v4 = vpack.c.bf16 %v646_v0, %v642_v63  ;;  %v664_v59 = vcvt.s32.f32 %v536_v51  ;;  %v668_v60 = vcvt.s32.f32 %v540_v52  ;;  %v481_v51 = vld [vmem:[%s3183_s27 + $0x90] sm:$0xff]  ;;  %v482_v52 = vld [vmem:[%s3183_s27 + $0x98] sm:$0xff] }
  0x85   : > { %1292 = vmatpush.bf16.msra.mxu2 %v2760_v7  ;;  %v520_v7 = vunpack.c.2.s8 %v468_v46  ;;  %v666_v63 = vcvt.s32.f32 %v538_v55  ;;  %v670_v0 = vcvt.s32.f32 %v542_v56  ;;  %v559_v53 = vunpack.c.0.s8 %v479_v49 }
  0x86   : > { %1381 = vmatpush.bf16.msra.mxu3 %v2768_v8  ;;  %v524_v8 = vunpack.c.3.s8 %v468_v46  ;;  %v768_v46 = vpack.c.bf16 %v660_v40, %v656_v39  ;;  %v563_v54 = vunpack.c.1.s8 %v479_v49  ;;  %v560_v55 = vunpack.c.0.s8 %v480_v50 }
  0x87   : > { %1115 = vmatpush.bf16.msra.mxu0 %v2743_v13  ;;  %v647_v13 = vcvt.s32.f32 %v519_v5  ;;  %v648_v15 = vcvt.s32.f32 %v520_v7  ;;  %v475_v5 = vld [vmem:[%s3183_s27 + $0x60] sm:$0xff]  ;;  %v477_v7 = vld [vmem:[%s3183_s27 + $0x70] sm:$0xff]  ;;  %v564_v56 = vunpack.c.1.s8 %v480_v50 }
  0x88   : > { %1204 = vmatpush.bf16.msra.mxu1 %v2751_v14  ;;  %v651_v14 = vcvt.s32.f32 %v523_v6  ;;  %v652_v16 = vcvt.s32.f32 %v524_v8  ;;  %v476_v6 = vld [vmem:[%s3183_s27 + $0x68] sm:$0xff]  ;;  %v478_v8 = vld [vmem:[%s3183_s27 + $0x78] sm:$0xff]  ;;  %v543_v9 = vunpack.c.0.s8 %v475_v5  ;;  %v547_v10 = vunpack.c.1.s8 %v475_v5 }
  0x89   : > { %1293 = vmatpush.bf16.msra.mxu2 %v2759_v19  ;;  %v650_v19 = vcvt.s32.f32 %v522_v11  ;;  %v544_v11 = vunpack.c.0.s8 %v476_v6  ;;  %v551_v29 = vunpack.c.2.s8 %v475_v5  ;;  %v555_v30 = vunpack.c.3.s8 %v475_v5 }
  0x8a   : > { %1382 = vmatpush.bf16.msra.mxu3 %v2767_v20  ;;  %1116 = vmatmul.bf16.vlgmr.msra.gmra.mxu0 %v751_v21  ;;  %v654_v20 = vcvt.s32.f32 %v526_v12  ;;  %v763_v21 = vpack.c.bf16 %v651_v14, %v647_v13  ;;  %v548_v12 = vunpack.c.1.s8 %v476_v6  ;;  %v545_v13 = vunpack.c.0.s8 %v477_v7 }
  0x8b   : > { %1205 = vmatmul.bf16.vlgmr.msra.gmra.mxu1 %v752_v22  ;;  %v764_v22 = vpack.c.bf16 %v652_v16, %v648_v15  ;;  %v549_v14 = vunpack.c.1.s8 %v477_v7  ;;  %v546_v15 = vunpack.c.0.s8 %v478_v8  ;;  %v550_v16 = vunpack.c.1.s8 %v478_v8 }
  0x8c   : > { %1294 = vmatmul.bf16.vlgmr.msra.gmra.mxu2 %v753_v23  ;;  %v765_v23 = vpack.c.bf16 %v653_v18, %v649_v17  ;;  %v671_v17 = vcvt.s32.f32 %v543_v9  ;;  %v675_v18 = vcvt.s32.f32 %v547_v10  ;;  %v552_v31 = vunpack.c.2.s8 %v476_v6 }
  0x8d   : > { %1383 = vmatmul.bf16.vlgmr.msra.gmra.mxu3 %v754_v24  ;;  %v766_v24 = vpack.c.bf16 %v654_v20, %v650_v19  ;;  %v672_v19 = vcvt.s32.f32 %v544_v11  ;;  %v676_v20 = vcvt.s32.f32 %v548_v12  ;;  %v556_v32 = vunpack.c.3.s8 %v476_v6 }
  0x8e   : > { %v775_v25 = vpack.c.bf16 %v675_v18, %v671_v17  ;;  %v679_v37 = vcvt.s32.f32 %v551_v29  ;;  %v683_v38 = vcvt.s32.f32 %v555_v30  ;;  %v680_v39 = vcvt.s32.f32 %v552_v31 }
  0x8f   : > { %v776_v26 = vpack.c.bf16 %v676_v20, %v672_v19  ;;  %v684_v40 = vcvt.s32.f32 %v556_v32  ;;  %v567_v12 = vunpack.c.2.s8 %v479_v49  ;;  %v572_v17 = vunpack.c.3.s8 %v480_v50 }
  0x90   : > { %v569_v18 = vunpack.c.2.s8 %v481_v51 }
  0x91   : > { %v700_v30 = vcvt.s32.f32 %v572_v17 }
  0x92   : > { %v697_v31 = vcvt.s32.f32 %v569_v18 }
  0x9a   : > { %1121 = vmatmul.bf16.gmra.mxu0 %v755_v41  ;;  %v657_v41 = vcvt.s32.f32 %v529_v33  ;;  %v553_v33 = vunpack.c.2.s8 %v477_v7 }
  0x9b   : > { %1210 = vmatmul.bf16.gmra.mxu1 %v756_v42  ;;  %v661_v42 = vcvt.s32.f32 %v533_v34  ;;  %v557_v34 = vunpack.c.3.s8 %v477_v7 }
  0x9c   : > { %1299 = vmatmul.bf16.gmra.mxu2 %v757_v43  ;;  %v658_v43 = vcvt.s32.f32 %v530_v35  ;;  %v554_v35 = vunpack.c.2.s8 %v478_v8 }
  0x9d   : > { %1388 = vmatmul.bf16.gmra.mxu3 %v758_v44  ;;  %v662_v44 = vcvt.s32.f32 %v534_v36  ;;  %v769_v47 = vpack.c.bf16 %v661_v42, %v657_v41  ;;  %v558_v36 = vunpack.c.3.s8 %v478_v8  ;;  %v681_v41 = vcvt.s32.f32 %v553_v33 }
  0x9e   : > { %v685_v42 = vcvt.s32.f32 %v557_v34 }
  0x9f   : > { %v770_v48 = vpack.c.bf16 %v662_v44, %v658_v43  ;;  %v682_v43 = vcvt.s32.f32 %v554_v35  ;;  %v686_v44 = vcvt.s32.f32 %v558_v36 }
  0xaa   : > { %1126 = vmatmul.bf16.gmra.mxu0 %v759_v1  ;;  %v771_v1 = vpack.c.bf16 %v667_v58, %v663_v57  ;;  %v561_v57 = vunpack.c.0.s8 %v481_v51  ;;  %v565_v58 = vunpack.c.1.s8 %v481_v51 }
  0xab   : > { %1215 = vmatmul.bf16.gmra.mxu1 %v760_v2  ;;  %v772_v2 = vpack.c.bf16 %v668_v60, %v664_v59  ;;  %v562_v59 = vunpack.c.0.s8 %v482_v52  ;;  %v566_v60 = vunpack.c.1.s8 %v482_v52 }
  0xac   : > { %1304 = vmatmul.bf16.gmra.mxu2 %v761_v3  ;;  %v773_v3 = vpack.c.bf16 %v669_v62, %v665_v61  ;;  %v687_v61 = vcvt.s32.f32 %v559_v53  ;;  %v691_v62 = vcvt.s32.f32 %v563_v54  ;;  %v3305_v53 = vld [vmem:[%s3183_s27 + $0xb8] sm:$0xff] }
  0xad   : > { %1393 = vmatmul.bf16.gmra.mxu3 %v762_v4  ;;  %v774_v4 = vpack.c.bf16 %v670_v0, %v666_v63  ;;  %v688_v63 = vcvt.s32.f32 %v560_v55  ;;  %v692_v0 = vcvt.s32.f32 %v564_v56 }
  0xae   : > { %v783_v5 = vpack.c.bf16 %v691_v62, %v687_v61 }
  0xaf   : > { %v784_v6 = vpack.c.bf16 %v692_v0, %v688_v63 }
  0xba   : > { %1131 = vmatmul.bf16.gmra.mxu0 %v763_v21  ;;  %v673_v21 = vcvt.s32.f32 %v545_v13 }
  0xbb   : > { %1220 = vmatmul.bf16.gmra.mxu1 %v764_v22  ;;  %v677_v22 = vcvt.s32.f32 %v549_v14 }
  0xbc   : > { %1309 = vmatmul.bf16.gmra.mxu2 %v765_v23  ;;  %v674_v23 = vcvt.s32.f32 %v546_v15  ;;  %v571_v15 = vunpack.c.3.s8 %v479_v49 }
  0xbd   : > { %1398 = vmatmul.bf16.gmra.mxu3 %v766_v24  ;;  %v678_v24 = vcvt.s32.f32 %v550_v16  ;;  %v777_v27 = vpack.c.bf16 %v677_v22, %v673_v21  ;;  %v568_v16 = vunpack.c.2.s8 %v480_v50  ;;  %v573_v22 = vunpack.c.3.s8 %v481_v51  ;;  %v3299_v51 = vld [vmem:[%s3183_s27 + $0xa8] sm:$0xff] }
  0xbf   : > { %v778_v28 = vpack.c.bf16 %v678_v24, %v674_v23  ;;  %v570_v23 = vunpack.c.2.s8 %v482_v52  ;;  %v574_v24 = vunpack.c.3.s8 %v482_v52  ;;  %v696_v29 = vcvt.s32.f32 %v568_v16  ;;  %v3302_v52 = vld [vmem:[%s3183_s27 + $0xb0] sm:$0xff] }
  0xc0   : > { %v701_v33 = vcvt.s32.f32 %v573_v22  ;;  %v581_v0 = vunpack.c.1.s8 %v3302_v52 }
  0xc1   : > { %v698_v34 = vcvt.s32.f32 %v570_v23  ;;  %v702_v35 = vcvt.s32.f32 %v574_v24  ;;  %v887_v24 = vld [vmem:[#allocation2 + $0x18] sm:$0xff] }
  0xca   : > { %1136 = vmatmul.bf16.gmra.mxu0 %v767_v45  ;;  %v779_v45 = vpack.c.bf16 %v683_v38, %v679_v37 }
  0xcb   : > { %1225 = vmatmul.bf16.gmra.mxu1 %v768_v46  ;;  %v780_v46 = vpack.c.bf16 %v684_v40, %v680_v39  ;;  %v788_v40 = vpack.c.bf16 %v700_v30, %v696_v29 }
  0xcc   : > { %1314 = vmatmul.bf16.gmra.mxu2 %v769_v47  ;;  %v781_v47 = vpack.c.bf16 %v685_v42, %v681_v41 }
  0xcd   : > { %1403 = vmatmul.bf16.gmra.mxu3 %v770_v48  ;;  %v782_v48 = vpack.c.bf16 %v686_v44, %v682_v43  ;;  %v789_v44 = vpack.c.bf16 %v701_v33, %v697_v31  ;;  %v588_v33 = vunpack.c.3.s8 %v3299_v51 }
  0xda   : > { %1141 = vmatmul.bf16.gmra.mxu0 %v771_v1  ;;  %v689_v1 = vcvt.s32.f32 %v561_v57 }
  0xdb   : > { %1230 = vmatmul.bf16.gmra.mxu1 %v772_v2  ;;  %v693_v2 = vcvt.s32.f32 %v565_v58  ;;  %v576_v58 = vunpack.c.0.s8 %v3299_v51 }
  0xdc   : > { %1319 = vmatmul.bf16.gmra.mxu2 %v773_v3  ;;  %v690_v3 = vcvt.s32.f32 %v562_v59  ;;  %v580_v59 = vunpack.c.1.s8 %v3299_v51 }
  0xdd   : > { %1408 = vmatmul.bf16.gmra.mxu3 %v774_v4  ;;  %v694_v4 = vcvt.s32.f32 %v566_v60  ;;  %v785_v9 = vpack.c.bf16 %v693_v2, %v689_v1  ;;  %v577_v60 = vunpack.c.0.s8 %v3302_v52  ;;  %v578_v1 = vunpack.c.0.s8 %v3305_v53 }
  0xde   : > { %v582_v2 = vunpack.c.1.s8 %v3305_v53 }
  0xdf   : > { %v786_v10 = vpack.c.bf16 %v694_v4, %v690_v3  ;;  %v886_v3 = vld [vmem:[#allocation2 + $0x10] sm:$0xff] }
  0xea   : > { %1146 = vmatmul.bf16.gmra.mxu0 %v775_v25  ;;  %v884_v25 = vld [vmem:[#allocation2] sm:$0xff] }
  0xeb   : > { %1235 = vmatmul.bf16.gmra.mxu1 %v776_v26 }
  0xec   : > { %1324 = vmatmul.bf16.gmra.mxu2 %v777_v27  ;;  %v695_v27 = vcvt.s32.f32 %v567_v12  ;;  %v706_v12 = vcvt.s32.f32 %v578_v1 }
  0xed   : > { %1413 = vmatmul.bf16.gmra.mxu3 %v778_v28  ;;  %v699_v28 = vcvt.s32.f32 %v571_v15 }
  0xef   : > { %v787_v39 = vpack.c.bf16 %v699_v28, %v695_v27 }
  0xfa   : > { %1151 = vmatmul.bf16.gmra.mxu0 %v779_v45  ;;  %v790_v45 = vpack.c.bf16 %v702_v35, %v698_v34  ;;  %v585_v34 = vunpack.c.2.s8 %v3302_v52 }
  0xfb   : > { %1240 = vmatmul.bf16.gmra.mxu1 %v780_v46  ;;  %v885_v46 = vld [vmem:[#allocation2 + $0x8] sm:$0xff] }
  0xfc   : > { %1329 = vmatmul.bf16.gmra.mxu2 %v781_v47 }
  0xfd   : > { %1418 = vmatmul.bf16.gmra.mxu3 %v782_v48  ;;  %v3296_v48 = vld [vmem:[%s3183_s27 + $0xa0] sm:$0xff] }
  0xfe   : > { %v575_v54 = vunpack.c.0.s8 %v3296_v48  ;;  %v579_v57 = vunpack.c.1.s8 %v3296_v48  ;;  %v583_v28 = vunpack.c.2.s8 %v3296_v48  ;;  %v587_v31 = vunpack.c.3.s8 %v3296_v48 }
 0x107   : > { %v1117_v7 = vpop.f32.mrf.mxu0 }
 0x108   : > { %v1206_v8 = vpop.f32.mrf.mxu1 }
 0x109   : > { %v1207_v11 = vadd.f32 %v1206_v8, %v1117_v7  ;;  %v704_v7 = vcvt.s32.f32 %v576_v58  ;;  %v708_v8 = vcvt.s32.f32 %v580_v59 }
 0x10a   : > { %1156 = vmatmul.bf16.gmra.mxu0 %v783_v5  ;;  %v703_v5 = vcvt.s32.f32 %v575_v54 }
 0x10b   : > { %1245 = vmatmul.bf16.gmra.mxu1 %v784_v6  ;;  %v707_v6 = vcvt.s32.f32 %v579_v57  ;;  %v792_v18 = vpack.c.bf16 %v708_v8, %v704_v7 }
 0x10c   : > { %1334 = vmatmul.bf16.gmra.mxu2 %v785_v9  ;;  %v705_v9 = vcvt.s32.f32 %v577_v60 }
 0x10d   : > { %1423 = vmatmul.bf16.gmra.mxu3 %v786_v10  ;;  %v791_v17 = vpack.c.bf16 %v707_v6, %v703_v5  ;;  %v3337_v5 = vld [vmem:[%s3183_s27 + $0xd8] sm:$0xff] }
 0x10f   : > { %v1295_v13 = vpop.f32.mrf.mxu2  ;;  %v1119_v20 = vpop.f32.mrf.mxu0 }
 0x110   : > { %v1384_v14 = vpop.f32.mrf.mxu3  ;;  %v1296_v19 = vadd.f32 %v1295_v13, %v1207_v11  ;;  %v1208_v21 = vpop.f32.mrf.mxu1  ;;  %v709_v11 = vcvt.s32.f32 %v581_v0  ;;  %v710_v13 = vcvt.s32.f32 %v582_v2  ;;  %v3328_v0 = vld [vmem:[%s3183_s27 + $0xc0] sm:$0xff] }
 0x111   : > { %v1209_v36 = vadd.f32 %v1208_v21, %v1119_v20  ;;  %v591_v6 = vunpack.c.0.s8 %v3328_v0 }
 0x112   : > { %v1385_v26 = vadd.f32 %v1384_v14, %v1296_v19  ;;  %v793_v22 = vpack.c.bf16 %v709_v11, %v705_v9  ;;  %v794_v23 = vpack.c.bf16 %v710_v13, %v706_v12  ;;  %v595_v9 = vunpack.c.1.s8 %v3328_v0 }
 0x114   : > { %v1464_v32 = vadd.f32 %v1385_v26, %v884_v25 }
 0x116   : > { %1497 = vst.msk [vmem:[#allocation2] sm:$0xff] %vm1496_vm1, %v1464_v32  ;;  %v584_v32 = vunpack.c.2.s8 %v3299_v51 }
 0x117   : > { %v1297_v37 = vpop.f32.mrf.mxu2  ;;  %v1122_v42 = vpop.f32.mrf.mxu0 }
 0x118   : > { %v1386_v38 = vpop.f32.mrf.mxu3  ;;  %v1298_v41 = vadd.f32 %v1297_v37, %v1209_v36  ;;  %v1211_v43 = vpop.f32.mrf.mxu1 }
 0x119   : > { %v1212_v50 = vadd.f32 %v1211_v43, %v1122_v42  ;;  %v711_v43 = vcvt.s32.f32 %v583_v28 }
 0x11a   : > { %v1387_v47 = vadd.f32 %v1386_v38, %v1298_v41  ;;  %1161 = vmatmul.bf16.gmra.mxu0 %v787_v39  ;;  %v589_v38 = vunpack.c.3.s8 %v3302_v52  ;;  %v586_v39 = vunpack.c.2.s8 %v3305_v53  ;;  %v888_v41 = vld [vmem:[#allocation2 + $0x20] sm:$0xff] }
 0x11b   : > { %1250 = vmatmul.bf16.gmra.mxu1 %v788_v40  ;;  %v590_v40 = vunpack.c.3.s8 %v3305_v53 }
 0x11c   : > { %v1465_v49 = vadd.f32 %v1387_v47, %v885_v46  ;;  %1339 = vmatmul.bf16.gmra.mxu2 %v789_v44  ;;  %v715_v44 = vcvt.s32.f32 %v587_v31  ;;  %v716_v46 = vcvt.s32.f32 %v588_v33  ;;  %v713_v47 = vcvt.s32.f32 %v585_v34 }
 0x11d   : > { %1428 = vmatmul.bf16.gmra.mxu3 %v790_v45  ;;  %v712_v45 = vcvt.s32.f32 %v584_v32  ;;  %v718_v51 = vcvt.s32.f32 %v590_v40  ;;  %v891_v40 = vld [vmem:[#allocation2 + $0x38] sm:$0xff] }
 0x11e   : > { %1498 = vst.msk [vmem:[#allocation2 + $0x8] sm:$0xff] %vm1496_vm1, %v1465_v49  ;;  %v717_v49 = vcvt.s32.f32 %v589_v38 }
 0x11f   : > { %v1300_v55 = vpop.f32.mrf.mxu2  ;;  %v1124_v62 = vpop.f32.mrf.mxu0  ;;  %v796_v53 = vpack.c.bf16 %v716_v46, %v712_v45 }
 0x120   : > { %v1389_v56 = vpop.f32.mrf.mxu3  ;;  %v1301_v61 = vadd.f32 %v1300_v55, %v1212_v50  ;;  %v1213_v63 = vpop.f32.mrf.mxu1  ;;  %v714_v50 = vcvt.s32.f32 %v586_v39  ;;  %v797_v60 = vpack.c.bf16 %v717_v49, %v713_v47  ;;  %v603_v47 = vunpack.c.3.s8 %v3328_v0 }
 0x121   : > { %v1214_v14 = vadd.f32 %v1213_v63, %v1124_v62  ;;  %v889_v62 = vld [vmem:[#allocation2 + $0x28] sm:$0xff] }
 0x122   : > { %v1390_v4 = vadd.f32 %v1389_v56, %v1301_v61  ;;  %v795_v56 = vpack.c.bf16 %v715_v44, %v711_v43  ;;  %v798_v61 = vpack.c.bf16 %v718_v51, %v714_v50  ;;  %v599_v44 = vunpack.c.2.s8 %v3328_v0 }
 0x124   : > { %v1466_v10 = vadd.f32 %v1390_v4, %v886_v3  ;;  %v3331_v3 = vld [vmem:[%s3183_s27 + $0xc8] sm:$0xff]  ;;  %v3334_v4 = vld [vmem:[%s3183_s27 + $0xd0] sm:$0xff] }
 0x125   : > { %v596_v11 = vunpack.c.1.s8 %v3331_v3  ;;  %v593_v12 = vunpack.c.0.s8 %v3334_v4  ;;  %v604_v49 = vunpack.c.3.s8 %v3331_v3  ;;  %v601_v50 = vunpack.c.2.s8 %v3334_v4 }
 0x126   : > { %1499 = vst.msk [vmem:[#allocation2 + $0x10] sm:$0xff] %vm1496_vm1, %v1466_v10  ;;  %v592_v10 = vunpack.c.0.s8 %v3331_v3 }
 0x127   : > { %v1302_v15 = vpop.f32.mrf.mxu2  ;;  %v1127_v20 = vpop.f32.mrf.mxu0 }
 0x128   : > { %v1391_v16 = vpop.f32.mrf.mxu3  ;;  %v1303_v19 = vadd.f32 %v1302_v15, %v1214_v14  ;;  %v1216_v21 = vpop.f32.mrf.mxu1 }
 0x129   : > { %v1217_v27 = vadd.f32 %v1216_v21, %v1127_v20  ;;  %v719_v21 = vcvt.s32.f32 %v591_v6 }
 0x12a   : > { %v1392_v25 = vadd.f32 %v1391_v16, %v1303_v19  ;;  %1166 = vmatmul.bf16.gmra.mxu0 %v791_v17  ;;  %v597_v16 = vunpack.c.1.s8 %v3334_v4  ;;  %v594_v17 = vunpack.c.0.s8 %v3337_v5  ;;  %v890_v19 = vld [vmem:[#allocation2 + $0x30] sm:$0xff] }
 0x12b   : > { %1255 = vmatmul.bf16.gmra.mxu1 %v792_v18  ;;  %v598_v18 = vunpack.c.1.s8 %v3337_v5 }
 0x12c   : > { %v1467_v26 = vadd.f32 %v1392_v25, %v887_v24  ;;  %1344 = vmatmul.bf16.gmra.mxu2 %v793_v22  ;;  %v723_v22 = vcvt.s32.f32 %v595_v9  ;;  %v724_v24 = vcvt.s32.f32 %v596_v11  ;;  %v721_v25 = vcvt.s32.f32 %v593_v12 }
 0x12d   : > { %1433 = vmatmul.bf16.gmra.mxu3 %v794_v23  ;;  %v720_v23 = vcvt.s32.f32 %v592_v10  ;;  %v722_v28 = vcvt.s32.f32 %v594_v17 }
 0x12e   : > { %1500 = vst.msk [vmem:[#allocation2 + $0x18] sm:$0xff] %vm1496_vm1, %v1467_v26  ;;  %v799_v33 = vpack.c.bf16 %v723_v22, %v719_v21  ;;  %v3369_v21 = vld [vmem:[%s3183_s27 + $0xf8] sm:$0xff] }
 0x12f   : > { %v1305_v29 = vpop.f32.mrf.mxu2  ;;  %v1129_v36 = vpop.f32.mrf.mxu0  ;;  %v800_v34 = vpack.c.bf16 %v724_v24, %v720_v23 }
 0x130   : > { %v1394_v30 = vpop.f32.mrf.mxu3  ;;  %v1306_v35 = vadd.f32 %v1305_v29, %v1217_v27  ;;  %v1218_v37 = vpop.f32.mrf.mxu1  ;;  %v725_v27 = vcvt.s32.f32 %v597_v16  ;;  %v726_v29 = vcvt.s32.f32 %v598_v18  ;;  %v3360_v16 = vld [vmem:[%s3183_s27 + $0xe0] sm:$0xff] }
 0x131   : > { %v1219_v54 = vadd.f32 %v1218_v37, %v1129_v36  ;;  %v607_v22 = vunpack.c.0.s8 %v3360_v16 }
 0x132   : > { %v1395_v42 = vadd.f32 %v1394_v30, %v1306_v35  ;;  %v801_v38 = vpack.c.bf16 %v725_v27, %v721_v25  ;;  %v802_v39 = vpack.c.bf16 %v726_v29, %v722_v28  ;;  %v611_v25 = vunpack.c.1.s8 %v3360_v16 }
 0x134   : > { %v1468_v48 = vadd.f32 %v1395_v42, %v888_v41 }
 0x136   : > { %1501 = vst.msk [vmem:[#allocation2 + $0x20] sm:$0xff] %vm1496_vm1, %v1468_v48  ;;  %v600_v48 = vunpack.c.2.s8 %v3331_v3 }
 0x137   : > { %v1307_v52 = vpop.f32.mrf.mxu2  ;;  %v1132_v58 = vpop.f32.mrf.mxu0 }
 0x138   : > { %v1396_v55 = vpop.f32.mrf.mxu3  ;;  %v1308_v57 = vadd.f32 %v1307_v52, %v1219_v54  ;;  %v1221_v59 = vpop.f32.mrf.mxu1 }
 0x139   : > { %v1222_v2 = vadd.f32 %v1221_v59, %v1132_v58  ;;  %v727_v59 = vcvt.s32.f32 %v599_v44 }
 0x13a   : > { %v1397_v63 = vadd.f32 %v1396_v55, %v1308_v57  ;;  %1171 = vmatmul.bf16.gmra.mxu0 %v795_v56  ;;  %v605_v55 = vunpack.c.3.s8 %v3334_v4  ;;  %v602_v56 = vunpack.c.2.s8 %v3337_v5  ;;  %v892_v57 = vld [vmem:[#allocation2 + $0x40] sm:$0xff] }
 0x13b   : > { %1260 = vmatmul.bf16.gmra.mxu1 %v796_v53  ;;  %v606_v53 = vunpack.c.3.s8 %v3337_v5 }
 0x13c   : > { %v1469_v1 = vadd.f32 %v1397_v63, %v889_v62  ;;  %1349 = vmatmul.bf16.gmra.mxu2 %v797_v60  ;;  %v731_v60 = vcvt.s32.f32 %v603_v47  ;;  %v732_v62 = vcvt.s32.f32 %v604_v49  ;;  %v729_v63 = vcvt.s32.f32 %v601_v50 }
 0x13d   : > { %1438 = vmatmul.bf16.gmra.mxu3 %v798_v61  ;;  %v728_v61 = vcvt.s32.f32 %v600_v48  ;;  %v734_v3 = vcvt.s32.f32 %v606_v53  ;;  %v895_v53 = vld [vmem:[#allocation2 + $0x58] sm:$0xff] }
 0x13e   : > { %1502 = vst.msk [vmem:[#allocation2 + $0x28] sm:$0xff] %vm1496_vm1, %v1469_v1  ;;  %v733_v1 = vcvt.s32.f32 %v605_v55 }
 0x13f   : > { %v1310_v7 = vpop.f32.mrf.mxu2  ;;  %v1134_v14 = vpop.f32.mrf.mxu0  ;;  %v804_v5 = vpack.c.bf16 %v732_v62, %v728_v61 }
 0x140   : > { %v1399_v8 = vpop.f32.mrf.mxu3  ;;  %v1311_v13 = vadd.f32 %v1310_v7, %v1222_v2  ;;  %v1223_v15 = vpop.f32.mrf.mxu1  ;;  %v730_v2 = vcvt.s32.f32 %v602_v56  ;;  %v805_v12 = vpack.c.bf16 %v733_v1, %v729_v63  ;;  %v619_v63 = vunpack.c.3.s8 %v3360_v16 }
 0x141   : > { %v1224_v30 = vadd.f32 %v1223_v15, %v1134_v14  ;;  %v893_v14 = vld [vmem:[#allocation2 + $0x48] sm:$0xff] }
 0x142   : > { %v1400_v20 = vadd.f32 %v1399_v8, %v1311_v13  ;;  %v803_v8 = vpack.c.bf16 %v731_v60, %v727_v59  ;;  %v806_v13 = vpack.c.bf16 %v734_v3, %v730_v2  ;;  %v615_v60 = vunpack.c.2.s8 %v3360_v16 }
 0x144   : > { %v1470_v26 = vadd.f32 %v1400_v20, %v890_v19  ;;  %v3363_v19 = vld [vmem:[%s3183_s27 + $0xe8] sm:$0xff]  ;;  %v3366_v20 = vld [vmem:[%s3183_s27 + $0xf0] sm:$0xff] }
 0x145   : > { %v612_v27 = vunpack.c.1.s8 %v3363_v19  ;;  %v609_v28 = vunpack.c.0.s8 %v3366_v20  ;;  %v620_v1 = vunpack.c.3.s8 %v3363_v19  ;;  %v617_v2 = vunpack.c.2.s8 %v3366_v20 }
 0x146   : > { %1503 = vst.msk [vmem:[#allocation2 + $0x30] sm:$0xff] %vm1496_vm1, %v1470_v26  ;;  %v608_v26 = vunpack.c.0.s8 %v3363_v19 }
 0x147   : > { %v1312_v31 = vpop.f32.mrf.mxu2  ;;  %v1137_v36 = vpop.f32.mrf.mxu0 }
 0x148   : > { %v1401_v32 = vpop.f32.mrf.mxu3  ;;  %v1313_v35 = vadd.f32 %v1312_v31, %v1224_v30  ;;  %v1226_v37 = vpop.f32.mrf.mxu1 }
 0x149   : > { %v1227_v43 = vadd.f32 %v1226_v37, %v1137_v36  ;;  %v735_v37 = vcvt.s32.f32 %v607_v22 }
 0x14a   : > { %v1402_v41 = vadd.f32 %v1401_v32, %v1313_v35  ;;  %1176 = vmatmul.bf16.gmra.mxu0 %v799_v33  ;;  %v613_v32 = vunpack.c.1.s8 %v3366_v20  ;;  %v610_v33 = vunpack.c.0.s8 %v3369_v21  ;;  %v894_v35 = vld [vmem:[#allocation2 + $0x50] sm:$0xff] }
 0x14b   : > { %1265 = vmatmul.bf16.gmra.mxu1 %v800_v34  ;;  %v614_v34 = vunpack.c.1.s8 %v3369_v21 }
 0x14c   : > { %v1471_v42 = vadd.f32 %v1402_v41, %v891_v40  ;;  %1354 = vmatmul.bf16.gmra.mxu2 %v801_v38  ;;  %v739_v38 = vcvt.s32.f32 %v611_v25  ;;  %v740_v40 = vcvt.s32.f32 %v612_v27  ;;  %v737_v41 = vcvt.s32.f32 %v609_v28 }
 0x14d   : > { %1443 = vmatmul.bf16.gmra.mxu3 %v802_v39  ;;  %v736_v39 = vcvt.s32.f32 %v608_v26  ;;  %v738_v44 = vcvt.s32.f32 %v610_v33 }
 0x14e   : > { %1504 = vst.msk [vmem:[#allocation2 + $0x38] sm:$0xff] %vm1496_vm1, %v1471_v42  ;;  %v807_v49 = vpack.c.bf16 %v739_v38, %v735_v37 }
 0x14f   : > { %v1315_v45 = vpop.f32.mrf.mxu2  ;;  %v1139_v54 = vpop.f32.mrf.mxu0  ;;  %v808_v50 = vpack.c.bf16 %v740_v40, %v736_v39  ;;  %v898_v39 = vld [vmem:[#allocation2 + $0x70] sm:$0xff] }
 0x150   : > { %v1404_v46 = vpop.f32.mrf.mxu3  ;;  %v1316_v51 = vadd.f32 %v1315_v45, %v1227_v43  ;;  %v1228_v52 = vpop.f32.mrf.mxu1  ;;  %v741_v43 = vcvt.s32.f32 %v613_v32  ;;  %v742_v45 = vcvt.s32.f32 %v614_v34 }
 0x151   : > { %v1229_v6 = vadd.f32 %v1228_v52, %v1139_v54 }
 0x152   : > { %v1405_v58 = vadd.f32 %v1404_v46, %v1316_v51  ;;  %v809_v55 = vpack.c.bf16 %v741_v43, %v737_v41  ;;  %v810_v56 = vpack.c.bf16 %v742_v45, %v738_v44 }
 0x154   : > { %v1472_v0 = vadd.f32 %v1405_v58, %v892_v57 }
 0x156   : > { %1505 = vst.msk [vmem:[#allocation2 + $0x40] sm:$0xff] %vm1496_vm1, %v1472_v0  ;;  %v616_v0 = vunpack.c.2.s8 %v3363_v19 }
 0x157   : > { %v1317_v4 = vpop.f32.mrf.mxu2  ;;  %v1142_v10 = vpop.f32.mrf.mxu0 }
 0x158   : > { %v1406_v7 = vpop.f32.mrf.mxu3  ;;  %v1318_v9 = vadd.f32 %v1317_v4, %v1229_v6  ;;  %v1231_v11 = vpop.f32.mrf.mxu1 }
 0x159   : > { %v1232_v18 = vadd.f32 %v1231_v11, %v1142_v10  ;;  %v743_v11 = vcvt.s32.f32 %v615_v60 }
 0x15a   : > { %v1407_v15 = vadd.f32 %v1406_v7, %v1318_v9  ;;  %1181 = vmatmul.bf16.gmra.mxu0 %v803_v8  ;;  %v621_v7 = vunpack.c.3.s8 %v3366_v20  ;;  %v618_v8 = vunpack.c.2.s8 %v3369_v21  ;;  %v896_v9 = vld [vmem:[#allocation2 + $0x60] sm:$0xff] }
 0x15b   : > { %1270 = vmatmul.bf16.gmra.mxu1 %v804_v5  ;;  %v622_v5 = vunpack.c.3.s8 %v3369_v21 }
 0x15c   : > { %v1473_v17 = vadd.f32 %v1407_v15, %v893_v14  ;;  %1359 = vmatmul.bf16.gmra.mxu2 %v805_v12  ;;  %v747_v12 = vcvt.s32.f32 %v619_v63  ;;  %v748_v14 = vcvt.s32.f32 %v620_v1  ;;  %v745_v15 = vcvt.s32.f32 %v617_v2  ;;  %v901_v2 = vld [vmem:[#allocation2 + $0x88] sm:$0xff] }
 0x15d   : > { %1448 = vmatmul.bf16.gmra.mxu3 %v806_v13  ;;  %v744_v13 = vcvt.s32.f32 %v616_v0  ;;  %v750_v19 = vcvt.s32.f32 %v622_v5 }
 0x15e   : > { %1506 = vst.msk [vmem:[#allocation2 + $0x48] sm:$0xff] %vm1496_vm1, %v1473_v17  ;;  %v749_v17 = vcvt.s32.f32 %v621_v7 }
 0x15f   : > { %v1320_v23 = vpop.f32.mrf.mxu2  ;;  %v1144_v30 = vpop.f32.mrf.mxu0  ;;  %v812_v25 = vpack.c.bf16 %v748_v14, %v744_v13 }
 0x160   : > { %v1409_v24 = vpop.f32.mrf.mxu3  ;;  %v1321_v29 = vadd.f32 %v1320_v23, %v1232_v18  ;;  %v1233_v31 = vpop.f32.mrf.mxu1  ;;  %v746_v18 = vcvt.s32.f32 %v618_v8  ;;  %v813_v28 = vpack.c.bf16 %v749_v17, %v745_v15 }
 0x161   : > { %v1234_v46 = vadd.f32 %v1233_v31, %v1144_v30  ;;  %v897_v30 = vld [vmem:[#allocation2 + $0x68] sm:$0xff] }
 0x162   : > { %v1410_v36 = vadd.f32 %v1409_v24, %v1321_v29  ;;  %v811_v24 = vpack.c.bf16 %v747_v12, %v743_v11  ;;  %v814_v29 = vpack.c.bf16 %v750_v19, %v746_v18  ;;  %v902_v11 = vld [vmem:[#allocation2 + $0x90] sm:$0xff] }
 0x164   : > { %v1474_v42 = vadd.f32 %v1410_v36, %v894_v35 }
 0x166   : > { %1507 = vst.msk [vmem:[#allocation2 + $0x50] sm:$0xff] %vm1496_vm1, %v1474_v42 }
 0x167   : > { %v1322_v47 = vpop.f32.mrf.mxu2  ;;  %v1147_v54 = vpop.f32.mrf.mxu0 }
 0x168   : > { %v1411_v48 = vpop.f32.mrf.mxu3  ;;  %v1323_v51 = vadd.f32 %v1322_v47, %v1234_v46  ;;  %v1236_v52 = vpop.f32.mrf.mxu1 }
 0x169   : > { %v1237_v59 = vadd.f32 %v1236_v52, %v1147_v54 }
 0x16a   : > { %v1412_v57 = vadd.f32 %v1411_v48, %v1323_v51  ;;  %1186 = vmatmul.bf16.gmra.mxu0 %v807_v49  ;;  %v899_v48 = vld [vmem:[#allocation2 + $0x78] sm:$0xff] }
 0x16b   : > { %1275 = vmatmul.bf16.gmra.mxu1 %v808_v50 }
 0x16c   : > { %v1475_v58 = vadd.f32 %v1412_v57, %v895_v53  ;;  %1364 = vmatmul.bf16.gmra.mxu2 %v809_v55  ;;  %v900_v57 = vld [vmem:[#allocation2 + $0x80] sm:$0xff] }
 0x16d   : > { %1453 = vmatmul.bf16.gmra.mxu3 %v810_v56 }
 0x16e   : > { %1508 = vst.msk [vmem:[#allocation2 + $0x58] sm:$0xff] %vm1496_vm1, %v1475_v58 }
 0x16f   : > { %v1325_v61 = vpop.f32.mrf.mxu2  ;;  %v1149_v6 = vpop.f32.mrf.mxu0 }
 0x170   : > { %v1414_v62 = vpop.f32.mrf.mxu3  ;;  %v1326_v3 = vadd.f32 %v1325_v61, %v1237_v59  ;;  %v1238_v4 = vpop.f32.mrf.mxu1 }
 0x171   : > { %v1239_v22 = vadd.f32 %v1238_v4, %v1149_v6 }
 0x172   : > { %v1415_v10 = vadd.f32 %v1414_v62, %v1326_v3 }
 0x174   : > { %v1476_v16 = vadd.f32 %v1415_v10, %v896_v9 }
 0x176   : > { %1509 = vst.msk [vmem:[#allocation2 + $0x60] sm:$0xff] %vm1496_vm1, %v1476_v16 }
 0x177   : > { %v1327_v23 = vpop.f32.mrf.mxu2  ;;  %v1152_v21 = vpop.f32.mrf.mxu0 }
 0x178   : > { %v1416_v20 = vpop.f32.mrf.mxu3  ;;  %v1328_v26 = vadd.f32 %v1327_v23, %v1239_v22  ;;  %v1241_v27 = vpop.f32.mrf.mxu1  ;;  %v903_v22 = vld [vmem:[#allocation2 + $0x98] sm:$0xff] }
 0x179   : > { %v1242_v33 = vadd.f32 %v1241_v27, %v1152_v21 }
 0x17a   : > { %v1417_v31 = vadd.f32 %v1416_v20, %v1328_v26  ;;  %1191 = vmatmul.bf16.gmra.mxu0 %v811_v24 }
 0x17b   : > { %1280 = vmatmul.bf16.gmra.mxu1 %v812_v25 }
 0x17c   : > { %v1477_v32 = vadd.f32 %v1417_v31, %v897_v30  ;;  %1369 = vmatmul.bf16.gmra.mxu2 %v813_v28 }
 0x17d   : > { %1458 = vmatmul.bf16.gmra.mxu3 %v814_v29  ;;  %v904_v29 = vld [vmem:[#allocation2 + $0xa0] sm:$0xff] }
 0x17e   : > { %1510 = vst.msk [vmem:[#allocation2 + $0x68] sm:$0xff] %vm1496_vm1, %v1477_v32 }
 0x17f   : > { %v1330_v34 = vpop.f32.mrf.mxu2  ;;  %v1154_v37 = vpop.f32.mrf.mxu0 }
 0x180   : > { %v1419_v35 = vpop.f32.mrf.mxu3  ;;  %v1331_v36 = vadd.f32 %v1330_v34, %v1242_v33  ;;  %v1243_v38 = vpop.f32.mrf.mxu1 }
 0x181   : > { %v1244_v42 = vadd.f32 %v1243_v38, %v1154_v37  ;;  %v905_v38 = vld [vmem:[#allocation2 + $0xa8] sm:$0xff] }
 0x182   : > { %v1420_v40 = vadd.f32 %v1419_v35, %v1331_v36 }
 0x184   : > { %v1478_v41 = vadd.f32 %v1420_v40, %v898_v39 }
 0x186   : > { %1511 = vst.msk [vmem:[#allocation2 + $0x70] sm:$0xff] %vm1496_vm1, %v1478_v41 }
 0x187   : > { %v1332_v43 = vpop.f32.mrf.mxu2  ;;  %v1157_v46 = vpop.f32.mrf.mxu0 }
 0x188   : > { %v1421_v44 = vpop.f32.mrf.mxu3  ;;  %v1333_v45 = vadd.f32 %v1332_v43, %v1244_v42  ;;  %v1246_v47 = vpop.f32.mrf.mxu1 }
 0x189   : > { %v1247_v51 = vadd.f32 %v1246_v47, %v1157_v46  ;;  %v906_v47 = vld [vmem:[#allocation2 + $0xb0] sm:$0xff] }
 0x18a   : > { %v1422_v49 = vadd.f32 %v1421_v44, %v1333_v45 }
 0x18c   : > { %v1479_v50 = vadd.f32 %v1422_v49, %v899_v48 }
 0x18e   : > { %1512 = vst.msk [vmem:[#allocation2 + $0x78] sm:$0xff] %vm1496_vm1, %v1479_v50 }
 0x18f   : > { %v1335_v54 = vpop.f32.mrf.mxu2  ;;  %v1159_v56 = vpop.f32.mrf.mxu0 }
 0x190   : > { %v1424_v52 = vpop.f32.mrf.mxu3  ;;  %v1336_v55 = vadd.f32 %v1335_v54, %v1247_v51  ;;  %v1248_v53 = vpop.f32.mrf.mxu1 }
 0x191   : > { %v1249_v60 = vadd.f32 %v1248_v53, %v1159_v56  ;;  %v907_v53 = vld [vmem:[#allocation2 + $0xb8] sm:$0xff] }
 0x192   : > { %v1425_v58 = vadd.f32 %v1424_v52, %v1336_v55 }
 0x194   : > { %v1480_v59 = vadd.f32 %v1425_v58, %v900_v57 }
 0x196   : > { %1513 = vst.msk [vmem:[#allocation2 + $0x80] sm:$0xff] %vm1496_vm1, %v1480_v59 }
 0x197   : > { %v1337_v61 = vpop.f32.mrf.mxu2  ;;  %v1162_v0 = vpop.f32.mrf.mxu0 }
 0x198   : > { %v1426_v62 = vpop.f32.mrf.mxu3  ;;  %v1338_v63 = vadd.f32 %v1337_v61, %v1249_v60  ;;  %v1251_v1 = vpop.f32.mrf.mxu1 }
 0x199   : > { %v1252_v4 = vadd.f32 %v1251_v1, %v1162_v0  ;;  %v908_v1 = vld [vmem:[#allocation2 + $0xc0] sm:$0xff] }
 0x19a   : > { %v1427_v3 = vadd.f32 %v1426_v62, %v1338_v63 }
 0x19c   : > { %v1481_v6 = vadd.f32 %v1427_v3, %v901_v2 }
 0x19e   : > { %1514 = vst.msk [vmem:[#allocation2 + $0x88] sm:$0xff] %vm1496_vm1, %v1481_v6 }
 0x19f   : > { %v1340_v7 = vpop.f32.mrf.mxu2  ;;  %v1164_v9 = vpop.f32.mrf.mxu0 }
 0x1a0   : > { %v1429_v8 = vpop.f32.mrf.mxu3  ;;  %v1341_v5 = vadd.f32 %v1340_v7, %v1252_v4  ;;  %v1253_v10 = vpop.f32.mrf.mxu1 }
 0x1a1   : > { %v1254_v14 = vadd.f32 %v1253_v10, %v1164_v9  ;;  %v909_v10 = vld [vmem:[#allocation2 + $0xc8] sm:$0xff] }
 0x1a2   : > { %v1430_v12 = vadd.f32 %v1429_v8, %v1341_v5 }
 0x1a4   : > { %v1482_v13 = vadd.f32 %v1430_v12, %v902_v11 }
 0x1a6   : > { %1515 = vst.msk [vmem:[#allocation2 + $0x90] sm:$0xff] %vm1496_vm1, %v1482_v13 }
 0x1a7   : > { %v1342_v15 = vpop.f32.mrf.mxu2  ;;  %v1167_v18 = vpop.f32.mrf.mxu0 }
 0x1a8   : > { %v1431_v16 = vpop.f32.mrf.mxu3  ;;  %v1343_v17 = vadd.f32 %v1342_v15, %v1254_v14  ;;  %v1256_v19 = vpop.f32.mrf.mxu1 }
 0x1a9   : > { %v1257_v24 = vadd.f32 %v1256_v19, %v1167_v18  ;;  %v910_v19 = vld [vmem:[#allocation2 + $0xd0] sm:$0xff] }
 0x1aa   : > { %v1432_v23 = vadd.f32 %v1431_v16, %v1343_v17 }
 0x1ac   : > { %v1483_v20 = vadd.f32 %v1432_v23, %v903_v22 }
 0x1ae   : > { %1516 = vst.msk [vmem:[#allocation2 + $0x98] sm:$0xff] %vm1496_vm1, %v1483_v20 }
 0x1af   : > { %v1345_v25 = vpop.f32.mrf.mxu2  ;;  %v1169_v27 = vpop.f32.mrf.mxu0 }
 0x1b0   : > { %v1434_v26 = vpop.f32.mrf.mxu3  ;;  %v1346_v21 = vadd.f32 %v1345_v25, %v1257_v24  ;;  %v1258_v28 = vpop.f32.mrf.mxu1 }
 0x1b1   : > { %v1259_v32 = vadd.f32 %v1258_v28, %v1169_v27  ;;  %v911_v28 = vld [vmem:[#allocation2 + $0xd8] sm:$0xff] }
 0x1b2   : > { %v1435_v30 = vadd.f32 %v1434_v26, %v1346_v21 }
 0x1b4   : > { %v1484_v31 = vadd.f32 %v1435_v30, %v904_v29 }
 0x1b6   : > { %1517 = vst.msk [vmem:[#allocation2 + $0xa0] sm:$0xff] %vm1496_vm1, %v1484_v31 }
 0x1b7   : > { %v1347_v33 = vpop.f32.mrf.mxu2  ;;  %v1172_v36 = vpop.f32.mrf.mxu0 }
 0x1b8   : > { %v1436_v34 = vpop.f32.mrf.mxu3  ;;  %v1348_v35 = vadd.f32 %v1347_v33, %v1259_v32  ;;  %v1261_v37 = vpop.f32.mrf.mxu1 }
 0x1b9   : > { %v1262_v41 = vadd.f32 %v1261_v37, %v1172_v36  ;;  %v912_v37 = vld [vmem:[#allocation2 + $0xe0] sm:$0xff] }
 0x1ba   : > { %v1437_v39 = vadd.f32 %v1436_v34, %v1348_v35 }
 0x1bc   : > { %v1485_v40 = vadd.f32 %v1437_v39, %v905_v38 }
 0x1be   : > { %1518 = vst.msk [vmem:[#allocation2 + $0xa8] sm:$0xff] %vm1496_vm1, %v1485_v40 }
 0x1bf   : > { %v1350_v42 = vpop.f32.mrf.mxu2  ;;  %v1174_v45 = vpop.f32.mrf.mxu0 }
 0x1c0   : > { %v1439_v43 = vpop.f32.mrf.mxu3  ;;  %v1351_v44 = vadd.f32 %v1350_v42, %v1262_v41  ;;  %v1263_v46 = vpop.f32.mrf.mxu1 }
 0x1c1   : > { %v1264_v50 = vadd.f32 %v1263_v46, %v1174_v45 }
 0x1c2   : > { %v1440_v48 = vadd.f32 %v1439_v43, %v1351_v44  ;;  %v913_v44 = vld [vmem:[#allocation2 + $0xe8] sm:$0xff] }
 0x1c4   : > { %v1486_v49 = vadd.f32 %v1440_v48, %v906_v47 }
 0x1c6   : > { %1519 = vst.msk [vmem:[#allocation2 + $0xb0] sm:$0xff] %vm1496_vm1, %v1486_v49 }
 0x1c7   : > { %v1352_v51 = vpop.f32.mrf.mxu2  ;;  %v1177_v55 = vpop.f32.mrf.mxu0 }
 0x1c8   : > { %v1441_v54 = vpop.f32.mrf.mxu3  ;;  %v1353_v52 = vadd.f32 %v1352_v51, %v1264_v50  ;;  %v1266_v56 = vpop.f32.mrf.mxu1 }
 0x1c9   : > { %v1267_v59 = vadd.f32 %v1266_v56, %v1177_v55 }
 0x1ca   : > { %v1442_v57 = vadd.f32 %v1441_v54, %v1353_v52  ;;  %v914_v52 = vld [vmem:[#allocation2 + $0xf0] sm:$0xff] }
 0x1cc   : > { %v1487_v58 = vadd.f32 %v1442_v57, %v907_v53 }
 0x1ce   : > { %1520 = vst.msk [vmem:[#allocation2 + $0xb8] sm:$0xff] %vm1496_vm1, %v1487_v58 }
 0x1cf   : > { %v1355_v60 = vpop.f32.mrf.mxu2  ;;  %v1179_v63 = vpop.f32.mrf.mxu0 }
 0x1d0   : > { %v1444_v61 = vpop.f32.mrf.mxu3  ;;  %v1356_v62 = vadd.f32 %v1355_v60, %v1267_v59  ;;  %v1268_v0 = vpop.f32.mrf.mxu1 }
 0x1d1   : > { %v1269_v6 = vadd.f32 %v1268_v0, %v1179_v63 }
 0x1d2   : > { %v1445_v2 = vadd.f32 %v1444_v61, %v1356_v62  ;;  %v915_v61 = vld [vmem:[#allocation2 + $0xf8] sm:$0xff] }
 0x1d4   : > { %v1488_v3 = vadd.f32 %v1445_v2, %v908_v1 }
 0x1d6   : > { %1521 = vst.msk [vmem:[#allocation2 + $0xc0] sm:$0xff] %vm1496_vm1, %v1488_v3 }
 0x1d7   : > { %v1357_v4 = vpop.f32.mrf.mxu2  ;;  %v1182_v5 = vpop.f32.mrf.mxu0 }
 0x1d8   : > { %v1446_v7 = vpop.f32.mrf.mxu3  ;;  %v1358_v8 = vadd.f32 %v1357_v4, %v1269_v6  ;;  %v1271_v9 = vpop.f32.mrf.mxu1 }
 0x1d9   : > { %v1272_v13 = vadd.f32 %v1271_v9, %v1182_v5 }
 0x1da   : > { %v1447_v11 = vadd.f32 %v1446_v7, %v1358_v8 }
 0x1dc   : > { %v1489_v12 = vadd.f32 %v1447_v11, %v909_v10 }
 0x1de   : > { %1522 = vst.msk [vmem:[#allocation2 + $0xc8] sm:$0xff] %vm1496_vm1, %v1489_v12 }
 0x1df   : > { %v1360_v14 = vpop.f32.mrf.mxu2  ;;  %v1184_v17 = vpop.f32.mrf.mxu0 }
 0x1e0   : > { %v1449_v15 = vpop.f32.mrf.mxu3  ;;  %v1361_v16 = vadd.f32 %v1360_v14, %v1272_v13  ;;  %v1273_v18 = vpop.f32.mrf.mxu1 }
 0x1e1   : > { %v1274_v20 = vadd.f32 %v1273_v18, %v1184_v17 }
 0x1e2   : > { %v1450_v22 = vadd.f32 %v1449_v15, %v1361_v16 }
 0x1e4   : > { %v1490_v23 = vadd.f32 %v1450_v22, %v910_v19 }
 0x1e6   : > { %1523 = vst.msk [vmem:[#allocation2 + $0xd0] sm:$0xff] %vm1496_vm1, %v1490_v23 }
 0x1e7   : > { %v1362_v24 = vpop.f32.mrf.mxu2  ;;  %v1187_v21 = vpop.f32.mrf.mxu0 }
 0x1e8   : > { %v1451_v25 = vpop.f32.mrf.mxu3  ;;  %v1363_v26 = vadd.f32 %v1362_v24, %v1274_v20  ;;  %v1276_v27 = vpop.f32.mrf.mxu1 }
 0x1e9   : > { %v1277_v31 = vadd.f32 %v1276_v27, %v1187_v21 }
 0x1ea   : > { %v1452_v29 = vadd.f32 %v1451_v25, %v1363_v26 }
 0x1ec   : > { %v1491_v30 = vadd.f32 %v1452_v29, %v911_v28 }
 0x1ee   : > { %1524 = vst.msk [vmem:[#allocation2 + $0xd8] sm:$0xff] %vm1496_vm1, %v1491_v30 }
 0x1ef   : > { %v1365_v32 = vpop.f32.mrf.mxu2  ;;  %v1189_v35 = vpop.f32.mrf.mxu0 }
 0x1f0   : > { %v1454_v33 = vpop.f32.mrf.mxu3  ;;  %v1366_v34 = vadd.f32 %v1365_v32, %v1277_v31  ;;  %v1278_v36 = vpop.f32.mrf.mxu1 }
 0x1f1   : > { %v1279_v40 = vadd.f32 %v1278_v36, %v1189_v35 }
 0x1f2   : > { %v1455_v38 = vadd.f32 %v1454_v33, %v1366_v34 }
 0x1f4   : > { %v1492_v39 = vadd.f32 %v1455_v38, %v912_v37 }
 0x1f6   : > { %1525 = vst.msk [vmem:[#allocation2 + $0xe0] sm:$0xff] %vm1496_vm1, %v1492_v39 }
 0x1f7   : > { %v1367_v41 = vpop.f32.mrf.mxu2  ;;  %v1192_v45 = vpop.f32.mrf.mxu0 }
 0x1f8   : > { %v1456_v42 = vpop.f32.mrf.mxu3  ;;  %v1368_v43 = vadd.f32 %v1367_v41, %v1279_v40  ;;  %v1281_v46 = vpop.f32.mrf.mxu1 }
 0x1f9   : > { %v1282_v49 = vadd.f32 %v1281_v46, %v1192_v45 }
 0x1fa   : > { %v1457_v47 = vadd.f32 %v1456_v42, %v1368_v43 }
 0x1fc   : > { %v1493_v48 = vadd.f32 %v1457_v47, %v913_v44 }
 0x1fe   : > { %1526 = vst.msk [vmem:[#allocation2 + $0xe8] sm:$0xff] %vm1496_vm1, %v1493_v48 }
 0x1ff   : > { %v1370_v50 = vpop.f32.mrf.mxu2  ;;  %v1194_v56 = vpop.f32.mrf.mxu0 }
 0x200   : > { %v1459_v51 = vpop.f32.mrf.mxu3  ;;  %v1371_v54 = vadd.f32 %v1370_v50, %v1282_v49  ;;  %v1283_v53 = vpop.f32.mrf.mxu1 }
 0x201   : > { %v1284_v58 = vadd.f32 %v1283_v53, %v1194_v56 }
 0x202   : > { %v1460_v55 = vadd.f32 %v1459_v51, %v1371_v54 }
 0x204   : > { %v1494_v57 = vadd.f32 %v1460_v55, %v914_v52 }
 0x206   : > { %1527 = vst.msk [vmem:[#allocation2 + $0xf0] sm:$0xff] %vm1496_vm1, %v1494_v57 }
 0x207   : > { %v1372_v59 = vpop.f32.mrf.mxu2 }
 0x208   : > { %v1373_v60 = vadd.f32 %v1372_v59, %v1284_v58  ;;  %v1461_v62 = vpop.f32.mrf.mxu3 }
 0x20a   : > { %v1462_v63 = vadd.f32 %v1461_v62, %v1373_v60  ;;  %1532 = sbr.rel (%p2695_p12) target bundleno = 1182 (0x49e), region = 79 }
 0x20c   : > { %v1495_v0 = vadd.f32 %v1462_v63, %v915_v61 }
 0x20e   : > { %1528 = vst.msk [vmem:[#allocation2 + $0xf8] sm:$0xff] %vm1496_vm1, %v1495_v0 }
 0x20f   : > { %v1569_v1 = vld [vmem:[%s3171_s19 + $0x20] sm:$0xff]  ;;  %v1567_v2 = vld [vmem:[%s3171_s19 + $0x10] sm:$0xff]  ;;  %v2995_v6 = vmov 0   ;;  %v1570_v4 = vld [vmem:[%s3171_s19 + $0x28] sm:$0xff]  ;;  %vm2018_vm2 = vcmask 261120  }
 0x210   : > { %v1565_v3 = vld [vmem:[%s3171_s19] sm:$0xff]  ;;  %2936 = vset.pattern.permute.xlu2 %v2995_v6  ;;  %2935 = vset.pattern.permute.xlu1 %v2995_v6  ;;  %v1568_v7 = vld [vmem:[%s3171_s19 + $0x18] sm:$0xff]  ;;  %v1566_v8 = vld [vmem:[%s3171_s19 + $0x8] sm:$0xff] }
 0x211   : > { %2934 = vset.pattern.permute.xlu0 %v2995_v6  ;;  %1619 = vperm.xlu2 %2936, %v1569_v1   ;;  %v1573_v5 = vld [vmem:[%s3171_s19 + $0x40] sm:$0xff]  ;;  %v1572_v9 = vld [vmem:[%s3171_s19 + $0x38] sm:$0xff]  ;;  %v1571_v10 = vld [vmem:[%s3171_s19 + $0x30] sm:$0xff] }
 0x212   : > { %1609 = vperm.xlu1 %2935, %v1567_v2   ;;  %1599 = vperm.xlu0 %2934, %v1565_v3   ;;  %v1576_v11 = vld [vmem:[%s3171_s19 + $0x58] sm:$0xff]  ;;  %v1575_v12 = vld [vmem:[%s3171_s19 + $0x50] sm:$0xff]  ;;  %v1574_v13 = vld [vmem:[%s3171_s19 + $0x48] sm:$0xff] }
 0x213   : > { %v1579_v14 = vld [vmem:[%s3171_s19 + $0x70] sm:$0xff]  ;;  %v1578_v15 = vld [vmem:[%s3171_s19 + $0x68] sm:$0xff]  ;;  %v1577_v16 = vld [vmem:[%s3171_s19 + $0x60] sm:$0xff] }
 0x214   : > { %v1582_v17 = vld [vmem:[%s3171_s19 + $0x88] sm:$0xff]  ;;  %v1581_v18 = vld [vmem:[%s3171_s19 + $0x80] sm:$0xff]  ;;  %v1580_v19 = vld [vmem:[%s3171_s19 + $0x78] sm:$0xff] }
 0x215   : > { %v1585_v22 = vld [vmem:[%s3171_s19 + $0xa0] sm:$0xff]  ;;  %v1584_v23 = vld [vmem:[%s3171_s19 + $0x98] sm:$0xff]  ;;  %v1583_v20 = vld [vmem:[%s3171_s19 + $0x90] sm:$0xff] }
 0x216   : > { %v1588_v24 = vld [vmem:[%s3171_s19 + $0xb8] sm:$0xff]  ;;  %v1587_v25 = vld [vmem:[%s3171_s19 + $0xb0] sm:$0xff]  ;;  %v1586_v26 = vld [vmem:[%s3171_s19 + $0xa8] sm:$0xff] }
 0x217   : > { %v1591_v21 = vld [vmem:[%s3171_s19 + $0xd0] sm:$0xff]  ;;  %v1590_v27 = vld [vmem:[%s3171_s19 + $0xc8] sm:$0xff]  ;;  %v1589_v28 = vld [vmem:[%s3171_s19 + $0xc0] sm:$0xff] }
 0x218   : > { %v1594_v29 = vld [vmem:[%s3171_s19 + $0xe8] sm:$0xff]  ;;  %v1593_v30 = vld [vmem:[%s3171_s19 + $0xe0] sm:$0xff]  ;;  %v1592_v31 = vld [vmem:[%s3171_s19 + $0xd8] sm:$0xff] }
 0x219   : > { %1624 = vperm.xlu2 %2936, %v1570_v4   ;;  %v2156_v32 = vld [vmem:[%s3176_s22] sm:$0xff]  ;;  %v1596_v33 = vld [vmem:[%s3171_s19 + $0xf8] sm:$0xff]  ;;  %v1595_v34 = vld [vmem:[%s3171_s19 + $0xf0] sm:$0xff] }
 0x21a   : > { %1614 = vperm.xlu1 %2935, %v1568_v7   ;;  %1604 = vperm.xlu0 %2934, %v1566_v8   ;;  %v2159_v35 = vld [vmem:[%s3176_s22 + $0x18] sm:$0xff]  ;;  %v2158_v36 = vld [vmem:[%s3176_s22 + $0x10] sm:$0xff]  ;;  %v2157_v37 = vld [vmem:[%s3176_s22 + $0x8] sm:$0xff] }
 0x21b   : > { %v2775_v38 = vld [vmem:[%s3645_s4] sm:$0xff]  ;;  %v2162_v39 = vld [vmem:[%s3176_s22 + $0x30] sm:$0xff]  ;;  %v2161_v40 = vld [vmem:[%s3176_s22 + $0x28] sm:$0xff] }
 0x21c   : > { %1872 = vmatpush.bf16.msra.mxu0 %v2775_v38  ;;  %2873 = vmatpush.bf16.msra.mxu3 %v2775_v38  ;;  %v2160_v41 = vld [vmem:[%s3176_s22 + $0x20] sm:$0xff]  ;;  %v2165_v42 = vld [vmem:[%s3176_s22 + $0x48] sm:$0xff]  ;;  %v2163_v44 = vld [vmem:[%s3176_s22 + $0x38] sm:$0xff] }
 0x21d   : > { %v2164_v43 = vld [vmem:[%s3176_s22 + $0x40] sm:$0xff]  ;;  %v2167_v47 = vld [vmem:[%s3176_s22 + $0x58] sm:$0xff]  ;;  %v2166_v48 = vld [vmem:[%s3176_s22 + $0x50] sm:$0xff] }
 0x21e   : > { %v2168_v46 = vld [vmem:[%s3176_s22 + $0x60] sm:$0xff]  ;;  %v2171_v54 = vld [vmem:[%s3176_s22 + $0x78] sm:$0xff]  ;;  %v2170_v52 = vld [vmem:[%s3176_s22 + $0x70] sm:$0xff] }
 0x21f   : > { %v2169_v55 = vld [vmem:[%s3176_s22 + $0x68] sm:$0xff]  ;;  %v1533_v56 = vld [vmem:[#allocation2] sm:$0xff]  ;;  %v2174_v62 = vld [vmem:[%s3176_s22 + $0x90] sm:$0xff] }
 0x220   : > { %v1534_v53 = vld [vmem:[#allocation2 + $0x8] sm:$0xff]  ;;  %v2172_v1 = vld [vmem:[%s3176_s22 + $0x80] sm:$0xff]  ;;  %v2175_v8 = vld [vmem:[%s3176_s22 + $0x98] sm:$0xff] }
 0x221   : > { %1639 = vperm.xlu2 %2936, %v1573_v5   ;;  %v2173_v0 = vld [vmem:[%s3176_s22 + $0x88] sm:$0xff]  ;;  %v2176_v7 = vld [vmem:[%s3176_s22 + $0xa0] sm:$0xff]  ;;  %v1535_v5 = vld [vmem:[#allocation2 + $0x10] sm:$0xff] }
 0x222   : > { %1634 = vperm.xlu1 %2935, %v1572_v9   ;;  %1629 = vperm.xlu0 %2934, %v1571_v10   ;;  %v2177_v6 = vld [vmem:[%s3176_s22 + $0xa8] sm:$0xff]  ;;  %v1536_v9 = vld [vmem:[#allocation2 + $0x18] sm:$0xff] }
 0x229   : > { %1654 = vperm.xlu2 %2936, %v1576_v11  }
 0x22a   : > { %1649 = vperm.xlu1 %2935, %v1575_v12   ;;  %1644 = vperm.xlu0 %2934, %v1574_v13  }
 0x231   : > { %1669 = vperm.xlu2 %2936, %v1579_v14   ;;  %v2180_v14 = vld [vmem:[%s3176_s22 + $0xc0] sm:$0xff] }
 0x232   : > { %1664 = vperm.xlu1 %2935, %v1578_v15   ;;  %1659 = vperm.xlu0 %2934, %v1577_v16   ;;  %v2179_v16 = vld [vmem:[%s3176_s22 + $0xb8] sm:$0xff] }
 0x239   : > { %1684 = vperm.xlu2 %2936, %v1582_v17   ;;  %v2178_v17 = vld [vmem:[%s3176_s22 + $0xb0] sm:$0xff] }
 0x23a   : > { %1679 = vperm.xlu1 %2935, %v1581_v18   ;;  %1674 = vperm.xlu0 %2934, %v1580_v19   ;;  %v1546_v19 = vld [vmem:[#allocation2 + $0x68] sm:$0xff] }
 0x241   : > { %1699 = vperm.xlu2 %2936, %v1585_v22   ;;  %v1545_v22 = vld [vmem:[#allocation2 + $0x60] sm:$0xff] }
 0x242   : > { %1694 = vperm.xlu1 %2935, %v1584_v23   ;;  %1689 = vperm.xlu0 %2934, %v1583_v20  }
 0x249   : > { %1714 = vperm.xlu2 %2936, %v1588_v24  }
 0x24a   : > { %1709 = vperm.xlu1 %2935, %v1587_v25   ;;  %1704 = vperm.xlu0 %2934, %v1586_v26   ;;  %v2183_v26 = vld [vmem:[%s3176_s22 + $0xd8] sm:$0xff] }
 0x251   : > { %1729 = vperm.xlu2 %2936, %v1591_v21   ;;  %v2182_v21 = vld [vmem:[%s3176_s22 + $0xd0] sm:$0xff] }
 0x252   : > { %1724 = vperm.xlu1 %2935, %v1590_v27   ;;  %1719 = vperm.xlu0 %2934, %v1589_v28   ;;  %v2181_v27 = vld [vmem:[%s3176_s22 + $0xc8] sm:$0xff] }
 0x259   : > { %1744 = vperm.xlu2 %2936, %v1594_v29   ;;  %v1537_v29 = vld [vmem:[#allocation2 + $0x20] sm:$0xff] }
 0x25a   : > { %1739 = vperm.xlu1 %2935, %v1593_v30   ;;  %1734 = vperm.xlu0 %2934, %v1592_v31   ;;  %v1538_v30 = vld [vmem:[#allocation2 + $0x28] sm:$0xff]  ;;  %v1547_v31 = vld [vmem:[#allocation2 + $0x70] sm:$0xff] }
 0x261   : > { %2190 = vperm.xlu2 %2936, %v2156_v32   ;;  %v1550_v32 = vld [vmem:[#allocation2 + $0x88] sm:$0xff] }
 0x262   : > { %1754 = vperm.xlu1 %2935, %v1596_v33   ;;  %1749 = vperm.xlu0 %2934, %v1595_v34   ;;  %v1549_v33 = vld [vmem:[#allocation2 + $0x80] sm:$0xff]  ;;  %v1548_v34 = vld [vmem:[#allocation2 + $0x78] sm:$0xff] }
 0x269   : > { %2205 = vperm.xlu2 %2936, %v2159_v35  }
 0x26a   : > { %2200 = vperm.xlu1 %2935, %v2158_v36   ;;  %2195 = vperm.xlu0 %2934, %v2157_v37  }
 0x26b   : > { %v3456_v45 = vpop.permute.xlu2 %1619 }
 0x26c   : > { %v1761_v35 = vmul.f32 %v3456_v45, %v1537_v29  ;;  %v1558_v29 = vld [vmem:[#allocation2 + $0xc8] sm:$0xff] }
 0x271   : > { %2220 = vperm.xlu2 %2936, %v2162_v39  }
 0x272   : > { %2215 = vperm.xlu1 %2935, %v2161_v40   ;;  %2210 = vperm.xlu0 %2934, %v2160_v41  }
 0x273   : > { %v3461_v49 = vpop.permute.xlu2 %1624 }
 0x274   : > { %v1762_v36 = vmul.f32 %v3461_v49, %v1538_v30 }
 0x279   : > { %2235 = vperm.xlu2 %2936, %v2165_v42  }
 0x27a   : > { %2230 = vperm.xlu1 %2935, %v2164_v43   ;;  %2225 = vperm.xlu0 %2934, %v2163_v44   ;;  %v2186_v44 = vld [vmem:[%s3176_s22 + $0xf0] sm:$0xff] }
 0x27b   : > { %v3466_v59 = vpop.permute.xlu2 %1639 }
 0x281   : > { %2250 = vperm.xlu2 %2936, %v2168_v46   ;;  %v1791_v46 = vpack.c.bf16 %v1762_v36, %v1761_v35  ;;  %v1560_v36 = vld [vmem:[#allocation2 + $0xd8] sm:$0xff] }
 0x282   : > { %2245 = vperm.xlu1 %2935, %v2167_v47   ;;  %2240 = vperm.xlu0 %2934, %v2166_v48   ;;  %v2185_v47 = vld [vmem:[%s3176_s22 + $0xe8] sm:$0xff]  ;;  %v2184_v48 = vld [vmem:[%s3176_s22 + $0xe0] sm:$0xff] }
 0x283   : > { %v3477_v4 = vpop.permute.xlu2 %1654 }
 0x284   : > { %v1610_v50 = vpop.permute.xlu1 %1609  ;;  %v1600_v51 = vpop.permute.xlu0 %1599 }
 0x285   : > { %v1757_v60 = vmul.f32 %v1600_v51, %v1533_v56  ;;  %v1759_v10 = vmul.f32 %v1610_v50, %v1535_v5  ;;  %v1552_v50 = vld [vmem:[#allocation2 + $0x98] sm:$0xff]  ;;  %v1551_v51 = vld [vmem:[#allocation2 + $0x90] sm:$0xff] }
 0x289   : > { %2265 = vperm.xlu2 %2936, %v2171_v54  }
 0x28a   : > { %2260 = vperm.xlu1 %2935, %v2170_v52   ;;  %2255 = vperm.xlu0 %2934, %v2169_v55  }
 0x28b   : > { %v1670_v18 = vpop.permute.xlu2 %1669 }
 0x28c   : > { %v1615_v57 = vpop.permute.xlu1 %1614  ;;  %v1605_v58 = vpop.permute.xlu0 %1604  ;;  %v3500_v40 = vmul.f32 %v1670_v18, %v1547_v31  ;;  %v1556_v18 = vld [vmem:[#allocation2 + $0xb8] sm:$0xff]  ;;  %v1557_v31 = vld [vmem:[#allocation2 + $0xc0] sm:$0xff] }
 0x28d   : > { %v1758_v61 = vmul.f32 %v1605_v58, %v1534_v53  ;;  %v1760_v11 = vmul.f32 %v1615_v57, %v1536_v9  ;;  %v2187_v57 = vld [vmem:[%s3176_s22 + $0xf8] sm:$0xff] }
 0x28e   : > { %v1540_v58 = vld [vmem:[#allocation2 + $0x38] sm:$0xff] }
 0x28f   : > { %v1789_v63 = vpack.c.bf16 %v1758_v61, %v1757_v60  ;;  %v1790_v15 = vpack.c.bf16 %v1760_v11, %v1759_v10  ;;  %v1539_v60 = vld [vmem:[#allocation2 + $0x30] sm:$0xff]  ;;  %v1541_v10 = vld [vmem:[#allocation2 + $0x40] sm:$0xff]  ;;  %v1542_v11 = vld [vmem:[#allocation2 + $0x48] sm:$0xff] }
 0x291   : > { %2700 = vmatmul.msk.bf16.vlgmr.msra.gmra.mxu0 %vm1496_vm1, %v1789_v63  ;;  %2280 = vperm.xlu2 %2936, %v2174_v62  }
 0x292   : > { %2275 = vperm.xlu1 %2935, %v2173_v0   ;;  %2270 = vperm.xlu0 %2934, %v2172_v1   ;;  %v1554_v1 = vld [vmem:[#allocation2 + $0xa8] sm:$0xff] }
 0x293   : > { %v1685_v37 = vpop.permute.xlu2 %1684 }
 0x294   : > { %v3472_v2 = vpop.permute.xlu1 %1634  ;;  %v3474_v3 = vpop.permute.xlu0 %1629  ;;  %v3502_v41 = vmul.f32 %v1685_v37, %v1550_v32 }
 0x295   : > { %v1764_v61 = vmul.f32 %v3472_v2, %v1540_v58  ;;  %v1763_v62 = vmul.f32 %v3474_v3, %v1539_v60 }
 0x297   : > { %v1792_v63 = vpack.c.bf16 %v1764_v61, %v1763_v62 }
 0x299   : > { %2295 = vperm.xlu2 %2936, %v2177_v6   ;;  %v1553_v6 = vld [vmem:[#allocation2 + $0xa0] sm:$0xff] }
 0x29a   : > { %2290 = vperm.xlu1 %2935, %v2176_v7   ;;  %2285 = vperm.xlu0 %2934, %v2175_v8  }
 0x29b   : > { %v1700_v8 = vpop.permute.xlu2 %1699 }
 0x29c   : > { %v3481_v12 = vpop.permute.xlu1 %1649  ;;  %v3483_v13 = vpop.permute.xlu0 %1644  ;;  %v1777_v5 = vmul.f32 %v1700_v8, %v1553_v6 }
 0x29d   : > { %v1766_v2 = vmul.f32 %v3483_v13, %v1542_v11 }
 0x2a1   : > { %2701 = vmatmul.msk.bf16.gmra.mxu0 %vm1496_vm1, %v1790_v15  ;;  %2310 = vperm.xlu2 %2936, %v2180_v14   ;;  %v1765_v14 = vmul.f32 %v3466_v59, %v1541_v10 }
 0x2a2   : > { %2305 = vperm.xlu1 %2935, %v2179_v16   ;;  %2300 = vperm.xlu0 %2934, %v2178_v17   ;;  %v1555_v16 = vld [vmem:[#allocation2 + $0xb0] sm:$0xff] }
 0x2a3   : > { %v1793_v15 = vpack.c.bf16 %v1766_v2, %v1765_v14  ;;  %v1715_v17 = vpop.permute.xlu2 %1714 }
 0x2a4   : > { %v1665_v23 = vpop.permute.xlu1 %1664  ;;  %v1660_v20 = vpop.permute.xlu0 %1659 }
 0x2a5   : > { %v3489_v24 = vmul.f32 %v1665_v23, %v1546_v19  ;;  %v3491_v25 = vmul.f32 %v1660_v20, %v1545_v22  ;;  %v1780_v22 = vmul.f32 %v1715_v17, %v1556_v18  ;;  %v1544_v20 = vld [vmem:[#allocation2 + $0x58] sm:$0xff] }
 0x2a7   : > { %v1795_v28 = vpack.c.bf16 %v3489_v24, %v3491_v25  ;;  %v1561_v25 = vld [vmem:[#allocation2 + $0xe0] sm:$0xff] }
 0x2a9   : > { %2325 = vperm.xlu2 %2936, %v2183_v26   ;;  %v1543_v26 = vld [vmem:[#allocation2 + $0x50] sm:$0xff] }
 0x2aa   : > { %2320 = vperm.xlu1 %2935, %v2182_v21   ;;  %2315 = vperm.xlu0 %2934, %v2181_v27   ;;  %v1768_v21 = vmul.f32 %v3477_v4, %v1544_v20  ;;  %v1767_v59 = vmul.f32 %v3481_v12, %v1543_v26  ;;  %v1559_v12 = vld [vmem:[#allocation2 + $0xd0] sm:$0xff] }
 0x2ab   : > { %v1730_v4 = vpop.permute.xlu2 %1729 }
 0x2ac   : > { %v1680_v38 = vpop.permute.xlu1 %1679  ;;  %v1675_v39 = vpop.permute.xlu0 %1674  ;;  %v1794_v27 = vpack.c.bf16 %v1768_v21, %v1767_v59 }
 0x2ad   : > { %v3504_v42 = vmul.f32 %v1680_v38, %v1549_v33  ;;  %v3506_v43 = vmul.f32 %v1675_v39, %v1548_v34  ;;  %v2777_v38 = vld [vmem:[%s3647_s6 + $0x8] sm:$0xff]  ;;  %v1783_v39 = vmul.f32 %v1730_v4, %v1559_v12 }
 0x2ae   : > { %2073 = vmatpush.bf16.msra.mxu1 %v2777_v38  ;;  %2874 = vmatpush.bf16.msra.mxu2 %v2777_v38 }
 0x2af   : > { %v1796_v45 = vpack.c.bf16 %v3506_v43, %v3500_v40  ;;  %v1797_v49 = vpack.c.bf16 %v3502_v41, %v3504_v42 }
 0x2b1   : > { %2702 = vmatmul.msk.bf16.gmra.mxu0 %vm1496_vm1, %v1791_v46  ;;  %2340 = vperm.xlu2 %2936, %v2186_v44   ;;  %v2776_v46 = vld [vmem:[%s3647_s6] sm:$0xff] }
 0x2b2   : > { %2335 = vperm.xlu1 %2935, %v2185_v47   ;;  %2330 = vperm.xlu0 %2934, %v2184_v48   ;;  %v1562_v47 = vld [vmem:[#allocation2 + $0xe8] sm:$0xff] }
 0x2b3   : > { %2074 = vmatpush.bf16.msra.mxu1 %v2776_v46  ;;  %2875 = vmatpush.bf16.msra.mxu2 %v2776_v46 }
 0x2b4   : > { %v1695_v54 = vpop.permute.xlu1 %1694  ;;  %v1690_v52 = vpop.permute.xlu0 %1689 }
 0x2b5   : > { %v1776_v55 = vmul.f32 %v1695_v54, %v1552_v50  ;;  %v1775_v56 = vmul.f32 %v1690_v52, %v1551_v51 }
 0x2b7   : > { %v1798_v53 = vpack.c.bf16 %v1776_v55, %v1775_v56  ;;  %v1564_v55 = vld [vmem:[#allocation2 + $0xf8] sm:$0xff] }
 0x2b9   : > { %2709 = vmatmul.msk.bf16.vlgmr.msra.gmra.mxu3 %vm1496_vm1, %v1798_v53  ;;  %v1563_v53 = vld [vmem:[#allocation2 + $0xf0] sm:$0xff] }
 0x2ba   : > { %2345 = vperm.xlu0 %2934, %v2187_v57   ;;  %v3549_v57 = vld [vmem:[%s3646_s5] ss:$0 sm:$0xff] }
 0x2bc   : > { %v1705_v0 = vpop.permute.xlu0 %1704  ;;  %v1710_v3 = vpop.permute.xlu1 %1709 }
 0x2bd   : > { %v1778_v7 = vmul.f32 %v1705_v0, %v1554_v1  ;;  %v1779_v19 = vmul.f32 %v1710_v3, %v1555_v16 }
 0x2bf   : > { %v1799_v9 = vpack.c.bf16 %v1778_v7, %v1777_v5  ;;  %v1800_v23 = vpack.c.bf16 %v1780_v22, %v1779_v19 }
 0x2c1   : > { %2703 = vmatmul.msk.bf16.gmra.mxu0 %vm1496_vm1, %v1792_v63 }
 0x2c4   : > { %v1725_v13 = vpop.permute.xlu1 %1724  ;;  %v1720_v30 = vpop.permute.xlu0 %1719 }
 0x2c5   : > { %v1782_v32 = vmul.f32 %v1725_v13, %v1558_v29  ;;  %v1781_v33 = vmul.f32 %v1720_v30, %v1557_v31 }
 0x2c7   : > { %v1801_v34 = vpack.c.bf16 %v1782_v32, %v1781_v33 }
 0x2c9   : > { %2710 = vmatmul.msk.bf16.gmra.mxu3 %vm1496_vm1, %v1799_v9 }
 0x2cc   : > { %v1735_v35 = vpop.permute.xlu0 %1734  ;;  %v1740_v24 = vpop.permute.xlu1 %1739 }
 0x2cd   : > { %v1784_v37 = vmul.f32 %v1735_v35, %v1560_v36  ;;  %v1785_v48 = vmul.f32 %v1740_v24, %v1561_v25 }
 0x2cf   : > { %v1802_v44 = vpack.c.bf16 %v1784_v37, %v1783_v39 }
 0x2d1   : > { %2704 = vmatmul.msk.bf16.gmra.mxu0 %vm1496_vm1, %v1793_v15 }
 0x2d4   : > { %v1755_v52 = vpop.permute.xlu1 %1754  ;;  %v1750_v56 = vpop.permute.xlu0 %1749 }
 0x2d5   : > { %v1788_v40 = vmul.f32 %v1755_v52, %v1564_v55  ;;  %v1787_v43 = vmul.f32 %v1750_v56, %v1563_v53 }
 0x2d7   : > { %v1804_v61 = vpack.c.bf16 %v1788_v40, %v1787_v43 }
 0x2d9   : > { %2711 = vmatmul.msk.bf16.gmra.mxu3 %vm1496_vm1, %v1800_v23 }
 0x2e1   : > { %2705 = vmatmul.msk.bf16.gmra.mxu0 %vm1496_vm1, %v1794_v27 }
 0x2e9   : > { %2712 = vmatmul.msk.bf16.gmra.mxu3 %vm1496_vm1, %v1801_v34 }
 0x2f1   : > { %2706 = vmatmul.msk.bf16.gmra.mxu0 %vm1496_vm1, %v1795_v28  ;;  %v1745_v28 = vpop.permute.xlu2 %1744 }
 0x2f2   : > { %v1786_v50 = vmul.f32 %v1745_v28, %v1562_v47 }
 0x2f4   : > { %v1803_v51 = vpack.c.bf16 %v1786_v50, %v1785_v48 }
 0x2f9   : > { %2713 = vmatmul.msk.bf16.gmra.mxu3 %vm1496_vm1, %v1802_v44 }
 0x301   : > { %2707 = vmatmul.msk.bf16.gmra.mxu0 %vm1496_vm1, %v1796_v45 }
 0x309   : > { %2714 = vmatmul.msk.bf16.gmra.mxu3 %vm1496_vm1, %v1803_v51 }
 0x30e   : > { %v1874_v54 = vpop.f32.mrf.mxu0 }
 0x30f   : > { %v1875_v45 = vadd.f32 %v3549_v57, %v1874_v54 }
 0x311   : > { %2708 = vmatmul.msk.bf16.gmra.mxu0 %vm1496_vm1, %v1797_v49  ;;  %v1954_v62 = vmax.f32 %v1875_v45, 0.0 }
 0x316   : > { %v1876_v58 = vpop.f32.mrf.mxu0 }
 0x317   : > { %v1877_v60 = vadd.f32 %v3549_v57, %v1876_v58 }
 0x319   : > { %v1955_v63 = vmax.f32 %v1877_v60, 0.0  ;;  %2715 = vmatmul.msk.bf16.gmra.mxu3 %vm1496_vm1, %v1804_v61 }
 0x31b   : > { %v1986_v0 = vpack.c.bf16 %v1955_v63, %v1954_v62  ;;  %v2191_v63 = vpop.permute.xlu2 %2190 }
 0x31d   : > { %2724 = vmatmul.msk.bf16.vlgmr.msra.gmra.mxu1 %vm2018_vm2, %v1986_v0  ;;  %v2196_v0 = vpop.permute.xlu0 %2195 }
 0x31e   : > { %v1879_v1 = vpop.f32.mrf.mxu0 }
 0x31f   : > { %v1880_v41 = vadd.f32 %v3549_v57, %v1879_v1 }
 0x321   : > { %v1956_v6 = vmax.f32 %v1880_v41, 0.0 }
 0x326   : > { %v1881_v42 = vpop.f32.mrf.mxu0 }
 0x327   : > { %v1882_v49 = vadd.f32 %v3549_v57, %v1881_v42 }
 0x329   : > { %v1957_v7 = vmax.f32 %v1882_v49, 0.0 }
 0x32b   : > { %v1987_v8 = vpack.c.bf16 %v1957_v7, %v1956_v6 }
 0x32d   : > { %2725 = vmatmul.msk.bf16.gmra.mxu1 %vm2018_vm2, %v1987_v8 }
 0x32e   : > { %v1884_v5 = vpop.f32.mrf.mxu0 }
 0x32f   : > { %v1885_v9 = vadd.f32 %v3549_v57, %v1884_v5 }
 0x331   : > { %v1958_v14 = vmax.f32 %v1885_v9, 0.0 }
 0x336   : > { %v1886_v10 = vpop.f32.mrf.mxu0 }
 0x337   : > { %v1887_v11 = vadd.f32 %v3549_v57, %v1886_v10 }
 0x339   : > { %v1959_v2 = vmax.f32 %v1887_v11, 0.0 }
 0x33b   : > { %v1988_v15 = vpack.c.bf16 %v1959_v2, %v1958_v14  ;;  %v2206_v2 = vpop.permute.xlu2 %2205 }
 0x33c   : > { %v1919_v24 = vpop.f32.mrf.mxu3 }
 0x33d   : > { %2726 = vmatmul.msk.bf16.gmra.mxu1 %vm2018_vm2, %v1988_v15  ;;  %v1920_v6 = vadd.f32 %v3549_v57, %v1919_v24  ;;  %v2201_v15 = vpop.permute.xlu1 %2200 }
 0x33e   : > { %v1889_v3 = vpop.f32.mrf.mxu0 }
 0x33f   : > { %v1890_v16 = vadd.f32 %v3549_v57, %v1889_v3  ;;  %v1972_v9 = vmax.f32 %v1920_v6, 0.0 }
 0x341   : > { %v1960_v19 = vmax.f32 %v1890_v16, 0.0 }
 0x344   : > { %v1921_v50 = vpop.f32.mrf.mxu3 }
 0x345   : > { %v1922_v41 = vadd.f32 %v3549_v57, %v1921_v50 }
 0x346   : > { %v1891_v17 = vpop.f32.mrf.mxu0 }
 0x347   : > { %v1892_v18 = vadd.f32 %v3549_v57, %v1891_v17  ;;  %v1973_v5 = vmax.f32 %v1922_v41, 0.0 }
 0x349   : > { %v1961_v22 = vmax.f32 %v1892_v18, 0.0  ;;  %v1995_v11 = vpack.c.bf16 %v1973_v5, %v1972_v9 }
 0x34b   : > { %v1989_v23 = vpack.c.bf16 %v1961_v22, %v1960_v19 }
 0x34c   : > { %v1924_v56 = vpop.f32.mrf.mxu3 }
 0x34d   : > { %2727 = vmatmul.msk.bf16.gmra.mxu1 %vm2018_vm2, %v1989_v23  ;;  %v1925_v19 = vadd.f32 %v3549_v57, %v1924_v56 }
 0x34e   : > { %v1894_v20 = vpop.f32.mrf.mxu0 }
 0x34f   : > { %v1895_v26 = vadd.f32 %v3549_v57, %v1894_v20  ;;  %v1974_v20 = vmax.f32 %v1925_v19, 0.0 }
 0x351   : > { %v1962_v27 = vmax.f32 %v1895_v26, 0.0 }
 0x354   : > { %v1926_v62 = vpop.f32.mrf.mxu3 }
 0x355   : > { %v1927_v16 = vadd.f32 %v3549_v57, %v1926_v62 }
 0x356   : > { %v1896_v21 = vpop.f32.mrf.mxu0 }
 0x357   : > { %v1897_v59 = vadd.f32 %v3549_v57, %v1896_v21  ;;  %v1975_v23 = vmax.f32 %v1927_v16, 0.0 }
 0x359   : > { %v1963_v13 = vmax.f32 %v1897_v59, 0.0  ;;  %v1996_v59 = vpack.c.bf16 %v1975_v23, %v1974_v20 }
 0x35b   : > { %v1990_v29 = vpack.c.bf16 %v1963_v13, %v1962_v27  ;;  %v2216_v27 = vpop.permute.xlu1 %2215  ;;  %v2211_v13 = vpop.permute.xlu0 %2210 }
 0x35c   : > { %v1929_v8 = vpop.f32.mrf.mxu3 }
 0x35d   : > { %2728 = vmatmul.msk.bf16.gmra.mxu1 %vm2018_vm2, %v1990_v29 }
 0x35e   : > { %v1899_v30 = vpop.f32.mrf.mxu0 }
 0x35f   : > { %v1900_v31 = vadd.f32 %v3549_v57, %v1899_v30 }
 0x361   : > { %v1964_v34 = vmax.f32 %v1900_v31, 0.0 }
 0x364   : > { %v1931_v14 = vpop.f32.mrf.mxu3 }
 0x365   : > { %v1932_v30 = vadd.f32 %v3549_v57, %v1931_v14 }
 0x366   : > { %v1901_v32 = vpop.f32.mrf.mxu0 }
 0x367   : > { %v1902_v33 = vadd.f32 %v3549_v57, %v1901_v32 }
 0x369   : > { %v1965_v35 = vmax.f32 %v1902_v33, 0.0 }
 0x36b   : > { %v1991_v36 = vpack.c.bf16 %v1965_v35, %v1964_v34  ;;  %v1930_v34 = vadd.f32 %v3549_v57, %v1929_v8 }
 0x36c   : > { %v1934_v26 = vpop.f32.mrf.mxu3 }
 0x36d   : > { %2729 = vmatmul.msk.bf16.gmra.mxu1 %vm2018_vm2, %v1991_v36  ;;  %v1977_v36 = vmax.f32 %v1932_v30, 0.0 }
 0x36e   : > { %v1904_v4 = vpop.f32.mrf.mxu0 }
 0x36f   : > { %v1905_v12 = vadd.f32 %v3549_v57, %v1904_v4  ;;  %v1976_v4 = vmax.f32 %v1930_v34, 0.0 }
 0x371   : > { %v1966_v39 = vmax.f32 %v1905_v12, 0.0 }
 0x374   : > { %v1936_v33 = vpop.f32.mrf.mxu3 }
 0x375   : > { %v1937_v24 = vadd.f32 %v3549_v57, %v1936_v33 }
 0x376   : > { %v1906_v37 = vpop.f32.mrf.mxu0 }
 0x377   : > { %v1907_v38 = vadd.f32 %v3549_v57, %v1906_v37  ;;  %v1997_v37 = vpack.c.bf16 %v1977_v36, %v1976_v4  ;;  %v1979_v50 = vmax.f32 %v1937_v24, 0.0 }
 0x379   : > { %v1967_v44 = vmax.f32 %v1907_v38, 0.0 }
 0x37b   : > { %v1992_v46 = vpack.c.bf16 %v1967_v44, %v1966_v39  ;;  %v2221_v39 = vpop.permute.xlu2 %2220  ;;  %v2226_v44 = vpop.permute.xlu0 %2225 }
 0x37c   : > { %v1939_v38 = vpop.f32.mrf.mxu3 }
 0x37d   : > { %2730 = vmatmul.msk.bf16.gmra.mxu1 %vm2018_vm2, %v1992_v46 }
 0x37e   : > { %v1909_v25 = vpop.f32.mrf.mxu0 }
 0x37f   : > { %v1910_v28 = vadd.f32 %v3549_v57, %v1909_v25 }
 0x381   : > { %v1968_v51 = vmax.f32 %v1910_v28, 0.0 }
 0x383   : > { %v2236_v56 = vpop.permute.xlu2 %2235  ;;  %v2241_v6 = vpop.permute.xlu0 %2240 }
 0x386   : > { %v1911_v47 = vpop.f32.mrf.mxu0 }
 0x387   : > { %v1912_v48 = vadd.f32 %v3549_v57, %v1911_v47  ;;  %v1935_v47 = vadd.f32 %v3549_v57, %v1934_v26 }
 0x389   : > { %v1969_v54 = vmax.f32 %v1912_v48, 0.0 }
 0x38b   : > { %v1993_v52 = vpack.c.bf16 %v1969_v54, %v1968_v51  ;;  %v1941_v51 = vpop.f32.mrf.mxu3  ;;  %v1978_v54 = vmax.f32 %v1935_v47, 0.0  ;;  %v2256_v19 = vpop.permute.xlu0 %2255 }
 0x38d   : > { %2731 = vmatmul.msk.bf16.gmra.mxu1 %vm2018_vm2, %v1993_v52 }
 0x38e   : > { %v1914_v55 = vpop.f32.mrf.mxu0 }
 0x38f   : > { %v1915_v53 = vadd.f32 %v3549_v57, %v1914_v55  ;;  %v1998_v55 = vpack.c.bf16 %v1979_v50, %v1978_v54 }
 0x391   : > { %v1970_v45 = vmax.f32 %v1915_v53, 0.0  ;;  %v2231_v53 = vpop.permute.xlu1 %2230 }
 0x396   : > { %v1916_v40 = vpop.f32.mrf.mxu0 }
 0x397   : > { %v1917_v43 = vadd.f32 %v3549_v57, %v1916_v40  ;;  %v1944_v40 = vpop.f32.mrf.mxu3 }
 0x399   : > { %v1971_v58 = vmax.f32 %v1917_v43, 0.0 }
 0x39a   : > { %v2076_v60 = vpop.f32.mrf.mxu1 }
 0x39b   : > { %v1994_v61 = vpack.c.bf16 %v1971_v58, %v1970_v45  ;;  %v2348_v42 = vmul.f32 %v2191_v63, %v2076_v60  ;;  %v1942_v45 = vadd.f32 %v3549_v57, %v1941_v51 }
 0x39d   : > { %2732 = vmatmul.msk.bf16.vlgmr.msra.gmra.mxu2 %vm2018_vm2, %v1994_v61  ;;  %v1940_v61 = vadd.f32 %v3549_v57, %v1939_v38  ;;  %v1981_v63 = vmax.f32 %v1942_v45, 0.0 }
 0x3a2   : > { %v2078_v1 = vpop.f32.mrf.mxu1 }
 0x3a3   : > { %v2349_v49 = vmul.f32 %v2196_v0, %v2078_v1  ;;  %v1980_v0 = vmax.f32 %v1940_v61, 0.0 }
 0x3a5   : > { %v2781_v7 = vpack.c.bf16 %v2349_v49, %v2348_v42  ;;  %v1999_v41 = vpack.c.bf16 %v1981_v63, %v1980_v0  ;;  %v1946_v42 = vpop.f32.mrf.mxu3  ;;  %v2246_v49 = vpop.permute.xlu1 %2245 }
 0x3a6   : > { %v1947_v8 = vadd.f32 %v3549_v57, %v1946_v42 }
 0x3a7   : > { %2782 = vst [vmem:[%s3181_s24] sm:$0xff] %v2781_v7  }
 0x3aa   : > { %v2081_v10 = vpop.f32.mrf.mxu1 }
 0x3ab   : > { %v2350_v17 = vmul.f32 %v2201_v15, %v2081_v10  ;;  %v1945_v10 = vadd.f32 %v3549_v57, %v1944_v40 }
 0x3ad   : > { %2733 = vmatmul.msk.bf16.gmra.mxu2 %vm2018_vm2, %v1995_v11  ;;  %v1949_v14 = vpop.f32.mrf.mxu3  ;;  %v1982_v15 = vmax.f32 %v1945_v10, 0.0 }
 0x3b2   : > { %v2083_v3 = vpop.f32.mrf.mxu1 }
 0x3b3   : > { %v2351_v18 = vmul.f32 %v2206_v2, %v2083_v3  ;;  %v1983_v2 = vmax.f32 %v1947_v8, 0.0 }
 0x3b5   : > { %v2786_v22 = vpack.c.bf16 %v2351_v18, %v2350_v17  ;;  %v2000_v16 = vpack.c.bf16 %v1983_v2, %v1982_v15  ;;  %v1951_v17 = vpop.f32.mrf.mxu3  ;;  %v2251_v18 = vpop.permute.xlu2 %2250 }
 0x3b6   : > { %v1952_v23 = vadd.f32 %v3549_v57, %v1951_v17 }
 0x3b7   : > { %2858 = vst [vmem:[%s3181_s24 + $0x8] sm:$0xff] %v2786_v22  }
 0x3ba   : > { %v2086_v21 = vpop.f32.mrf.mxu1 }
 0x3bb   : > { %v2352_v31 = vmul.f32 %v2211_v13, %v2086_v21  ;;  %v1950_v21 = vadd.f32 %v3549_v57, %v1949_v14  ;;  %v2271_v57 = vpop.permute.xlu0 %2270 }
 0x3bd   : > { %2734 = vmatmul.msk.bf16.gmra.mxu2 %vm2018_vm2, %v1996_v59  ;;  %v1984_v13 = vmax.f32 %v1950_v21, 0.0 }
 0x3c2   : > { %v2088_v29 = vpop.f32.mrf.mxu1 }
 0x3c3   : > { %v2353_v32 = vmul.f32 %v2216_v27, %v2088_v29  ;;  %v1985_v27 = vmax.f32 %v1952_v23, 0.0 }
 0x3c5   : > { %v2791_v35 = vpack.c.bf16 %v2353_v32, %v2352_v31  ;;  %v2001_v30 = vpack.c.bf16 %v1985_v27, %v1984_v13  ;;  %v2266_v31 = vpop.permute.xlu2 %2265  ;;  %v2261_v32 = vpop.permute.xlu1 %2260 }
 0x3c7   : > { %2859 = vst [vmem:[%s3181_s24 + $0x10] sm:$0xff] %v2791_v35  }
 0x3ca   : > { %v2091_v12 = vpop.f32.mrf.mxu1 }
 0x3cb   : > { %v2354_v25 = vmul.f32 %v2221_v39, %v2091_v12 }
 0x3cd   : > { %2735 = vmatmul.msk.bf16.gmra.mxu2 %vm2018_vm2, %v1997_v37  ;;  %v2276_v12 = vpop.permute.xlu1 %2275  ;;  %v2281_v24 = vpop.permute.xlu2 %2280 }
 0x3d2   : > { %v2093_v46 = vpop.f32.mrf.mxu1 }
 0x3d3   : > { %v2355_v28 = vmul.f32 %v2226_v44, %v2093_v46 }
 0x3d5   : > { %v2796_v48 = vpack.c.bf16 %v2355_v28, %v2354_v25  ;;  %v2286_v25 = vpop.permute.xlu0 %2285  ;;  %v2296_v54 = vpop.permute.xlu2 %2295 }
 0x3d7   : > { %2860 = vst [vmem:[%s3181_s24 + $0x18] sm:$0xff] %v2796_v48  }
 0x3da   : > { %v2096_v52 = vpop.f32.mrf.mxu1 }
 0x3db   : > { %v2356_v58 = vmul.f32 %v2231_v53, %v2096_v52  ;;  %v2291_v52 = vpop.permute.xlu1 %2290 }
 0x3dd   : > { %2736 = vmatmul.msk.bf16.gmra.mxu2 %vm2018_vm2, %v1998_v55 }
 0x3e2   : > { %v2098_v43 = vpop.f32.mrf.mxu1 }
 0x3e3   : > { %v2357_v60 = vmul.f32 %v2236_v56, %v2098_v43  ;;  %v2306_v45 = vpop.permute.xlu1 %2305 }
 0x3e5   : > { %v2801_v62 = vpack.c.bf16 %v2357_v60, %v2356_v58  ;;  %v2301_v58 = vpop.permute.xlu0 %2300 }
 0x3e7   : > { %2861 = vst [vmem:[%s3181_s24 + $0x20] sm:$0xff] %v2801_v62  }
 0x3ea   : > { %v2101_v1 = vpop.f32.mrf.mxu1 }
 0x3eb   : > { %v2358_v5 = vmul.f32 %v2241_v6, %v2101_v1  ;;  %v2311_v1 = vpop.permute.xlu2 %2310 }
 0x3ed   : > { %2737 = vmatmul.msk.bf16.gmra.mxu2 %vm2018_vm2, %v1999_v41  ;;  %v2316_v41 = vpop.permute.xlu0 %2315 }
 0x3f2   : > { %v2103_v7 = vpop.f32.mrf.mxu1 }
 0x3f3   : > { %v2359_v9 = vmul.f32 %v2246_v49, %v2103_v7 }
 0x3f5   : > { %v2806_v11 = vpack.c.bf16 %v2359_v9, %v2358_v5  ;;  %v2326_v5 = vpop.permute.xlu2 %2325  ;;  %v2321_v9 = vpop.permute.xlu1 %2320 }
 0x3f7   : > { %2862 = vst [vmem:[%s3181_s24 + $0x28] sm:$0xff] %v2806_v11  }
 0x3fa   : > { %v2106_v3 = vpop.f32.mrf.mxu1 }
 0x3fb   : > { %v2360_v20 = vmul.f32 %v2251_v18, %v2106_v3 }
 0x3fd   : > { %2738 = vmatmul.msk.bf16.gmra.mxu2 %vm2018_vm2, %v2000_v16  ;;  %v2336_v3 = vpop.permute.xlu1 %2335  ;;  %v2331_v16 = vpop.permute.xlu0 %2330 }
 0x402   : > { %v2108_v22 = vpop.f32.mrf.mxu1 }
 0x403   : > { %v2361_v26 = vmul.f32 %v2256_v19, %v2108_v22 }
 0x405   : > { %v2811_v59 = vpack.c.bf16 %v2361_v26, %v2360_v20  ;;  %v2341_v20 = vpop.permute.xlu2 %2340  ;;  %v2346_v26 = vpop.permute.xlu0 %2345 }
 0x407   : > { %2863 = vst [vmem:[%s3181_s24 + $0x30] sm:$0xff] %v2811_v59  }
 0x40a   : > { %v2111_v29 = vpop.f32.mrf.mxu1 }
 0x40b   : > { %v2362_v34 = vmul.f32 %v2261_v32, %v2111_v29 }
 0x40d   : > { %2739 = vmatmul.msk.bf16.gmra.mxu2 %vm2018_vm2, %v2001_v30 }
 0x412   : > { %v2113_v33 = vpop.f32.mrf.mxu1 }
 0x413   : > { %v2363_v35 = vmul.f32 %v2266_v31, %v2113_v33 }
 0x415   : > { %v2816_v36 = vpack.c.bf16 %v2363_v35, %v2362_v34 }
 0x417   : > { %2864 = vst [vmem:[%s3181_s24 + $0x38] sm:$0xff] %v2816_v36  }
 0x420   : > { %v2116_v4 = vpop.f32.mrf.mxu2 }
 0x421   : > { %v2364_v38 = vmul.f32 %v2271_v57, %v2116_v4 }
 0x428   : > { %v2118_v37 = vpop.f32.mrf.mxu2 }
 0x429   : > { %v2365_v39 = vmul.f32 %v2276_v12, %v2118_v37 }
 0x42b   : > { %v2821_v44 = vpack.c.bf16 %v2365_v39, %v2364_v38 }
 0x42d   : > { %2865 = vst [vmem:[%s3181_s24 + $0x40] sm:$0xff] %v2821_v44  }
 0x430   : > { %v2121_v46 = vpop.f32.mrf.mxu2 }
 0x431   : > { %v2366_v47 = vmul.f32 %v2281_v24, %v2121_v46 }
 0x438   : > { %v2123_v28 = vpop.f32.mrf.mxu2 }
 0x439   : > { %v2367_v48 = vmul.f32 %v2286_v25, %v2123_v28 }
 0x43b   : > { %v2826_v50 = vpack.c.bf16 %v2367_v48, %v2366_v47 }
 0x43d   : > { %2866 = vst [vmem:[%s3181_s24 + $0x48] sm:$0xff] %v2826_v50  }
 0x440   : > { %v2126_v51 = vpop.f32.mrf.mxu2 }
 0x441   : > { %v2368_v56 = vmul.f32 %v2291_v52, %v2126_v51 }
 0x448   : > { %v2128_v55 = vpop.f32.mrf.mxu2 }
 0x449   : > { %v2369_v53 = vmul.f32 %v2296_v54, %v2128_v55 }
 0x44b   : > { %v2831_v40 = vpack.c.bf16 %v2369_v53, %v2368_v56 }
 0x44d   : > { %2867 = vst [vmem:[%s3181_s24 + $0x50] sm:$0xff] %v2831_v40  }
 0x450   : > { %v2131_v43 = vpop.f32.mrf.mxu2 }
 0x451   : > { %v2370_v61 = vmul.f32 %v2301_v58, %v2131_v43 }
 0x458   : > { %v2133_v60 = vpop.f32.mrf.mxu2 }
 0x459   : > { %v2371_v62 = vmul.f32 %v2306_v45, %v2133_v60 }
 0x45b   : > { %v2836_v63 = vpack.c.bf16 %v2371_v62, %v2370_v61 }
 0x45d   : > { %2868 = vst [vmem:[%s3181_s24 + $0x58] sm:$0xff] %v2836_v63  }
 0x460   : > { %v2136_v0 = vpop.f32.mrf.mxu2 }
 0x461   : > { %v2372_v49 = vmul.f32 %v2311_v1, %v2136_v0 }
 0x468   : > { %v2138_v42 = vpop.f32.mrf.mxu2 }
 0x469   : > { %v2373_v6 = vmul.f32 %v2316_v41, %v2138_v42 }
 0x46b   : > { %v2841_v7 = vpack.c.bf16 %v2373_v6, %v2372_v49 }
 0x46d   : > { %2869 = vst [vmem:[%s3181_s24 + $0x60] sm:$0xff] %v2841_v7  }
 0x470   : > { %v2141_v8 = vpop.f32.mrf.mxu2 }
 0x471   : > { %v2374_v11 = vmul.f32 %v2321_v9, %v2141_v8 }
 0x478   : > { %v2143_v10 = vpop.f32.mrf.mxu2 }
 0x479   : > { %v2375_v14 = vmul.f32 %v2326_v5, %v2143_v10 }
 0x47b   : > { %v2846_v2 = vpack.c.bf16 %v2375_v14, %v2374_v11 }
 0x47d   : > { %2870 = vst [vmem:[%s3181_s24 + $0x68] sm:$0xff] %v2846_v2  }
 0x480   : > { %v2146_v15 = vpop.f32.mrf.mxu2 }
 0x481   : > { %v2376_v18 = vmul.f32 %v2331_v16, %v2146_v15 }
 0x488   : > { %v2148_v17 = vpop.f32.mrf.mxu2 }
 0x489   : > { %v2377_v19 = vmul.f32 %v2336_v3, %v2148_v17 }
 0x48b   : > { %v2851_v22 = vpack.c.bf16 %v2377_v19, %v2376_v18 }
 0x48d   : > { %2871 = vst [vmem:[%s3181_s24 + $0x70] sm:$0xff] %v2851_v22  }
 0x490   : > { %v2151_v23 = vpop.f32.mrf.mxu2 }
 0x491   : > { %v2378_v59 = vmul.f32 %v2341_v20, %v2151_v23 }
 0x498   : > { %v2153_v21 = vpop.f32.mrf.mxu2 }
 0x499   : > { %v2379_v27 = vmul.f32 %v2346_v26, %v2153_v21 }
 0x49b   : > { %v2856_v13 = vpack.c.bf16 %v2379_v27, %v2378_v59 }
 0x49d   : > { %2872 = vst [vmem:[%s3181_s24 + $0x78] sm:$0xff] %v2856_v13  }
 0x49e PF: > { %s17_s30 = sadd.s32 1, %s2992_s30   ;;  %s3649_s24 = smov %s2972_s25 }
 0x49f   : > { %p14_p13 = scmp.ge.s32.totalorder %s17_s30, 10   ;;  %s3650_s25 = smov %s3087_s14 }
 0x4a0   : > { %s3651_s26 = smov %s2984_s28  ;;  %s3652_s27 = smov %s2988_s29 }
 0x4a1   : > { %s3653_s28 = smov %s3656_s8  ;;  %s3654_s29 = smov %s3660_s9 }
 0x4a2   :  { %16 = sbr.rel (!%p14_p13) target bundleno = 4 (0x4), region = 121 }

</bundles_post_ra>
